<compile_context>
chip_gen: v5e
topology: v5e:2x2
jax: 0.10.0
libtpu: 0.0.40
codegen_flags: <defaults>
</compile_context>

<pallas_src>
import jax
import jax.numpy as jnp
import numpy as np
from jax import lax
from jax.experimental import pallas as pl
from jax.experimental.pallas import tpu as pltpu


# ---------------------------------------------------------------------------
# Kernels
# ---------------------------------------------------------------------------
def _init_embed_kernel(xn_ref, e_ref, wn1_ref, wn2_ref, we_ref, b_ref, o_ref):
    """InitialEmbedding for one batch element; output written lane-dense [C, N*N]."""
    n = xn_ref.shape[1]
    c = o_ref.shape[1]
    xn = xn_ref[0]                                                    # [N, Fn]
    ef = e_ref[0]                                                     # [N*N, Fe]
    # Contract the (tiny) feature axis of both operands: A @ B.T on the MXU.
    hu = lax.dot_general(wn1_ref[...], xn, (((1,), (1,)), ((), ())),
                         preferred_element_type=jnp.float32)          # [C, N]
    hv = lax.dot_general(wn2_ref[...], xn, (((1,), (1,)), ((), ())),
                         preferred_element_type=jnp.float32)          # [C, N]
    he = lax.dot_general(we_ref[...], ef, (((1,), (1,)), ((), ())),
                         preferred_element_type=jnp.float32)          # [C, N*N]
    out = he.reshape(c, n, n)
    out = out + lax.broadcast_in_dim(hu, (c, n, n), (0, 1))           # varies over u
    out = out + lax.broadcast_in_dim(hv, (c, n, n), (0, 2))           # varies over v
    o_ref[0] = (out.reshape(c, n * n) + b_ref[...]).astype(o_ref.dtype)


def _init_embed_noedge_kernel(xn_ref, wn1_ref, wn2_ref, b_ref, o_ref):
    """InitialEmbedding when E is None: no zero edge tensor is ever built/DMA'd."""
    n = xn_ref.shape[1]
    c = o_ref.shape[1]
    xn = xn_ref[0]                                                    # [N, Fn]
    hu = lax.dot_general(wn1_ref[...], xn, (((1,), (1,)), ((), ())),
                         preferred_element_type=jnp.float32)
    hv = lax.dot_general(wn2_ref[...], xn, (((1,), (1,)), ((), ())),
                         preferred_element_type=jnp.float32)
    out = (lax.broadcast_in_dim(hu, (c, n, n), (0, 1))
           + lax.broadcast_in_dim(hv, (c, n, n), (0, 2)))
    o_ref[0] = (out.reshape(c, n * n) + b_ref[...]).astype(o_ref.dtype)


def _fused_layers_kernel(x_ref, a_ref, w1_ref, b1_ref, w2_ref, b2_ref,
                         w3_ref, b3_ref, o_ref, state_ref):
    """All local-2-FWL layers (norm='no') fused: grid = (B, L).

    The pairwise state stays resident in a VMEM scratch [C, N*N] across the
    (innermost, "arbitrary") layer axis, so it never round-trips HBM between
    layers. The HBM output is written once, at the last layer, lane-dense.
    """
    l = pl.program_id(1)
    c, nn = state_ref.shape
    n = a_ref.shape[1]

    @pl.when(l == 0)
    def _():
        state_ref[...] = x_ref[0]

    x = state_ref[...]                                                # [C, N*N]
    h1 = jnp.maximum(
        jnp.dot(w1_ref[0], x, preferred_element_type=jnp.float32) + b1_ref[0], 0.0)
    h2 = jnp.maximum(
        jnp.dot(w2_ref[0], x, preferred_element_type=jnp.float32) + b2_ref[0], 0.0)
    a = a_ref[0]                                                      # [N, N]
    h1_3 = h1.reshape(c, n, n) * a[None, :, :]        # local masking by A[u, w]
    h2_3 = h2.reshape(c, n, n)
    # Per-channel contraction: m[c,u,v] = sum_w h1[c,u,w] * h2[c,w,v]
    # TODO(synk): at tiny N (<~32) this batched matmul is MXU-starved; a VPU
    # broadcast-multiply-accumulate (or channel block-diagonal packing) would
    # free the MXU for the W1/W2/W3 matmuls.
    m = lax.dot_general(h1_3, h2_3,
                        dimension_numbers=(((2,), (1,)), ((0,), (0,))),
                        preferred_element_type=jnp.float32)           # [C, N, N]
    x_new = x + jnp.dot(w3_ref[0], m.reshape(c, nn),
                        preferred_element_type=jnp.float32) + b3_ref[0]
    state_ref[...] = x_new
    # TODO(synk): norm='instance'/'batch' layer variants not implemented (norm='no').

    @pl.when(l == pl.num_programs(1) - 1)
    def _():
        o_ref[0] = state_ref[...].astype(o_ref.dtype)


# ---------------------------------------------------------------------------
# Wrappers (pallas_call plumbing)
# ---------------------------------------------------------------------------
def initial_embedding(Xn, E, params):
    """Returns the initial pairwise state, lane-dense: [B, C, N*N]."""
    B, N, Fn = Xn.shape
    C = params["wn1"].shape[0]
    b = params["b"].reshape(C, 1)
    if E is None:
        return pl.pallas_call(
            _init_embed_noedge_kernel,
            out_shape=jax.ShapeDtypeStruct((B, C, N * N), jnp.float32),
            grid=(B,),
            in_specs=[
                pl.BlockSpec((1, N, Fn), lambda i: (i, 0, 0)),
                pl.BlockSpec((C, Fn), lambda i: (0, 0)),
                pl.BlockSpec((C, Fn), lambda i: (0, 0)),
                pl.BlockSpec((C, 1), lambda i: (0, 0)),
            ],
            out_specs=pl.BlockSpec((1, C, N * N), lambda i: (i, 0, 0)),
            compiler_params=pltpu.CompilerParams(dimension_semantics=("parallel",)),
        )(Xn, params["wn1"], params["wn2"], b)

    Fe = E.shape[-1]
    e_flat = E.reshape(B, N * N, Fe)   # free metadata reshape; no HBM transpose
    return pl.pallas_call(
        _init_embed_kernel,
        out_shape=jax.ShapeDtypeStruct((B, C, N * N), jnp.float32),
        grid=(B,),
        in_specs=[
            pl.BlockSpec((1, N, Fn), lambda i: (i, 0, 0)),
            pl.BlockSpec((1, N * N, Fe), lambda i: (i, 0, 0)),
            pl.BlockSpec((C, Fn), lambda i: (0, 0)),
            pl.BlockSpec((C, Fn), lambda i: (0, 0)),
            pl.BlockSpec((C, Fe), lambda i: (0, 0)),
            pl.BlockSpec((C, 1), lambda i: (0, 0)),
        ],
        out_specs=pl.BlockSpec((1, C, N * N), lambda i: (i, 0, 0)),
        compiler_params=pltpu.CompilerParams(dimension_semantics=("parallel",)),
    )(Xn, e_flat, params["wn1"], params["wn2"], params["we"], b)


def fwl2_layers_fused(X0, A, layers):
    """All FWL layers in a single pallas_call. X0: [B, C, N*N] -> [B, C, N*N]."""
    B, C, NN = X0.shape
    N = A.shape[-1]
    L = len(layers)
    if L == 0:
        return X0
    w1 = jnp.stack([lp["w1"] for lp in layers])                       # [L, C, C]
    w2 = jnp.stack([lp["w2"] for lp in layers])
    w3 = jnp.stack([lp["w3"] for lp in layers])
    b1 = jnp.stack([lp["b1"] for lp in layers]).reshape(L, C, 1)
    b2 = jnp.stack([lp["b2"] for lp in layers]).reshape(L, C, 1)
    b3 = jnp.stack([lp["b3"] for lp in layers]).reshape(L, C, 1)

    return pl.pallas_call(
        _fused_layers_kernel,
        out_shape=jax.ShapeDtypeStruct((B, C, NN), jnp.float32),
        grid=(B, L),
        in_specs=[
            pl.BlockSpec((1, C, NN), lambda b, l: (b, 0, 0)),   # X0 (read at l==0)
            pl.BlockSpec((1, N, N), lambda b, l: (b, 0, 0)),    # A
            pl.BlockSpec((1, C, C), lambda b, l: (l, 0, 0)),    # W1
            pl.BlockSpec((1, C, 1), lambda b, l: (l, 0, 0)),    # b1
            pl.BlockSpec((1, C, C), lambda b, l: (l, 0, 0)),    # W2
            pl.BlockSpec((1, C, 1), lambda b, l: (l, 0, 0)),    # b2
            pl.BlockSpec((1, C, C), lambda b, l: (l, 0, 0)),    # W3
            pl.BlockSpec((1, C, 1), lambda b, l: (l, 0, 0)),    # b3
        ],
        out_specs=pl.BlockSpec((1, C, NN), lambda b, l: (b, 0, 0)),
        scratch_shapes=[pltpu.VMEM((C, NN), jnp.float32)],            # resident state
        compiler_params=pltpu.CompilerParams(
            dimension_semantics=("parallel", "arbitrary")),
    )(X0, A, w1, b1, w2, b2, w3, b3)


def local_fwl2_forward(A, Xn, E, params):
    """Equivalent of LocalFWL2.forward(A, X, E); returns [B, C, N, N]."""
    B, N, _ = Xn.shape
    C = params["wn1"].shape[0]
    X0 = initial_embedding(Xn, E, params)            # [B, C, N*N] lane-dense
    Xf = fwl2_layers_fused(X0, A, params["layers"])  # [B, C, N*N]
    return Xf.reshape(B, C, N, N)                    # free XLA reshape


# ---------------------------------------------------------------------------
# Pure-JAX reference (for correctness check)
# ---------------------------------------------------------------------------
def reference_forward(A, Xn, E, params):
    hu = jnp.einsum("cf,bnf->bcn", params["wn1"], Xn)
    hv = jnp.einsum("cf,bnf->bcn", params["wn2"], Xn)
    X = hu[:, :, :, None] + hv[:, :, None, :] + params["b"][None, :, None, None]
    if E is not None:
        X = X + jnp.einsum("cf,buvf->bcuv", params["we"], E)
    for lp in params["layers"]:
        h1 = jax.nn.relu(jnp.einsum("dc,bcuv->bduv", lp["w1"], X)
                         + lp["b1"][None, :, None, None])
        h2 = jax.nn.relu(jnp.einsum("dc,bcuv->bduv", lp["w2"], X)
                         + lp["b2"][None, :, None, None])
        h1 = h1 * A[:, None, :, :]
        m = jnp.einsum("bcuw,bcwv->bcuv", h1, h2)
        X = X + jnp.einsum("dc,bcuv->bduv", lp["w3"], m) + lp["b3"][None, :, None, None]
    return X


# ---------------------------------------------------------------------------
# Deterministic parameter / input construction
# ---------------------------------------------------------------------------
def make_params(key, channels, num_layers, node_in, edge_in):
    ks = jax.random.split(key, 4 + 6 * num_layers)
    def lin(k, o, i):
        return (jax.random.normal(k, (o, i), jnp.float32) / np.sqrt(i)).astype(jnp.float32)
    params = {
        "wn1": lin(ks[0], channels, node_in),
        "wn2": lin(ks[1], channels, node_in),
        "we": lin(ks[2], channels, edge_in),
        "b": 0.01 * jax.random.normal(ks[3], (channels,), jnp.float32),
        "layers": [],
    }
    for l in range(num_layers):
        kk = ks[4 + 6 * l: 4 + 6 * (l + 1)]
        params["layers"].append({
            "w1": lin(kk[0], channels, channels),
            "b1": 0.01 * jax.random.normal(kk[1], (channels,), jnp.float32),
            "w2": lin(kk[2], channels, channels),
            "b2": 0.01 * jax.random.normal(kk[3], (channels,), jnp.float32),
            "w3": lin(kk[4], channels, channels),
            "b3": 0.01 * jax.random.normal(kk[5], (channels,), jnp.float32),
        })
    return params


if __name__ == "__main__":
    B, N, C = 2, 16, 32
    node_in, edge_in, num_layers = 8, 4, 2

    key = jax.random.PRNGKey(0)
    k_a, k_x, k_e, k_p = jax.random.split(key, 4)

    # Symmetric 0/1 adjacency (float), node features, edge features.
    a_rand = jax.random.uniform(k_a, (B, N, N))
    A = (jnp.tril(a_rand, -1) + jnp.tril(a_rand, -1).transpose(0, 2, 1) > 0.5
         ).astype(jnp.float32)
    Xn = jax.random.normal(k_x, (B, N, node_in), jnp.float32)
    E = jax.random.normal(k_e, (B, N, N, edge_in), jnp.float32)

    params = make_params(k_p, C, num_layers, node_in, edge_in)

    # With edge features.
    out = jax.block_until_ready(local_fwl2_forward(A, Xn, E, params))
    ref = jax.block_until_ready(reference_forward(A, Xn, E, params))
    assert out.shape == (B, C, N, N)
    np.testing.assert_allclose(np.asarray(out), np.asarray(ref), rtol=1e-4, atol=1e-4)

    # E is None path (no zero edge tensor allocated / DMA'd).
    out_ne = jax.block_until_ready(local_fwl2_forward(A, Xn, None, params))
    ref_ne = jax.block_until_ready(reference_forward(A, Xn, None, params))
    np.testing.assert_allclose(np.asarray(out_ne), np.asarray(ref_ne),
                               rtol=1e-4, atol=1e-4)

    print("KERNEL_OK")
</pallas_src>

<mosaic_0001>
module attributes {stable_mosaic.version = 11 : i64} {
  func.func @_init_embed_kernel(%arg0: i32, %arg1: memref<1x16x8xf32, #tpu.memory_space<vmem>>, %arg2: memref<1x256x4xf32, #tpu.memory_space<vmem>>, %arg3: memref<32x8xf32, #tpu.memory_space<vmem>>, %arg4: memref<32x8xf32, #tpu.memory_space<vmem>>, %arg5: memref<32x4xf32, #tpu.memory_space<vmem>>, %arg6: memref<32x1xf32, #tpu.memory_space<vmem>>, %arg7: memref<1x32x256xf32, #tpu.memory_space<vmem>>) attributes {dimension_semantics = [#tpu.dimension_semantics<parallel>], iteration_bounds = array<i64: 2>, scalar_prefetch = 0 : i64, scratch_operands = 0 : i64, tpu.core_type = #tpu.core_type<tc>, window_params = [{transform_indices = @transform_0, window_bounds = array<i64: 1, 16, 8>}, {transform_indices = @transform_1, window_bounds = array<i64: 1, 256, 4>}, {pipeline_mode = #tpu.pipeline_mode<synchronous>, transform_indices = @transform_2, window_bounds = array<i64: 32, 8>}, {pipeline_mode = #tpu.pipeline_mode<synchronous>, transform_indices = @transform_3, window_bounds = array<i64: 32, 8>}, {pipeline_mode = #tpu.pipeline_mode<synchronous>, transform_indices = @transform_4, window_bounds = array<i64: 32, 4>}, {pipeline_mode = #tpu.pipeline_mode<synchronous>, transform_indices = @transform_5, window_bounds = array<i64: 32, 1>}, {transform_indices = @transform_6, window_bounds = array<i64: 1, 32, 256>}]} {
    %c0 = arith.constant 0 : index
    %c0_0 = arith.constant 0 : index
    %c0_1 = arith.constant 0 : index
    %0 = vector.load %arg1[%c0, %c0_0, %c0_1] : memref<1x16x8xf32, #tpu.memory_space<vmem>>, vector<1x16x8xf32>
    %1 = vector.shape_cast %0 : vector<1x16x8xf32> to vector<16x8xf32>
    %c0_2 = arith.constant 0 : index
    %c0_3 = arith.constant 0 : index
    %c0_4 = arith.constant 0 : index
    %2 = vector.load %arg2[%c0_2, %c0_3, %c0_4] : memref<1x256x4xf32, #tpu.memory_space<vmem>>, vector<1x256x4xf32>
    %3 = vector.shape_cast %2 : vector<1x256x4xf32> to vector<256x4xf32>
    %c0_5 = arith.constant 0 : index
    %c0_6 = arith.constant 0 : index
    %4 = vector.load %arg3[%c0_5, %c0_6] : memref<32x8xf32, #tpu.memory_space<vmem>>, vector<32x8xf32>
    %cst = arith.constant dense<0.000000e+00> : vector<32x16xf32>
    %5 = tpu.matmul %4, %1, %cst {dimension_numbers = #tpu.dot_dimension_numbers<[1], [1], [0], [0], [0, 0, 1, 0], [], []>} : vector<32x8xf32>, vector<16x8xf32>, vector<32x16xf32> -> vector<32x16xf32>
    %c0_7 = arith.constant 0 : index
    %c0_8 = arith.constant 0 : index
    %6 = vector.load %arg4[%c0_7, %c0_8] : memref<32x8xf32, #tpu.memory_space<vmem>>, vector<32x8xf32>
    %cst_9 = arith.constant dense<0.000000e+00> : vector<32x16xf32>
    %7 = tpu.matmul %6, %1, %cst_9 {dimension_numbers = #tpu.dot_dimension_numbers<[1], [1], [0], [0], [0, 0, 1, 0], [], []>} : vector<32x8xf32>, vector<16x8xf32>, vector<32x16xf32> -> vector<32x16xf32>
    %c0_10 = arith.constant 0 : index
    %c0_11 = arith.constant 0 : index
    %8 = vector.load %arg5[%c0_10, %c0_11] : memref<32x4xf32, #tpu.memory_space<vmem>>, vector<32x4xf32>
    %cst_12 = arith.constant dense<0.000000e+00> : vector<32x256xf32>
    %9 = tpu.matmul %8, %3, %cst_12 {dimension_numbers = #tpu.dot_dimension_numbers<[1], [1], [0], [0], [0, 0, 1, 0], [], []>} : vector<32x4xf32>, vector<256x4xf32>, vector<32x256xf32> -> vector<32x256xf32>
    %10 = vector.shape_cast %9 : vector<32x256xf32> to vector<32x16x16xf32>
    %11 = vector.shape_cast %5 : vector<32x16xf32> to vector<32x16x1xf32>
    %12 = vector.broadcast %11 : vector<32x16x1xf32> to vector<32x16x16xf32>
    %13 = arith.addf %10, %12 : vector<32x16x16xf32>
    %14 = vector.shape_cast %7 : vector<32x16xf32> to vector<32x1x16xf32>
    %15 = vector.broadcast %14 : vector<32x1x16xf32> to vector<32x16x16xf32>
    %16 = arith.addf %13, %15 : vector<32x16x16xf32>
    %17 = vector.shape_cast %16 : vector<32x16x16xf32> to vector<32x256xf32>
    %c0_13 = arith.constant 0 : index
    %c0_14 = arith.constant 0 : index
    %18 = vector.load %arg6[%c0_13, %c0_14] : memref<32x1xf32, #tpu.memory_space<vmem>>, vector<32x1xf32>
    %19 = vector.broadcast %18 : vector<32x1xf32> to vector<32x256xf32>
    %20 = arith.addf %17, %19 : vector<32x256xf32>
    %c0_15 = arith.constant 0 : index
    %c0_16 = arith.constant 0 : index
    %c0_17 = arith.constant 0 : index
    %21 = vector.load %arg7[%c0_15, %c0_16, %c0_17] : memref<1x32x256xf32, #tpu.memory_space<vmem>>, vector<1x32x256xf32>
    %22 = vector.shape_cast %21 : vector<1x32x256xf32> to vector<32x256xf32>
    %23 = vector.shape_cast %20 : vector<32x256xf32> to vector<1x32x256xf32>
    tpu.vector_store %arg7[%c0_15, %c0_16, %c0_17], %23 {strides = array<i32>} : memref<1x32x256xf32, #tpu.memory_space<vmem>>, vector<1x32x256xf32>,
    return
  }
  func.func @transform_0(%arg0: i32) -> (i32, i32, i32) {
    %c0_i32 = arith.constant 0 : i32
    %c0_i32_0 = arith.constant 0 : i32
    %c0_i32_1 = arith.constant 0 : i32
    return %arg0, %c0_i32, %c0_i32_0 : i32, i32, i32
  }
  func.func @transform_1(%arg0: i32) -> (i32, i32, i32) {
    %c0_i32 = arith.constant 0 : i32
    %c0_i32_0 = arith.constant 0 : i32
    %c0_i32_1 = arith.constant 0 : i32
    return %arg0, %c0_i32, %c0_i32_0 : i32, i32, i32
  }
  func.func @transform_2(%arg0: i32) -> (i32, i32) {
    %c0_i32 = arith.constant 0 : i32
    %c0_i32_0 = arith.constant 0 : i32
    %c0_i32_1 = arith.constant 0 : i32
    return %c0_i32, %c0_i32_0 : i32, i32
  }
  func.func @transform_3(%arg0: i32) -> (i32, i32) {
    %c0_i32 = arith.constant 0 : i32
    %c0_i32_0 = arith.constant 0 : i32
    %c0_i32_1 = arith.constant 0 : i32
    return %c0_i32, %c0_i32_0 : i32, i32
  }
  func.func @transform_4(%arg0: i32) -> (i32, i32) {
    %c0_i32 = arith.constant 0 : i32
    %c0_i32_0 = arith.constant 0 : i32
    %c0_i32_1 = arith.constant 0 : i32
    return %c0_i32, %c0_i32_0 : i32, i32
  }
  func.func @transform_5(%arg0: i32) -> (i32, i32) {
    %c0_i32 = arith.constant 0 : i32
    %c0_i32_0 = arith.constant 0 : i32
    %c0_i32_1 = arith.constant 0 : i32
    return %c0_i32, %c0_i32_0 : i32, i32
  }
  func.func @transform_6(%arg0: i32) -> (i32, i32, i32) {
    %c0_i32 = arith.constant 0 : i32
    %c0_i32_0 = arith.constant 0 : i32
    %c0_i32_1 = arith.constant 0 : i32
    return %arg0, %c0_i32, %c0_i32_0 : i32, i32, i32
  }
}

</mosaic_0001>

<bundles_post_ra>
// kernel: tpu_custom_call.1
= control target key start
LH: loop header
LB: loop body
LE: loop exit
PB: predicated region body
PF: predicated region fallthrough
CT: control target
= control target key end

     0   :  { %11 = vsyncpa [#allocation3], 0  ;;  %s6474_s0 = inlined_call_operand.vmem [shape: f32[2,16,8], index: 0, kind: input, shape index: {}]   ;;  %s6475_s1 = inlined_call_operand.vmem [shape: f32[2,256,4], index: 1, kind: input, shape index: {}]   ;;  %s6476_s2 = inlined_call_operand.vmem [shape: f32[32,8], index: 2, kind: input, shape index: {}]   ;;  %s6477_s3 = inlined_call_operand.vmem [shape: f32[32,8], index: 3, kind: input, shape index: {}]   ;;  %s6478_s4 = inlined_call_operand.vmem [shape: f32[32,4], index: 4, kind: input, shape index: {}]   ;;  %s6479_s5 = inlined_call_operand.vmem [shape: f32[32,1], index: 5, kind: input, shape index: {}]   ;;  %s6480_s6 = inlined_call_operand.hbm [shape: f32[2,32,256], index: 6, kind: output, shape index: {}]  }
   0x1   :  { %13 = vsyncpa [#allocation3 + $0x1], 0  ;;  %s3891_s21 = smov 0   ;;  %s3893_s22 = smov 0  }
   0x2   :  { %s3895_s23 = smov 0   ;;  %s3897_s24 = smov 0  }
   0x3 LB: > { %s3912_s25 = sadd.s32 4294967295, %s3843_s24   ;;  %s3598_s26 = sadd.s32 4294967294, %s3843_s24   ;;  %s3843_s24 = sphi %s3897_s24, %s6747_s24   ;;  %s3839_s23 = sphi %s3895_s23, %s6746_s23   ;;  %s3835_s22 = sphi %s3893_s22, %s6745_s22   ;;  %s3831_s21 = sphi %s3891_s21, %s6744_s21  }
   0x4   : > { %s3916_s27 = sadd.s32 1, %s3843_s24   ;;  %s162_s28 = sadd.s32 1, %s3839_s23 }
   0x5   : > { %s159_s29 = ssub.s32 %s3843_s24, %s3916_s27  ;;  %p172_p0 = scmp.ne.s32.totalorder %s3839_s23, %s3835_s22 }
   0x6   : > { %p160_p1 = scmp.eq.s32.totalorder %s159_s29, 0  ;;  %p173_p2 = scmp.eq.s32.totalorder %s3912_s25, 1 }
   0x7   : > { %p178_p3 = scmp.ne.s32.totalorder %s3835_s22, %s3831_s21  ;;  %p179_p4 = scmp.eq.s32.totalorder %s3598_s26, 1 }
   0x8   : > { %s3927_s30 = scalar_select %p160_p1, %s3839_s23, %s162_s28  }
   0x9   : > { %p3929_p5 = por %p173_p2, %p172_p0  ;;  %p3933_p6 = por %p179_p4, %p178_p3 }
   0xa   : > { %p3601_p7 = scmp.ge.s32.totalorder %s3843_s24, 1  ;;  %p225_p8 = scmp.lt.s32.totalorder %s3843_s24, 3 }
   0xc   : > { %p226_p9 = pnand %p3601_p7, %p225_p8 }
   0xe   : > { %229 = sbr.rel (%p226_p9) target bundleno = 1013 (0x3f5), region = 44 }
  0x13   : > { %p260_p10 = scmp.lt.s32.totalorder %s3912_s25, 1  ;;  %vm308_vm0 = vcmask 64512   ;;  %vm405_vm1 = vcmask 31744   ;;  %v304_v4 = vld [vmem:[%s6476_s2] sm:$0xff]  ;;  %v305_v9 = vld [vmem:[%s6476_s2 + $0x8] sm:$0xff]  ;;  %v306_v14 = vld [vmem:[%s6476_s2 + $0x10] sm:$0xff]  ;;  %v1646_v26 = vlaneseq }
  0x14   : > { %v356_v18 = vld [vmem:[%s6477_s3] sm:$0xff]  ;;  %v307_v20 = vld [vmem:[%s6476_s2 + $0x18] sm:$0xff]  ;;  %v357_v24 = vld [vmem:[%s6477_s3 + $0x8] sm:$0xff]  ;;  %s3845_s12 = smov 112   ;;  %s3846_s13 = smov 64   ;;  %vm749_vm2 = vcmask 1047556  }
  0x15   : > { %s261_s9 = scalar_select %p260_p10, %s3912_s25, 1  ;;  %v4034_v29 = vshrl.u32 %v1646_v26, 7  ;;  %v358_v30 = vld [vmem:[%s6477_s3 + $0x10] sm:$0xff]  ;;  %v359_v35 = vld [vmem:[%s6477_s3 + $0x18] sm:$0xff]  ;;  %v402_v45 = vld [vmem:[%s6478_s4 + $0x8] sm:$0xff]  ;;  %vm3405_vm3 = vcmask 130048  }
  0x16   : > { %v403_v44 = vld [vmem:[%s6478_s4 + $0x10] sm:$0xff]  ;;  %v401_v46 = vld [vmem:[%s6478_s4] sm:$0xff]  ;;  %v404_v47 = vld [vmem:[%s6478_s4 + $0x18] sm:$0xff]  ;;  %s3848_s15 = smov 80   ;;  %s3849_s16 = smov 32   ;;  %vm3410_vm4 = vcmask 261120  }
  0x17   : > { %s3664_s10 = sshll.u32 %s261_s9, 4  ;;  %s3665_s11 = sshll.u32 %s261_s9, 8  ;;  %3752 = vset.pattern.permute.xlu0 %v4034_v29  ;;  %3750 = vset.pattern.permute.xlu1 %v4034_v29  ;;  %v4114_v52 = vadd.s32 8, %v4034_v29  ;;  %vm3415_vm5 = vcmask 392192   ;;  %vm3420_vm6 = vcmask 523264   ;;  %vm3425_vm7 = vcmask 654336  }
  0x18   : > { %s264_s14 = scalar_lea.vmem %s6474_s0, %s3664_s10  ;;  %s3947_s17 = scalar_lea.vmem %s6475_s1, %s3665_s11  ;;  %3749 = vset.pattern.permute.xlu2 %v4034_v29  ;;  %vm3430_vm8 = vcmask 785408   ;;  %vm3435_vm9 = vcmask 916480  }
  0x19   : > { %v271_v0 = vld [vmem:[%s264_s14 + $0x8] sm:$0xff]  ;;  %v287_v1 = vld [vmem:[%s3947_s17 + $0x78] sm:$0xff]  ;;  %v270_v2 = vld [vmem:[%s264_s14] sm:$0xff]  ;;  %s3847_s14 = smov 16   ;;  %s3850_s18 = smov 96  }
  0x1a   : > { %3607 = vmatpush.xpose.msk.msra.mxu0 %vm308_vm0, %v271_v0  ;;  %3613 = vmatpush.xpose.msk.msra.mxu1 %vm308_vm0, %v271_v0  ;;  %v303_v3 = vld [vmem:[%s3947_s17 + $0xf8] sm:$0xff]  ;;  %v286_v5 = vld [vmem:[%s3947_s17 + $0x70] sm:$0xff]  ;;  %v285_v7 = vld [vmem:[%s3947_s17 + $0x68] sm:$0xff]  ;;  %s3851_s19 = smov 48   ;;  %s3801_s11 = scalar_lea.hbm %s6480_s6, 128 }
  0x1b   : > { %3667 = vmatpush.xpose.msk.msra.mxu2 %vm405_vm1, %v287_v1  ;;  %3683 = vmatpush.xpose.msk.msra.mxu3 %vm405_vm1, %v303_v3  ;;  %v302_v6 = vld [vmem:[%s3947_s17 + $0xf0] sm:$0xff]  ;;  %v301_v8 = vld [vmem:[%s3947_s17 + $0xe8] sm:$0xff]  ;;  %v284_v10 = vld [vmem:[%s3947_s17 + $0x60] sm:$0xff] }
  0x1c   : > { %v300_v11 = vld [vmem:[%s3947_s17 + $0xe0] sm:$0xff]  ;;  %v283_v12 = vld [vmem:[%s3947_s17 + $0x58] sm:$0xff]  ;;  %v282_v15 = vld [vmem:[%s3947_s17 + $0x50] sm:$0xff] }
  0x1d   : > { %v299_v13 = vld [vmem:[%s3947_s17 + $0xd8] sm:$0xff]  ;;  %v298_v16 = vld [vmem:[%s3947_s17 + $0xd0] sm:$0xff]  ;;  %v281_v17 = vld [vmem:[%s3947_s17 + $0x48] sm:$0xff] }
  0x1e   : > { %3608 = vmatpush.xpose.msk.msra.mxu0 %vm308_vm0, %v270_v2  ;;  %3614 = vmatpush.xpose.msk.msra.mxu1 %vm308_vm0, %v270_v2  ;;  %v297_v19 = vld [vmem:[%s3947_s17 + $0xc8] sm:$0xff]  ;;  %v280_v21 = vld [vmem:[%s3947_s17 + $0x40] sm:$0xff]  ;;  %v279_v23 = vld [vmem:[%s3947_s17 + $0x38] sm:$0xff] }
  0x1f   : > { %3668 = vmatpush.xpose.msk.msra.mxu2 %vm405_vm1, %v286_v5  ;;  %3684 = vmatpush.xpose.msk.msra.mxu3 %vm405_vm1, %v302_v6  ;;  %v296_v22 = vld [vmem:[%s3947_s17 + $0xc0] sm:$0xff]  ;;  %v295_v25 = vld [vmem:[%s3947_s17 + $0xb8] sm:$0xff]  ;;  %v278_v27 = vld [vmem:[%s3947_s17 + $0x30] sm:$0xff] }
  0x20   : > { %v294_v28 = vld [vmem:[%s3947_s17 + $0xb0] sm:$0xff]  ;;  %v277_v31 = vld [vmem:[%s3947_s17 + $0x28] sm:$0xff]  ;;  %v276_v33 = vld [vmem:[%s3947_s17 + $0x20] sm:$0xff] }
  0x21   : > { %3609 = vmatmul.msk.f32.vlgmr.msra.gmra.mxu0 %vm308_vm0, %v304_v4  ;;  %3615 = vmatmul.msk.f32.vlgmr.msra.gmra.mxu1 %vm308_vm0, %v356_v18  ;;  %v293_v32 = vld [vmem:[%s3947_s17 + $0xa8] sm:$0xff]  ;;  %v292_v34 = vld [vmem:[%s3947_s17 + $0xa0] sm:$0xff]  ;;  %v275_v36 = vld [vmem:[%s3947_s17 + $0x18] sm:$0xff] }
  0x22   : > { %3619 = vmatpush.xpose.msk.msrb.mxu0 %vm405_vm1, %v287_v1  ;;  %3639 = vmatpush.xpose.msk.msrb.mxu1 %vm405_vm1, %v303_v3  ;;  %v291_v37 = vld [vmem:[%s3947_s17 + $0x98] sm:$0xff]  ;;  %v274_v38 = vld [vmem:[%s3947_s17 + $0x10] sm:$0xff]  ;;  %v273_v40 = vld [vmem:[%s3947_s17 + $0x8] sm:$0xff] }
  0x23   : > { %3669 = vmatpush.xpose.msk.msra.mxu2 %vm405_vm1, %v285_v7  ;;  %3685 = vmatpush.xpose.msk.msra.mxu3 %vm405_vm1, %v301_v8  ;;  %v290_v39 = vld [vmem:[%s3947_s17 + $0x90] sm:$0xff]  ;;  %v289_v41 = vld [vmem:[%s3947_s17 + $0x88] sm:$0xff]  ;;  %v272_v42 = vld [vmem:[%s3947_s17] sm:$0xff] }
  0x24   : > { %v288_v43 = vld [vmem:[%s3947_s17 + $0x80] sm:$0xff] }
  0x26   : > { %3620 = vmatpush.xpose.msk.msrb.mxu0 %vm405_vm1, %v286_v5  ;;  %3640 = vmatpush.xpose.msk.msrb.mxu1 %vm405_vm1, %v302_v6 }
  0x27   : > { %3670 = vmatpush.xpose.msk.msra.mxu2 %vm405_vm1, %v284_v10  ;;  %3686 = vmatpush.xpose.msk.msra.mxu3 %vm405_vm1, %v300_v11 }
  0x29   : > { %3610 = vmatmul.msk.f32.gmra.mxu0 %vm308_vm0, %v305_v9  ;;  %3616 = vmatmul.msk.f32.gmra.mxu1 %vm308_vm0, %v357_v24 }
  0x2a   : > { %3621 = vmatpush.xpose.msk.msrb.mxu0 %vm405_vm1, %v285_v7  ;;  %3641 = vmatpush.xpose.msk.msrb.mxu1 %vm405_vm1, %v301_v8 }
  0x2b   : > { %3671 = vmatpush.xpose.msk.msra.mxu2 %vm405_vm1, %v283_v12  ;;  %3687 = vmatpush.xpose.msk.msra.mxu3 %vm405_vm1, %v299_v13 }
  0x2e   : > { %3622 = vmatpush.xpose.msk.msrb.mxu0 %vm405_vm1, %v284_v10  ;;  %3642 = vmatpush.xpose.msk.msrb.mxu1 %vm405_vm1, %v300_v11 }
  0x2f   : > { %3672 = vmatpush.xpose.msk.msra.mxu2 %vm405_vm1, %v282_v15  ;;  %3688 = vmatpush.xpose.msk.msra.mxu3 %vm405_vm1, %v298_v16 }
  0x31   : > { %3611 = vmatmul.msk.f32.gmra.mxu0 %vm308_vm0, %v306_v14  ;;  %3617 = vmatmul.msk.f32.gmra.mxu1 %vm308_vm0, %v358_v30 }
  0x32   : > { %3623 = vmatpush.xpose.msk.msrb.mxu0 %vm405_vm1, %v283_v12  ;;  %3643 = vmatpush.xpose.msk.msrb.mxu1 %vm405_vm1, %v299_v13 }
  0x33   : > { %3673 = vmatpush.xpose.msk.msra.mxu2 %vm405_vm1, %v281_v17  ;;  %3689 = vmatpush.xpose.msk.msra.mxu3 %vm405_vm1, %v297_v19 }
  0x36   : > { %3624 = vmatpush.xpose.msk.msrb.mxu0 %vm405_vm1, %v282_v15  ;;  %3644 = vmatpush.xpose.msk.msrb.mxu1 %vm405_vm1, %v298_v16 }
  0x37   : > { %3674 = vmatpush.xpose.msk.msra.mxu2 %vm405_vm1, %v280_v21  ;;  %3690 = vmatpush.xpose.msk.msra.mxu3 %vm405_vm1, %v296_v22 }
  0x39   : > { %3612 = vmatmul.msk.f32.gmra.mxu0 %vm308_vm0, %v307_v20  ;;  %3618 = vmatmul.msk.f32.gmra.mxu1 %vm308_vm0, %v359_v35 }
  0x3a   : > { %3625 = vmatpush.xpose.msk.msrb.mxu0 %vm405_vm1, %v281_v17  ;;  %3645 = vmatpush.xpose.msk.msrb.mxu1 %vm405_vm1, %v297_v19 }
  0x3b   : > { %3675 = vmatpush.xpose.msk.msra.mxu2 %vm405_vm1, %v279_v23  ;;  %3691 = vmatpush.xpose.msk.msra.mxu3 %vm405_vm1, %v295_v25 }
  0x3e   : > { %3626 = vmatpush.xpose.msk.msrb.mxu0 %vm405_vm1, %v280_v21  ;;  %3646 = vmatpush.xpose.msk.msrb.mxu1 %vm405_vm1, %v296_v22 }
  0x3f   : > { %3676 = vmatpush.xpose.msk.msra.mxu2 %vm405_vm1, %v278_v27  ;;  %3692 = vmatpush.xpose.msk.msra.mxu3 %vm405_vm1, %v294_v28 }
  0x42   : > { %3627 = vmatpush.xpose.msk.msrb.mxu0 %vm405_vm1, %v279_v23  ;;  %3647 = vmatpush.xpose.msk.msrb.mxu1 %vm405_vm1, %v295_v25 }
  0x43   : > { %3677 = vmatpush.xpose.msk.msra.mxu2 %vm405_vm1, %v277_v31  ;;  %3693 = vmatpush.xpose.msk.msra.mxu3 %vm405_vm1, %v293_v32 }
  0x46   : > { %3628 = vmatpush.xpose.msk.msrb.mxu0 %vm405_vm1, %v278_v27  ;;  %3648 = vmatpush.xpose.msk.msrb.mxu1 %vm405_vm1, %v294_v28 }
  0x47   : > { %3678 = vmatpush.xpose.msk.msra.mxu2 %vm405_vm1, %v276_v33  ;;  %3694 = vmatpush.xpose.msk.msra.mxu3 %vm405_vm1, %v292_v34 }
  0x4a   : > { %3629 = vmatpush.xpose.msk.msrb.mxu0 %vm405_vm1, %v277_v31  ;;  %3649 = vmatpush.xpose.msk.msrb.mxu1 %vm405_vm1, %v293_v32 }
  0x4b   : > { %3679 = vmatpush.xpose.msk.msra.mxu2 %vm405_vm1, %v275_v36  ;;  %3695 = vmatpush.xpose.msk.msra.mxu3 %vm405_vm1, %v291_v37 }
  0x4e   : > { %3630 = vmatpush.xpose.msk.msrb.mxu0 %vm405_vm1, %v276_v33  ;;  %3650 = vmatpush.xpose.msk.msrb.mxu1 %vm405_vm1, %v292_v34 }
  0x4f   : > { %3680 = vmatpush.xpose.msk.msra.mxu2 %vm405_vm1, %v274_v38  ;;  %3696 = vmatpush.xpose.msk.msra.mxu3 %vm405_vm1, %v290_v39 }
  0x52   : > { %3631 = vmatpush.xpose.msk.msrb.mxu0 %vm405_vm1, %v275_v36  ;;  %3651 = vmatpush.xpose.msk.msrb.mxu1 %vm405_vm1, %v291_v37 }
  0x53   : > { %3681 = vmatpush.xpose.msk.msra.mxu2 %vm405_vm1, %v273_v40  ;;  %3697 = vmatpush.xpose.msk.msra.mxu3 %vm405_vm1, %v289_v41 }
  0x56   : > { %3632 = vmatpush.xpose.msk.msrb.mxu0 %vm405_vm1, %v274_v38  ;;  %3652 = vmatpush.xpose.msk.msrb.mxu1 %vm405_vm1, %v290_v39 }
  0x57   : > { %3682 = vmatpush.xpose.msk.msra.mxu2 %vm405_vm1, %v272_v42  ;;  %3698 = vmatpush.xpose.msk.msra.mxu3 %vm405_vm1, %v288_v43 }
  0x5a   : > { %3633 = vmatpush.xpose.msk.msrb.mxu0 %vm405_vm1, %v273_v40  ;;  %3653 = vmatpush.xpose.msk.msrb.mxu1 %vm405_vm1, %v289_v41 }
  0x5b   : > { %3637 = vmatmul.msk.f32.vlgmr.msra.gmra.mxu2 %vm405_vm1, %v403_v44  ;;  %3656 = vmatmul.msk.f32.vlgmr.msra.gmra.mxu3 %vm405_vm1, %v402_v45 }
  0x5e   : > { %3634 = vmatpush.xpose.msk.msrb.mxu0 %vm405_vm1, %v272_v42  ;;  %3654 = vmatpush.xpose.msk.msrb.mxu1 %vm405_vm1, %v288_v43  ;;  %v3852_v43 = vmov 1983009808  }
  0x61   : > { %3635 = vmatmul.msk.f32.vlgmr.msrb.gmra.mxu0 %vm405_vm1, %v401_v46  ;;  %3655 = vmatmul.msk.f32.vlgmr.msrb.gmra.mxu1 %vm405_vm1, %v401_v46 }
  0x63   : > { %3657 = vmatmul.msk.f32.gmra.mxu3 %vm405_vm1, %v403_v44  ;;  %3638 = vmatmul.msk.f32.gmra.mxu2 %vm405_vm1, %v404_v47  ;;  %v754_v44 = vunpack.c.l.s4 %v3852_v43 }
  0x69   : > { %3636 = vmatmul.msk.f32.gmra.mxu0 %vm405_vm1, %v402_v45 }
  0x6b   : > { %3658 = vmatmul.msk.f32.gmra.mxu3 %vm405_vm1, %v404_v47 }
  0x9e   : > { %v4106_v48 = vpop.f32.mrf.mxu0  ;;  %v4127_v58 = vpop.f32.mrf.mxu1 }
  0x9f   : > { %v1684_v49 = vperm.slane %v4106_v48, 3  ;;  %v1658_v50 = vperm.slane %v4106_v48, 1  ;;  %v6484_v51 = vperm.slane %v4106_v48, 0  ;;  %v1671_v53 = vperm.slane %v4106_v48, 2  ;;  %6522 = vst [vmem:[#allocation6_spill] sm:$0xff] %v4127_v58 }
  0xa0   : > { %v1697_v56 = vperm.slane %v4106_v48, 4  ;;  %v1723_v59 = vperm.slane %v4106_v48, 6  ;;  %v6483_v60 = vperm.slane %v4106_v48, 5  ;;  %v1736_v63 = vperm.slane %v4106_v48, 7 }
  0xa1   : > { %1689 = vperm.xlu0 %3752, %v1684_v49   ;;  %1663 = vperm.xlu1 %3750, %v1658_v50   ;;  %v2134_v39 = vrot.slane %v4127_v58, 6  ;;  %v2131_v41 = vrot.slane %v4127_v58, 3 }
  0xa2   : > { %1650 = vperm.xlu2 %3749, %v6484_v51  }
  0xa3   : > { %v4315_v46 = vperm.slane %v2134_v39, 0  ;;  %v4328_v39 = vunpack.c.0.s8 %v754_v44 }
  0xa6   : > { %v4119_v54 = vpop.f32.mrf.mxu0  ;;  %v4135_v62 = vpop.f32.mrf.mxu1 }
  0xa7   : > { %v1749_v55 = vperm.slane %v4119_v54, 0  ;;  %6524 = vst [vmem:[#allocation8_spill] sm:$0xff] %v4135_v62  ;;  %v1762_v3 = vperm.slane %v4119_v54, 1  ;;  %v1788_v5 = vperm.slane %v4119_v54, 3  ;;  %v6482_v6 = vperm.slane %v4119_v54, 2 }
  0xa8   : > { %v6481_v40 = vperm.slane %v4119_v54, 5 }
  0xa9   : > { %1676 = vperm.xlu1 %3750, %v1671_v53   ;;  %1754 = vperm.xlu0 %3752, %v1749_v55  }
  0xaa   : > { %3751 = vset.pattern.permute.xlu2 %v4114_v52 }
  0xae   : > { %v4124_v57 = vpop.f32.mrf.mxu0  ;;  %v4143_v1 = vpop.f32.mrf.mxu1 }
  0xaf   : > { %6521 = vst [vmem:[#allocation5_spill] sm:$0xff] %v4124_v57  ;;  %v6539_v47 = vperm.slane %v4124_v57, 2 }
  0xb0   : > { %6525 = vst [vmem:[#allocation9_spill] sm:$0xff] %v4143_v1  ;;  %v3853_v1 = vmov 1934713408  }
  0xb1   : > { %3753 = vset.pattern.permute.xlu1 %v4114_v52 }
  0xb2   : > { %1669 = vperm.xlu2 %3751, %v1658_v50  }
  0xb6   : > { %v4131_v61 = vpop.f32.mrf.mxu0  ;;  %v4148_v2 = vpop.f32.mrf.mxu1 }
  0xb7   : > { %6523 = vst [vmem:[#allocation7_spill] sm:$0xff] %v4131_v61 }
  0xb8   : > { %6526 = vst [vmem:[#allocation10_spill] sm:$0xff] %v4148_v2 }
  0xb9   : > { %1695 = vperm.xlu1 %3753, %v1684_v49   ;;  %v2133_v49 = vrot.slane %v4127_v58, 5 }
  0xba   : > { %1682 = vperm.xlu2 %3751, %v1671_v53  }
  0xc1   : > { %1708 = vperm.xlu1 %3753, %v1697_v56  }
  0xc2   : > { %3754 = vset.pattern.permute.xlu2 %v4034_v29 }
  0xc9   : > { %3755 = vset.pattern.permute.xlu1 %v4034_v29 }
  0xca   : > { %1702 = vperm.xlu2 %3754, %v1697_v56   ;;  %v2129_v56 = vrot.slane %v4127_v58, 1 }
  0xcc   : > { %v4344_v51 = vperm.slane %v2129_v56, 0  ;;  %v2132_v56 = vrot.slane %v4127_v58, 4 }
  0xd1   : > { %1728 = vperm.xlu1 %3755, %v1723_v59  }
  0xd2   : > { %1715 = vperm.xlu2 %3754, %v6483_v60  }
  0xd9   : > { %1741 = vperm.xlu1 %3755, %v1736_v63  }
  0xda   : > { %3756 = vset.pattern.permute.xlu2 %v4114_v52 }
  0xde   : > { %v4139_v0 = vpop.f32.mrf.mxu0  ;;  %v4153_v4 = vpop.f32.mrf.mxu1 }
  0xdf   : > { %576 = vrot.lane.b32.xlu0 %v4139_v0, %s3845_s12  ;;  %v4163_v7 = vpop.f32.mrf.mxu2  ;;  %v4176_v8 = vpop.f32.mrf.mxu3 }
  0xe1   : > { %3757 = vset.pattern.permute.xlu1 %v4114_v52 }
  0xe2   : > { %1734 = vperm.xlu2 %3756, %v1723_v59  }
  0xe6   : > { %v4190_v10 = vpop.f32.mrf.mxu0 }
  0xe7   : > { %612 = vrot.lane.b32.xlu0 %v4139_v0, %s3846_s13  ;;  %6527 = vst [vmem:[#allocation11_spill] sm:$0xff] %v4190_v10  ;;  %v4220_v16 = vpop.f32.mrf.mxu2  ;;  %v4246_v23 = vpop.f32.mrf.mxu3 }
  0xe8   : > { %6528 = vst [vmem:[#allocation12_spill] sm:$0xff] %v4220_v16 }
  0xe9   : > { %1760 = vperm.xlu1 %3757, %v1749_v55   ;;  %6531 = vst [vmem:[#allocation15_spill] sm:$0xff] %v4246_v23  ;;  %v2138_v55 = vrot.slane %v4135_v62, 3 }
  0xea   : > { %1747 = vperm.xlu2 %3756, %v1736_v63   ;;  %v751_v63 = vrot.slane %v4139_v0, 4 }
  0xeb   : > { %v4341_v44 = vperm.slane %v2138_v55, 0 }
  0xed   : > { %6538 = vst [vmem:[#allocation22_spill] sm:$0xff] %v4341_v44 }
  0xef   : > { %648 = vrot.lane.b32.xlu0 %v4139_v0, %s3847_s14  ;;  %v4282_v33 = vpop.f32.mrf.mxu3 }
  0xf1   : > { %1773 = vperm.xlu1 %3757, %v1762_v3  }
  0xf2   : > { %3758 = vset.pattern.permute.xlu2 %v4034_v29 }
  0xf7   : > { %688 = vrot.lane.b32.xlu0 %v4153_v4, %s3848_s15 }
  0xf9   : > { %3759 = vset.pattern.permute.xlu1 %v4034_v29 }
  0xfa   : > { %1767 = vperm.xlu2 %3758, %v1762_v3   ;;  %v4325_v3 = vperm.slane %v2131_v41, 0 }
  0xfc   : > { %v4184_v9 = vpop.permute.xlu2 %1650 }
  0xff   : > { %724 = vrot.lane.b32.xlu0 %v4153_v4, %s3849_s16 }
 0x101   : > { %1793 = vperm.xlu1 %3759, %v1788_v5  }
 0x102   : > { %1780 = vperm.xlu2 %3758, %v6482_v6  }
 0x107   : > { %592 = vrot.lane.b32.xlu0 %v4163_v7, %s3850_s18 }
 0x109   : > { %624 = vrot.lane.b32.xlu1 %v4139_v0, %s3851_s19 }
 0x10a   : > { %3760 = vset.pattern.permute.xlu2 %v4114_v52 }
 0x10c   : > { %v4194_v11 = vpop.permute.xlu2 %1669 }
 0x10f   : > { %628 = vrot.lane.b32.xlu0 %v4163_v7, %s3851_s19 }
 0x111   : > { %664 = vrot.lane.b32.xlu1 %v4153_v4, %s3845_s12 }
 0x112   : > { %1799 = vperm.xlu2 %3760, %v1788_v5   ;;  %v2130_v5 = vrot.slane %v4127_v58, 2 }
 0x113   : > { %v4202_v12 = vpop.permute.xlu1 %1663  ;;  %v4224_v17 = vpop.permute.xlu0 %1689 }
 0x114   : > { %v4206_v13 = vpop.permute.xlu2 %1682  ;;  %v4350_v41 = vperm.slane %v2130_v5, 0 }
 0x117   : > { %678 = vrot.lane.b32.xlu0 %v4176_v8, %s3850_s18 }
 0x119   : > { %700 = vrot.lane.b32.xlu1 %v4153_v4, %s3846_s13 }
 0x11a   : > { %588 = vrot.lane.b32.xlu2 %v4139_v0, %s3850_s18 }
 0x11b   : > { %v4214_v14 = vpop.permute.xlu1 %1676  ;;  %v4238_v20 = vpop.permute.xlu0 %1754 }
 0x11c   : > { %6529 = vst [vmem:[#allocation13_spill] sm:$0xff] %v4238_v20  ;;  %v4373_v20 = vperm.slane %v2132_v56, 0 }
 0x11f   : > { %714 = vrot.lane.b32.xlu0 %v4176_v8, %s3851_s19 }
 0x121   : > { %736 = vrot.lane.b32.xlu1 %v4153_v4, %s3847_s14 }
 0x122   : > { %600 = vrot.lane.b32.xlu2 %v4139_v0, %s3848_s15 }
 0x124   : > { %v4216_v15 = vpop.permute.xlu2 %1702 }
 0x127   : > { %578 = vrot.lane.b32.xlu0 %v4190_v10, %s3845_s12 }
 0x129   : > { %580 = vrot.lane.b32.xlu1 %v4163_v7, %s3845_s12 }
 0x12a   : > { %636 = vrot.lane.b32.xlu2 %v4139_v0, %s3849_s16 }
 0x12b   : > { %v4228_v18 = vpop.permute.xlu1 %1695 }
 0x12c   : > { %v4230_v19 = vpop.permute.xlu2 %1715 }
 0x12f   : > { %602 = vrot.lane.b32.xlu0 %v4190_v10, %s3848_s15 }
 0x131   : > { %604 = vrot.lane.b32.xlu1 %v4163_v7, %s3848_s15 }
 0x132   : > { %676 = vrot.lane.b32.xlu2 %v4153_v4, %s3850_s18 }
 0x133   : > { %v4240_v21 = vpop.permute.xlu1 %1708 }
 0x137   : > { %638 = vrot.lane.b32.xlu0 %v4190_v10, %s3849_s16 }
 0x139   : > { %640 = vrot.lane.b32.xlu1 %v4163_v7, %s3849_s16 }
 0x13a   : > { %712 = vrot.lane.b32.xlu2 %v4153_v4, %s3851_s19 }
 0x13c   : > { %v4242_v22 = vpop.permute.xlu2 %1734 }
 0x13d   : > { %6530 = vst [vmem:[#allocation14_spill] sm:$0xff] %v4242_v22 }
 0x13f   : > { %618 = vrot.lane.b32.xlu0 %v4220_v16, %s3846_s13 }
 0x141   : > { %690 = vrot.lane.b32.xlu1 %v4176_v8, %s3848_s15 }
 0x142   : > { %616 = vrot.lane.b32.xlu2 %v4163_v7, %s3846_s13 }
 0x143   : > { %v4254_v25 = vpop.permute.xlu1 %1728 }
 0x144   : > { %v4258_v26 = vpop.permute.xlu2 %1747 }
 0x147   : > { %654 = vrot.lane.b32.xlu0 %v4220_v16, %s3847_s14 }
 0x149   : > { %726 = vrot.lane.b32.xlu1 %v4176_v8, %s3849_s16 }
 0x14a   : > { %652 = vrot.lane.b32.xlu2 %v4163_v7, %s3847_s14 }
 0x14b   : > { %v4266_v28 = vpop.permute.xlu1 %1741 }
 0x14f   : > { %668 = vrot.lane.b32.xlu0 %v4246_v23, %s3845_s12 }
 0x151   : > { %v4252_v24 = vpop.permute.xlu0 %576  ;;  %614 = vrot.lane.b32.xlu1 %v4190_v10, %s3846_s13 }
 0x152   : > { %666 = vrot.lane.b32.xlu2 %v4176_v8, %s3845_s12  ;;  %v763_v53 = vrot.slane %v4252_v24, 4 }
 0x154   : > { %v4270_v30 = vpop.permute.xlu2 %1767 }
 0x155   : > { %6532 = vst [vmem:[#allocation16_spill] sm:$0xff] %v4270_v30  ;;  %v2135_v30 = vrot.slane %v4127_v58, 7 }
 0x157   : > { %704 = vrot.lane.b32.xlu0 %v4246_v23, %s3846_s13 }
 0x159   : > { %v4264_v27 = vpop.permute.xlu0 %612  ;;  %650 = vrot.lane.b32.xlu1 %v4190_v10, %s3847_s14 }
 0x15a   : > { %702 = vrot.lane.b32.xlu2 %v4176_v8, %s3846_s13  ;;  %v775_v56 = vrot.slane %v4264_v27, 4 }
 0x15b   : > { %v4278_v32 = vpop.permute.xlu1 %1760 }
 0x15c   : > { %6533 = vst [vmem:[#allocation17_spill] sm:$0xff] %v4278_v32  ;;  %v4286_v34 = vpop.permute.xlu2 %1780 }
 0x15d   : > { %6534 = vst [vmem:[#allocation18_spill] sm:$0xff] %v4286_v34 }
 0x15f   : > { %740 = vrot.lane.b32.xlu0 %v4246_v23, %s3847_s14 }
 0x161   : > { %v4276_v31 = vpop.permute.xlu0 %648  ;;  %582 = vrot.lane.b32.xlu1 %v4220_v16, %s3845_s12 }
 0x162   : > { %738 = vrot.lane.b32.xlu2 %v4176_v8, %s3847_s14  ;;  %v785_v60 = vrot.slane %v4276_v31, 4 }
 0x163   : > { %v4296_v36 = vpop.permute.xlu1 %1773 }
 0x164   : > { %6535 = vst [vmem:[#allocation19_spill] sm:$0xff] %v4296_v36 }
 0x167   : > { %694 = vrot.lane.b32.xlu0 %v4282_v33, %s3848_s15 }
 0x169   : > { %v4290_v35 = vpop.permute.xlu0 %688  ;;  %594 = vrot.lane.b32.xlu1 %v4220_v16, %s3850_s18 }
 0x16a   : > { %590 = vrot.lane.b32.xlu2 %v4190_v10, %s3850_s18 }
 0x16c   : > { %v4298_v37 = vpop.permute.xlu2 %1799 }
 0x16d   : > { %6536 = vst [vmem:[#allocation20_spill] sm:$0xff] %v4298_v37 }
 0x16f   : > { %730 = vrot.lane.b32.xlu0 %v4282_v33, %s3849_s16 }
 0x171   : > { %v4302_v38 = vpop.permute.xlu0 %724  ;;  %630 = vrot.lane.b32.xlu1 %v4220_v16, %s3851_s19 }
 0x172   : > { %626 = vrot.lane.b32.xlu2 %v4190_v10, %s3851_s19 }
 0x173   : > { %v4311_v42 = vpop.permute.xlu1 %1793 }
 0x174   : > { %6537 = vst [vmem:[#allocation21_spill] sm:$0xff] %v4311_v42  ;;  %v589_v45 = vpop.permute.xlu2 %588 }
 0x175   : > { %v748_v59 = vrot.slane %v589_v45, 4  ;;  %v752_v6 = vsel %vm749_vm2, %v589_v45, %v751_v63 }
 0x176   : > { %v760_v43 = vperm.slane %v752_v6, %v4328_v39 }
 0x177   : > { %1819 = vperm.xlu0 %3752, %v6481_v40   ;;  %v750_v40 = vsel %vm749_vm2, %v748_v59, %v4139_v0  ;;  %v802_v0 = vunpack.c.l.s4 %v3853_v1 }
 0x178   : > { %v756_v5 = vperm.slane %v750_v40, %v4328_v39  ;;  %v811_v34 = vrot.slane %v760_v43, 4 }
 0x179   : > { %v4319_v50 = vpop.permute.xlu0 %592  ;;  %680 = vrot.lane.b32.xlu1 %v4246_v23, %s3850_s18  ;;  %v4378_v44 = vunpack.c.0.s8 %v802_v0 }
 0x17a   : > { %606 = vrot.lane.b32.xlu2 %v4220_v16, %s3848_s15  ;;  %v1197_v6 = vrot.slane %v4319_v50, 4 }
 0x17b   : > { %v625_v45 = vpop.permute.xlu1 %624 }
 0x17c   : > { %v787_v55 = vrot.slane %v625_v45, 4  ;;  %v601_v2 = vpop.permute.xlu2 %600  ;;  %v786_v40 = vsel %vm749_vm2, %v785_v60, %v625_v45 }
 0x17d   : > { %v761_v59 = vrot.slane %v601_v2, 4  ;;  %v764_v63 = vsel %vm749_vm2, %v601_v2, %v763_v53  ;;  %v792_v0 = vperm.slane %v786_v40, %v4328_v39 }
 0x17e   : > { %v772_v36 = vperm.slane %v764_v63, %v4328_v39  ;;  %v788_v1 = vsel %vm749_vm2, %v4276_v31, %v787_v55  ;;  %v799_v31 = vrot.slane %v756_v5, 4 }
 0x17f   : > { %1884 = vperm.xlu0 %3752, %v6539_v47   ;;  %v1199_v47 = vrot.slane %v4163_v7, 4  ;;  %v762_v2 = vsel %vm749_vm2, %v761_v59, %v4252_v24  ;;  %v4382_v24 = vperm.slane %v2133_v49, 0  ;;  %v796_v55 = vperm.slane %v788_v1, %v4328_v39 }
 0x180   : > { %v768_v63 = vperm.slane %v762_v2, %v4328_v39  ;;  %v809_v60 = vrot.slane %v772_v36, 4  ;;  %v812_v45 = vsel %vm749_vm2, %v772_v36, %v811_v34  ;;  %v885_v49 = vrot.slane %v4302_v38, 4 }
 0x181   : > { %v4361_v22 = vpop.permute.xlu0 %628  ;;  %v1200_v42 = vsel %vm749_vm2, %v4319_v50, %v1199_v47  ;;  %716 = vrot.lane.b32.xlu1 %v4246_v23, %s3851_s19  ;;  %6540 = vst [vmem:[#allocation23_spill] sm:$0xff] %v4382_v24  ;;  %v873_v50 = vrot.slane %v4290_v35, 4  ;;  %v4391_v47 = vperm.slane %v2135_v30, 0  ;;  %v6541_v36 = vperm.slane %v4124_v57, 7 }
 0x182   : > { %642 = vrot.lane.b32.xlu2 %v4220_v16, %s3849_s16  ;;  %v4395_v2 = vperm.slane %v1200_v42, %v4328_v39  ;;  %v800_v1 = vsel %vm749_vm2, %v768_v63, %v799_v31  ;;  %v1198_v16 = vsel %vm749_vm2, %v1197_v6, %v4163_v7  ;;  %v820_v40 = vperm.slane %v812_v45, %v4378_v44 }
 0x183   : > { %v665_v59 = vpop.permute.xlu1 %664  ;;  %v833_v32 = vrot.slane %v796_v55, 4  ;;  %v797_v10 = vrot.slane %v768_v63, 4  ;;  %v810_v42 = vsel %vm749_vm2, %v809_v60, %v760_v43  ;;  %v821_v57 = vrot.slane %v792_v0, 4 }
 0x184   : > { %v637_v34 = vpop.permute.xlu2 %636  ;;  %v874_v53 = vsel %vm749_vm2, %v873_v50, %v665_v59  ;;  %v875_v6 = vrot.slane %v665_v59, 4  ;;  %v4416_v43 = vperm.slane %v1198_v16, %v4328_v39  ;;  %v859_v60 = vrot.slane %v820_v40, 4 }
 0x185   : > { %v773_v30 = vrot.slane %v637_v34, 4  ;;  %v776_v37 = vsel %vm749_vm2, %v637_v34, %v775_v56 }
 0x186   : > { %v784_v31 = vperm.slane %v776_v37, %v4328_v39  ;;  %v816_v37 = vperm.slane %v810_v42, %v4378_v44 }
 0x187   : > { %1949 = vperm.xlu0 %3752, %v6541_v36   ;;  %v808_v36 = vperm.slane %v800_v1, %v4378_v44  ;;  %v774_v7 = vsel %vm749_vm2, %v773_v30, %v4264_v27  ;;  %v880_v1 = vperm.slane %v874_v53, %v4328_v39 }
 0x188   : > { %v780_v45 = vperm.slane %v774_v7, %v4328_v39  ;;  %v834_v56 = vsel %vm749_vm2, %v833_v32, %v784_v31  ;;  %v835_v63 = vrot.slane %v784_v31, 4  ;;  %v798_v32 = vsel %vm749_vm2, %v797_v10, %v756_v5 }
 0x189   : > { %v4407_v62 = vpop.permute.xlu0 %678  ;;  %v840_v34 = vperm.slane %v834_v56, %v4378_v44  ;;  %670 = vrot.lane.b32.xlu1 %v4282_v33, %s3845_s12  ;;  %v851_v16 = vrot.slane %v808_v36, 4  ;;  %v876_v7 = vsel %vm749_vm2, %v4290_v35, %v875_v6 }
 0x18a   : > { %v822_v50 = vsel %vm749_vm2, %v821_v57, %v780_v45  ;;  %v823_v27 = vrot.slane %v780_v45, 4  ;;  %v836_v59 = vsel %vm749_vm2, %v796_v55, %v835_v63  ;;  %692 = vrot.lane.b32.xlu2 %v4246_v23, %s3848_s15  ;;  %v6542_v63 = vperm.slane %v4131_v61, 4 }
 0x18b   : > { %v844_v30 = vperm.slane %v836_v59, %v4378_v44  ;;  %v853_v42 = vrot.slane %v840_v34, 4  ;;  %v701_v31 = vpop.permute.xlu1 %700  ;;  %v828_v45 = vperm.slane %v822_v50, %v4378_v44  ;;  %v804_v50 = vperm.slane %v798_v32, %v4378_v44 }
 0x18c   : > { %v824_v57 = vsel %vm749_vm2, %v792_v0, %v823_v27  ;;  %v887_v55 = vrot.slane %v701_v31, 4  ;;  %v677_v56 = vpop.permute.xlu2 %676  ;;  %v886_v0 = vsel %vm749_vm2, %v885_v49, %v701_v31  ;;  %v855_v27 = vrot.slane %v816_v37, 4 }
 0x18d   : > { %v832_v10 = vperm.slane %v824_v57, %v4378_v44  ;;  %v4437_v5 = vsel %vm749_vm2, %v853_v42, %v816_v37  ;;  %v857_v53 = vrot.slane %v844_v30, 4  ;;  %v4440_v59 = vsel %vm749_vm2, %v844_v30, %v859_v60 }
 0x18e   : > { %v909_v60 = vrot.slane %v880_v1, 4  ;;  %v1085_v35 = vrot.slane %v4407_v62, 4  ;;  %v861_v49 = vrot.slane %v677_v56, 4  ;;  %v888_v31 = vsel %vm749_vm2, %v4302_v38, %v887_v55 }
 0x18f   : > { %2014 = vperm.xlu0 %3752, %v6542_v63   ;;  %v4448_v63 = vperm.slane %v876_v7, %v4328_v39  ;;  %v849_v57 = vrot.slane %v832_v10, 4  ;;  %v852_v42 = vsel %vm749_vm2, %v832_v10, %v851_v16  ;;  %v4452_v61 = vsel %vm749_vm2, %v857_v53, %v820_v40 }
 0x190   : > { %v2067_v30 = vadd.f32 %v4224_v17, %v852_v42  ;;  %v892_v37 = vperm.slane %v886_v0, %v4328_v39  ;;  %v6544_v32 = vrot.slane %v4153_v4, 4  ;;  %v845_v40 = vrot.slane %v828_v45, 4 }
 0x191   : > { %v4444_v6 = vpop.permute.xlu0 %714  ;;  %706 = vrot.lane.b32.xlu1 %v4282_v33, %s3846_s13  ;;  %v862_v16 = vsel %vm749_vm2, %v861_v49, %v4153_v4  ;;  %v847_v55 = vrot.slane %v804_v50, 4  ;;  %v850_v0 = vsel %vm749_vm2, %v849_v57, %v808_v36  ;;  %v4478_v42 = vsel %vm749_vm2, %v840_v34, %v855_v27 }
 0x192   : > { %6543 = vst [vmem:[#allocation24_spill] sm:$0xff] %v4444_v6  ;;  %v864_v7 = vsel %vm749_vm2, %v677_v56, %v6544_v32  ;;  %728 = vrot.lane.b32.xlu2 %v4246_v23, %s3849_s16  ;;  %v4472_v38 = vadd.f32 %v4325_v3, %v2067_v30  ;;  %v868_v10 = vperm.slane %v862_v16, %v4328_v39  ;;  %v6546_v4 = vrot.slane %v4176_v8, 4 }
 0x193   : > { %v4467_v17 = vperm.slane %v864_v7, %v4328_v39  ;;  %v737_v56 = vpop.permute.xlu1 %736  ;;  %v846_v53 = vsel %vm749_vm2, %v845_v40, %v804_v50  ;;  %v4485_v32 = vperm.slane %v888_v31, %v4328_v39  ;;  %v848_v16 = vsel %vm749_vm2, %v828_v45, %v847_v55 }
 0x194   : > { %6545 = vst [vmem:[#allocation25_spill] sm:$0xff] %v4472_v38  ;;  %v1088_v49 = vsel %vm749_vm2, %v4407_v62, %v6546_v4  ;;  %v897_v30 = vrot.slane %v737_v56, 4  ;;  %v713_v7 = vpop.permute.xlu2 %712  ;;  %v911_v50 = vrot.slane %v868_v10, 4  ;;  %v910_v34 = vsel %vm749_vm2, %v909_v60, %v868_v10 }
 0x195   : > { %v923_v36 = vrot.slane %v4467_v17, 4  ;;  %v899_v57 = vrot.slane %v713_v7, 4  ;;  %v935_v27 = vrot.slane %v892_v37, 4  ;;  %v2061_v62 = vadd.f32 %v4184_v9, %v846_v53 }
 0x196   : > { %v898_v40 = vsel %vm749_vm2, %v897_v30, %v713_v7  ;;  %v2063_v31 = vadd.f32 %v4202_v12, %v848_v16  ;;  %v912_v4 = vsel %vm749_vm2, %v880_v1, %v911_v50  ;;  %v2065_v55 = vadd.f32 %v4214_v14, %v850_v0 }
 0x197   : > { %3773 = vset.pattern.permute.xlu0 %v4114_v52  ;;  %v900_v38 = vsel %vm749_vm2, %v737_v56, %v899_v57  ;;  %v904_v45 = vperm.slane %v898_v40, %v4328_v39  ;;  %v947_v6 = vrot.slane %v4485_v32, 4  ;;  %v920_v60 = vperm.slane %v912_v4, %v4378_v44 }
 0x198   : > { %v908_v10 = vperm.slane %v900_v38, %v4328_v39  ;;  %v916_v30 = vperm.slane %v910_v34, %v4378_v44  ;;  %v1086_v9 = vsel %vm749_vm2, %v1085_v35, %v4176_v8  ;;  %v924_v12 = vsel %vm749_vm2, %v4448_v63, %v923_v36 }
 0x199   : > { %v4492_v23 = vpop.permute.xlu0 %578  ;;  %v933_v1 = vrot.slane %v904_v45, 4  ;;  %v936_v56 = vsel %vm749_vm2, %v904_v45, %v935_v27  ;;  %742 = vrot.lane.b32.xlu1 %v4282_v33, %s3847_s14  ;;  %v963_v14 = vrot.slane %v920_v60, 4  ;;  %v6547_v38 = vperm.slane %v4127_v58, 0 }
 0x19a   : > { %v944_v53 = vperm.slane %v936_v56, %v4378_v44  ;;  %v948_v0 = vsel %vm749_vm2, %v908_v10, %v947_v6  ;;  %682 = vrot.lane.b32.xlu2 %v4282_v33, %s3850_s18  ;;  %v4520_v50 = vadd.f32 %v4344_v51, %v2063_v31  ;;  %v2225_v36 = vadd.f32 %v4350_v41, %v2065_v55 }
 0x19b   : > { %v2221_v8 = vadd.f32 %v6547_v38, %v2061_v62  ;;  %v956_v35 = vperm.slane %v948_v0, %v4378_v44  ;;  %v581_v7 = vpop.permute.xlu1 %580  ;;  %v934_v16 = vsel %vm749_vm2, %v933_v1, %v892_v37  ;;  %v6548_v27 = vperm.slane %v4106_v48, 0 }
 0x19c   : > { %v961_v57 = vrot.slane %v944_v53, 4  ;;  %v964_v34 = vsel %vm749_vm2, %v944_v53, %v963_v14  ;;  %v4524_v6 = vpop.permute.xlu2 %616  ;;  %v940_v40 = vperm.slane %v934_v16, %v4378_v44  ;;  %v959_v62 = vrot.slane %v916_v30, 4 }
 0x19d   : > { %v932_v4 = vperm.slane %v924_v12, %v4378_v44  ;;  %v969_v45 = vrot.slane %v956_v35, 4  ;;  %v2068_v37 = vadd.f32 %v4228_v18, %v964_v34  ;;  %v2285_v31 = vrot.slane %v2225_v36, 4 }
 0x19e   : > { %v957_v55 = vrot.slane %v940_v40, 4  ;;  %v960_v56 = vsel %vm749_vm2, %v940_v40, %v959_v62  ;;  %v962_v14 = vsel %vm749_vm2, %v961_v57, %v920_v60  ;;  %v2287_v53 = vrot.slane %v2221_v8, 4 }
 0x19f   : > { %1656 = vperm.xlu0 %3773, %v6548_v27   ;;  %v921_v0 = vrot.slane %v4448_v63, 4  ;;  %v945_v38 = vrot.slane %v908_v10, 4  ;;  %v4537_v16 = vsel %vm749_vm2, %v969_v45, %v932_v4  ;;  %v4540_v12 = vadd.f32 %v4325_v3, %v2068_v37 }
 0x1a0   : > { %v4543_v18 = vperm.slane %v1086_v9, %v4328_v39  ;;  %v4546_v34 = vperm.slane %v1088_v49, %v4328_v39  ;;  %v4549_v27 = vsel %vm749_vm2, %v957_v55, %v916_v30  ;;  %v2064_v60 = vadd.f32 %v4194_v11, %v960_v56 }
 0x1a1   : > { %v4531_v1 = vpop.permute.xlu0 %602  ;;  %6549 = vst [vmem:[#allocation26_spill] sm:$0xff] %v4549_v27  ;;  %v971_v57 = vrot.slane %v932_v4, 4  ;;  %v6550_v63 = vperm.slane %v4119_v54, 4  ;;  %v2066_v10 = vadd.f32 %v4206_v13, %v962_v14  ;;  %v4556_v3 = vsel %vm749_vm2, %v2285_v31, %v2221_v8 }
 0x1a2   : > { %v4559_v9 = vsel %vm749_vm2, %v2225_v36, %v2287_v53  ;;  %v1247_v49 = vrot.slane %v4416_v43, 4  ;;  %v1235_v40 = vrot.slane %v4361_v22, 4  ;;  %v1211_v30 = vrot.slane %v581_v7, 4  ;;  %718 = vrot.lane.b32.xlu2 %v4282_v33, %s3851_s19 }
 0x1a3   : > { %1806 = vperm.xlu1 %3759, %v6550_v63   ;;  %v4566_v11 = vadd.f32 %v4344_v51, %v2064_v60  ;;  %v605_v62 = vpop.permute.xlu1 %604  ;;  %v4569_v13 = vadd.f32 %v4350_v41, %v2066_v10  ;;  %v922_v8 = vsel %vm749_vm2, %v921_v0, %v4467_v17  ;;  %v946_v36 = vsel %vm749_vm2, %v945_v38, %v4485_v32 }
 0x1a4   : > { %v972_v4 = vsel %vm749_vm2, %v956_v35, %v971_v57  ;;  %v1135_v45 = vrot.slane %v4543_v18, 4  ;;  %v1147_v37 = vrot.slane %v4546_v34, 4  ;;  %v1209_v31 = vrot.slane %v605_v62, 4  ;;  %v653_v55 = vpop.permute.xlu2 %652 }
 0x1a5   : > { %6551 = vst [vmem:[#allocation27_spill] sm:$0xff] %v4569_v13  ;;  %v1212_v51 = vsel %vm749_vm2, %v605_v62, %v1211_v30  ;;  %v6552_v56 = vperm.slane %v4106_v48, 5  ;;  %v987_v41 = vrot.slane %v4492_v23, 4  ;;  %v1233_v14 = vrot.slane %v653_v55, 4 }
 0x1a6   : > { %v4583_v17 = vperm.slane %v1212_v51, %v4328_v39  ;;  %v1236_v32 = vsel %vm749_vm2, %v653_v55, %v1235_v40  ;;  %v4588_v35 = vadd.f32 %v4216_v15, %v4437_v5  ;;  %v1210_v53 = vsel %vm749_vm2, %v1209_v31, %v581_v7 }
 0x1a7   : > { %1721 = vperm.xlu0 %3773, %v6552_v56   ;;  %v928_v38 = vperm.slane %v922_v8, %v4378_v44  ;;  %v952_v48 = vperm.slane %v946_v36, %v4378_v44  ;;  %v4597_v60 = vadd.f32 %v4254_v25, %v4452_v61  ;;  %v2075_v57 = vadd.f32 %v4266_v28, %v4440_v59 }
 0x1a8   : > { %v1216_v63 = vperm.slane %v1210_v53, %v4328_v39  ;;  %v1234_v15 = vsel %vm749_vm2, %v1233_v14, %v4361_v22  ;;  %v1223_v5 = vrot.slane %v4524_v6, 4  ;;  %v985_v7 = vrot.slane %v4531_v1, 4 }
 0x1a9   : > { %v4591_v0 = vpop.permute.xlu0 %638  ;;  %v6553_v10 = vrot.slane %v4395_v2, 4  ;;  %v965_v30 = vrot.slane %v952_v48, 4  ;;  %v4612_v61 = vsel %vm749_vm2, %v4531_v1, %v987_v41  ;;  %v1240_v25 = vperm.slane %v1234_v15, %v4328_v39 }
 0x1aa   : > { %v1244_v28 = vperm.slane %v1236_v32, %v4328_v39  ;;  %v967_v22 = vrot.slane %v928_v38, 4  ;;  %v1245_v59 = vrot.slane %v1216_v63, 4  ;;  %v6554_v62 = vperm.slane %v4119_v54, 4 }
 0x1ab   : > { %v1260_v40 = vsel %vm749_vm2, %v4583_v17, %v6553_v10  ;;  %3761 = vset.pattern.permute.xlu1 %v4114_v52  ;;  %v1248_v8 = vsel %vm749_vm2, %v1216_v63, %v1247_v49  ;;  %v966_v36 = vsel %vm749_vm2, %v965_v30, %v928_v38  ;;  %v2071_v31 = vadd.f32 %v4230_v19, %v4478_v42  ;;  %v641_v51 = vpop.permute.xlu1 %640 }
 0x1ac   : > { %1812 = vperm.xlu2 %3760, %v6554_v62   ;;  %v4624_v55 = vperm.slane %v1260_v40, %v4378_v44  ;;  %v4627_v56 = vsel %vm749_vm2, %v952_v48, %v967_v22  ;;  %v2070_v41 = vadd.f32 %v4240_v21, %v966_v36  ;;  %v2076_v14 = vadd.f32 %v4258_v26, %v972_v4  ;;  %v667_v49 = vpop.permute.xlu2 %666 }
 0x1ad   : > { %6555 = vst [vmem:[#allocation28_spill] sm:$0xff] %v4627_v56  ;;  %v1221_v32 = vrot.slane %v641_v51, 4  ;;  %v1224_v53 = vsel %vm749_vm2, %v641_v51, %v1223_v5  ;;  %v6556_v38 = vperm.slane %v4119_v54, 2  ;;  %v2231_v19 = vadd.f32 %v4382_v24, %v2071_v31 }
 0x1ae   : > { %v2235_v42 = vadd.f32 %v4391_v47, %v2075_v57  ;;  %v1232_v63 = vperm.slane %v1224_v53, %v4328_v39  ;;  %v1256_v48 = vperm.slane %v1248_v8, %v4378_v44  ;;  %v4639_v15 = vadd.f32 %v4373_v20, %v2070_v41 }
 0x1af   : > { %1786 = vperm.xlu0 %3773, %v6556_v38   ;;  %v4642_v21 = vadd.f32 %v4391_v47, %v2076_v14  ;;  %v1222_v26 = vsel %vm749_vm2, %v1221_v32, %v4524_v6  ;;  %v2323_v10 = vrot.slane %v2231_v19, 4  ;;  %v1246_v57 = vsel %vm749_vm2, %v1245_v59, %v4416_v43 }
 0x1b0   : > { %6557 = vst [vmem:[#allocation29_spill] sm:$0xff] %v4639_v15  ;;  %v2321_v5 = vrot.slane %v2235_v42, 4  ;;  %v1257_v40 = vrot.slane %v4583_v17, 4  ;;  %v1269_v30 = vrot.slane %v1240_v25, 4  ;;  %v1228_v22 = vperm.slane %v1222_v26, %v4328_v39 }
 0x1b1   : > { %6558 = vst [vmem:[#allocation30_spill] sm:$0xff] %v4642_v21  ;;  %v4646_v4 = vpop.permute.xlu0 %618  ;;  %v1283_v62 = vrot.slane %v1232_v63, 4  ;;  %v1281_v8 = vrot.slane %v1244_v28, 4  ;;  %v4656_v36 = vsel %vm749_vm2, %v2235_v42, %v2323_v10  ;;  %v1252_v6 = vperm.slane %v1246_v57, %v4378_v44 }
 0x1b2   : > { %v4653_v47 = vsel %vm749_vm2, %v2321_v5, %v2231_v19  ;;  %v1271_v31 = vrot.slane %v1228_v22, 4  ;;  %v6559_v51 = vperm.slane %v4119_v54, 5  ;;  %v1307_v17 = vrot.slane %v4624_v55, 4 }
 0x1b3   : > { %v1284_v43 = vsel %vm749_vm2, %v1244_v28, %v1283_v62  ;;  %v1270_v59 = vsel %vm749_vm2, %v1269_v30, %v1228_v22  ;;  %v1099_v41 = vrot.slane %v667_v49, 4  ;;  %v1299_v53 = vrot.slane %v1256_v48, 4  ;;  %v691_v38 = vpop.permute.xlu1 %690 }
 0x1b4   : > { %1825 = vperm.xlu1 %3761, %v6559_v51   ;;  %3762 = vset.pattern.permute.xlu2 %v4034_v29  ;;  %v4666_v14 = vperm.slane %v1284_v43, %v4378_v44  ;;  %v1276_v32 = vperm.slane %v1270_v59, %v4378_v44  ;;  %v1272_v19 = vsel %vm749_vm2, %v1240_v25, %v1271_v31  ;;  %v1295_v42 = vrot.slane %v1252_v6, 4  ;;  %v703_v57 = vpop.permute.xlu2 %702 }
 0x1b5   : > { %v1282_v26 = vsel %vm749_vm2, %v1281_v8, %v1232_v63  ;;  %v4673_v28 = vadd.f32 %v4373_v20, %v4588_v35  ;;  %v1097_v5 = vrot.slane %v691_v38, 4  ;;  %v1100_v10 = vsel %vm749_vm2, %v691_v38, %v1099_v41 }
 0x1b6   : > { %v6560_v30 = vperm.slane %v4119_v54, 7  ;;  %v1280_v22 = vperm.slane %v1272_v19, %v4378_v44  ;;  %v4681_v62 = vsel %vm749_vm2, %v4666_v14, %v1307_v17  ;;  %v1108_v25 = vperm.slane %v1100_v10, %v4328_v39  ;;  %v6570_v10 = vld [vmem:[#allocation24_spill] sm:$0xff] }
 0x1b7   : > { %6561 = vst [vmem:[#allocation31_spill] sm:$0xff] %v4681_v62  ;;  %v1293_v63 = vrot.slane %v1276_v32, 4  ;;  %v4685_v8 = vsel %vm749_vm2, %v1276_v32, %v1295_v42  ;;  %v1258_v20 = vsel %vm749_vm2, %v1257_v40, %v4395_v2  ;;  %v1098_v35 = vsel %vm749_vm2, %v1097_v5, %v667_v49 }
 0x1b8   : > { %1851 = vperm.xlu0 %3773, %v6560_v30   ;;  %6562 = vst [vmem:[#allocation32_spill] sm:$0xff] %v4685_v8  ;;  %v1297_v51 = vrot.slane %v1280_v22, 4  ;;  %v4693_v43 = vsel %vm749_vm2, %v1280_v22, %v1299_v53  ;;  %v4696_v17 = vperm.slane %v1282_v26, %v4378_v44  ;;  %v986_v59 = vsel %vm749_vm2, %v985_v7, %v4492_v23  ;;  %v6568_v26 = vld [vmem:[#allocation8_spill] sm:$0xff]  ;;  %v6571_v22 = vld [vmem:[#allocation11_spill] sm:$0xff] }
 0x1b9   : > { %v4690_v31 = vpop.permute.xlu0 %654  ;;  %6563 = vst [vmem:[#allocation33_spill] sm:$0xff] %v4693_v43  ;;  %v1104_v41 = vperm.slane %v1098_v35, %v4328_v39  ;;  %v1145_v32 = vrot.slane %v1108_v25, 4  ;;  %v1148_v2 = vsel %vm749_vm2, %v1108_v25, %v1147_v37  ;;  %v4710_v40 = vsel %vm749_vm2, %v1293_v63, %v1252_v6 }
 0x1ba   : > { %v4707_v49 = vsel %vm749_vm2, %v1297_v51, %v1256_v48  ;;  %6565 = vst [vmem:[#allocation35_spill] sm:$0xff] %v4710_v40  ;;  %v4713_v53 = vperm.slane %v1258_v20, %v4378_v44  ;;  %v1301_v1 = vrot.slane %v4696_v17, 4  ;;  %v6566_v23 = vperm.slane %v4119_v54, 6 }
 0x1bb   : > { %6564 = vst [vmem:[#allocation34_spill] sm:$0xff] %v4707_v49  ;;  %v1133_v38 = vrot.slane %v1104_v41, 4  ;;  %v1146_v7 = vsel %vm749_vm2, %v1145_v32, %v4546_v34  ;;  %v1136_v37 = vsel %vm749_vm2, %v1104_v41, %v1135_v45  ;;  %v4725_v48 = vadd.f32 %v4315_v46, %v4597_v60  ;;  %v727_v30 = vpop.permute.xlu1 %726  ;;  %v6573_v32 = vld [vmem:[#allocation5_spill] sm:$0xff] }
 0x1bc   : > { %1838 = vperm.xlu1 %3761, %v6566_v23   ;;  %v4729_v6 = vperm.slane %v4612_v61, %v4328_v39  ;;  %v1111_v19 = vrot.slane %v703_v57, 4  ;;  %v6567_v42 = vmov %v6566_v23  ;;  %v4736_v34 = vsel %vm749_vm2, %v1301_v1, %v4713_v53  ;;  %v6572_v61 = vld [vmem:[#allocation25_spill] sm:$0xff]  ;;  %v739_v41 = vpop.permute.xlu2 %738 }
 0x1bd   : > { %1832 = vperm.xlu2 %3762, %v6567_v42   ;;  %6569 = vst [vmem:[#allocation8_spill] sm:$0xff] %v4736_v34  ;;  %v1123_v45 = vrot.slane %v6570_v10, 4  ;;  %v1134_v60 = vsel %vm749_vm2, %v1133_v38, %v4543_v18  ;;  %v975_v25 = vrot.slane %v6571_v22, 4  ;;  %v2297_v63 = vrot.slane %v6572_v61, 4 }
 0x1be   : > { %v4744_v20 = vperm.slane %v986_v59, %v4328_v39  ;;  %v1109_v35 = vrot.slane %v727_v30, 4  ;;  %v1112_v51 = vsel %vm749_vm2, %v727_v30, %v1111_v19  ;;  %v6574_v1 = vperm.slane %v6573_v32, 4 }
 0x1bf   : > { %v2309_v23 = vrot.slane %v4725_v48, 4  ;;  %v1120_v42 = vperm.slane %v1112_v51, %v4328_v39  ;;  %v1121_v18 = vrot.slane %v739_v41, 4  ;;  %v1124_v38 = vsel %vm749_vm2, %v739_v41, %v1123_v45 }
 0x1c0   : > { %1916 = vperm.xlu0 %3773, %v6574_v1   ;;  %v4754_v5 = vperm.slane %v4653_v47, %v4328_v39  ;;  %v1033_v59 = vrot.slane %v4729_v6, 4  ;;  %v1110_v34 = vsel %vm749_vm2, %v1109_v35, %v703_v57  ;;  %v1132_v19 = vperm.slane %v1124_v38, %v4328_v39 }
 0x1c1   : > { %v4759_v30 = vpop.permute.xlu0 %668  ;;  %v2298_v1 = vsel %vm749_vm2, %v2297_v63, %v4520_v50  ;;  %v1116_v51 = vperm.slane %v1110_v34, %v4328_v39  ;;  %v1171_v62 = vrot.slane %v1120_v42, 4  ;;  %v1122_v45 = vsel %vm749_vm2, %v1121_v18, %v6570_v10 }
 0x1c2   : > { %v4768_v47 = vperm.slane %v4556_v3, %v4328_v39  ;;  %v1140_v41 = vperm.slane %v1134_v60, %v4378_v44  ;;  %v1128_v57 = vperm.slane %v1122_v45, %v4328_v39  ;;  %v1169_v35 = vrot.slane %v1132_v19, 4 }
 0x1c3   : > { %v2310_v38 = vsel %vm749_vm2, %v2309_v23, %v4673_v28  ;;  %v1159_v40 = vrot.slane %v1116_v51, 4  ;;  %v1172_v34 = vsel %vm749_vm2, %v1132_v19, %v1171_v62  ;;  %v2357_v10 = vrot.slane %v4754_v5, 4  ;;  %v615_v49 = vpop.permute.xlu1 %614 }
 0x1c4   : > { %3763 = vset.pattern.permute.xlu1 %v4034_v29  ;;  %v4777_v63 = vperm.slane %v2310_v38, %v4328_v39  ;;  %v997_v3 = vrot.slane %v4591_v0, 4  ;;  %v1157_v18 = vrot.slane %v1128_v57, 4  ;;  %v6575_v60 = vperm.slane %v4119_v54, 7 }
 0x1c5   : > { %v1170_v45 = vsel %vm749_vm2, %v1169_v35, %v1120_v42  ;;  %v4785_v23 = vperm.slane %v1148_v2, %v4378_v44  ;;  %v1144_v62 = vperm.slane %v1136_v37, %v4378_v44  ;;  %v1160_v19 = vsel %vm749_vm2, %v1128_v57, %v1159_v40  ;;  %v6576_v42 = vld [vmem:[#allocation7_spill] sm:$0xff] }
 0x1c6   : > { %1845 = vperm.xlu2 %3762, %v6575_v60   ;;  %v4788_v43 = vperm.slane %v1170_v45, %v4378_v44  ;;  %v4794_v38 = vsel %vm749_vm2, %v2357_v10, %v4777_v63  ;;  %v1183_v8 = vrot.slane %v1140_v41, 4  ;;  %v1158_v54 = vsel %vm749_vm2, %v1157_v18, %v1116_v51  ;;  %v591_v60 = vpop.permute.xlu2 %590 }
 0x1c7   : > { %v6577_v35 = vperm.slane %v6576_v42, 1  ;;  %v1152_v2 = vperm.slane %v1146_v7, %v4378_v44  ;;  %v1168_v45 = vperm.slane %v1160_v19, %v4378_v44  ;;  %v1164_v24 = vperm.slane %v1158_v54, %v4378_v44 }
 0x1c8   : > { %v999_v37 = vrot.slane %v615_v49, 4  ;;  %v973_v21 = vrot.slane %v591_v60, 4  ;;  %v976_v40 = vsel %vm749_vm2, %v591_v60, %v975_v25  ;;  %v1021_v57 = vrot.slane %v4744_v20, 4 }
 0x1c9   : > { %1981 = vperm.xlu0 %3773, %v6577_v35   ;;  %v984_v10 = vperm.slane %v976_v40, %v4328_v39  ;;  %v4805_v56 = vpop.permute.xlu0 %704  ;;  %v1189_v51 = vrot.slane %v4788_v43, 4  ;;  %v1185_v18 = vrot.slane %v1168_v45, 4  ;;  %v1181_v35 = vrot.slane %v1164_v24, 4 }
 0x1ca   : > { %v4809_v7 = vsel %vm749_vm2, %v1164_v24, %v1183_v8  ;;  %v1187_v19 = vrot.slane %v1144_v62, 4  ;;  %v1195_v54 = vrot.slane %v4785_v23, 4  ;;  %v998_v58 = vsel %vm749_vm2, %v997_v3, %v615_v49 }
 0x1cb   : > { %6578 = vst [vmem:[#allocation24_spill] sm:$0xff] %v4809_v7  ;;  %v974_v25 = vsel %vm749_vm2, %v973_v21, %v6571_v22  ;;  %v1034_v60 = vsel %vm749_vm2, %v1033_v59, %v984_v10  ;;  %v1035_v40 = vrot.slane %v984_v10, 4  ;;  %v1000_v27 = vsel %vm749_vm2, %v4591_v0, %v999_v37 }
 0x1cc   : > { %v980_v15 = vperm.slane %v974_v25, %v4328_v39  ;;  %v6579_v13 = vperm.slane %v6573_v32, 0  ;;  %v1191_v24 = vrot.slane %v1152_v2, 4  ;;  %v4822_v8 = vperm.slane %v2298_v1, %v4328_v39  ;;  %v651_v1 = vpop.permute.xlu1 %650 }
 0x1cd   : > { %v4826_v49 = vsel %vm749_vm2, %v1189_v51, %v1152_v2  ;;  %v1036_v21 = vsel %vm749_vm2, %v4729_v6, %v1035_v40  ;;  %v1182_v22 = vsel %vm749_vm2, %v1181_v35, %v1140_v41  ;;  %v4832_v0 = vsel %vm749_vm2, %v1185_v18, %v1144_v62  ;;  %v6582_v62 = vld [vmem:[#allocation17_spill] sm:$0xff] }
 0x1ce   : > { %1858 = vperm.xlu1 %3763, %v6579_v13   ;;  %3764 = vset.pattern.permute.xlu2 %v4114_v52  ;;  %6580 = vst [vmem:[#allocation11_spill] sm:$0xff] %v4832_v0  ;;  %v1004_v59 = vperm.slane %v998_v58, %v4328_v39  ;;  %v1022_v13 = vsel %vm749_vm2, %v1021_v57, %v980_v15  ;;  %v1023_v3 = vrot.slane %v980_v15, 4  ;;  %v1009_v10 = vrot.slane %v651_v1, 4  ;;  %v627_v51 = vpop.permute.xlu2 %626 }
 0x1cf   : > { %v4837_v37 = vperm.slane %v1172_v34, %v4378_v44  ;;  %v1008_v2 = vperm.slane %v1000_v27, %v4328_v39  ;;  %v6581_v6 = vperm.slane %v6576_v42, 6  ;;  %v1188_v41 = vsel %vm749_vm2, %v1168_v45, %v1187_v19  ;;  %v6583_v34 = vld [vmem:[#allocation20_spill] sm:$0xff] }
 0x1d0   : > { %v2078_v18 = vadd.f32 %v6582_v62, %v1182_v22  ;;  %v1024_v58 = vsel %vm749_vm2, %v4744_v20, %v1023_v3  ;;  %v1011_v57 = vrot.slane %v627_v51, 4  ;;  %v4847_v15 = vperm.slane %v1034_v60, %v4378_v44 }
 0x1d1   : > { %2046 = vperm.xlu0 %3773, %v6581_v6   ;;  %v2084_v35 = vadd.f32 %v6583_v34, %v1188_v41  ;;  %v4851_v27 = vperm.slane %v1024_v58, %v4378_v44  ;;  %v1010_v25 = vsel %vm749_vm2, %v1009_v10, %v627_v51  ;;  %v4854_v40 = vpop.permute.xlu0 %740  ;;  %v6584_v45 = vperm.slane %v6568_v26, 0  ;;  %v6586_v6 = vld [vmem:[#allocation22_spill] sm:$0xff] }
 0x1d2   : > { %v2333_v22 = vrot.slane %v4822_v8, 4  ;;  %v1047_v20 = vrot.slane %v1004_v59, 4  ;;  %v1012_v3 = vsel %vm749_vm2, %v651_v1, %v1011_v57  ;;  %v1016_v60 = vperm.slane %v1010_v25, %v4328_v39 }
 0x1d3   : > { %v4858_v19 = vadd.f32 %v6584_v45, %v2078_v18  ;;  %v4864_v41 = vadd.f32 %v6586_v6, %v2084_v35  ;;  %v1059_v62 = vrot.slane %v1008_v2, 4  ;;  %v1028_v58 = vperm.slane %v1022_v13, %v4378_v44 }
 0x1d4   : > { %v1020_v10 = vperm.slane %v1012_v3, %v4328_v39  ;;  %v4870_v51 = vsel %vm749_vm2, %v4788_v43, %v1191_v24  ;;  %v1045_v18 = vrot.slane %v1016_v60, 4  ;;  %v1048_v34 = vsel %vm749_vm2, %v1016_v60, %v1047_v20  ;;  %v583_v3 = vpop.permute.xlu1 %582 }
 0x1d5   : > { %6585 = vst [vmem:[#allocation25_spill] sm:$0xff] %v4858_v19  ;;  %v6589_v45 = vperm.slane %v6573_v32, 1  ;;  %v1079_v1 = vrot.slane %v4847_v15, 4  ;;  %v4878_v57 = vsel %vm749_vm2, %v4837_v37, %v1195_v54  ;;  %v1075_v13 = vrot.slane %v4851_v27, 4 }
 0x1d6   : > { %6587 = vst [vmem:[#allocation5_spill] sm:$0xff] %v4864_v41  ;;  %v1056_v35 = vperm.slane %v1048_v34, %v4378_v44  ;;  %v1057_v25 = vrot.slane %v1020_v10, 4  ;;  %v6591_v43 = vperm.slane %v6573_v32, 0  ;;  %v1060_v24 = vsel %vm749_vm2, %v1020_v10, %v1059_v62  ;;  %v607_v19 = vpop.permute.xlu2 %606 }
 0x1d7   : > { %6588 = vst [vmem:[#allocation17_spill] sm:$0xff] %v4870_v51  ;;  %1871 = vperm.xlu1 %3763, %v6589_v45   ;;  %v1046_v20 = vsel %vm749_vm2, %v1045_v18, %v1004_v59  ;;  %v1044_v60 = vperm.slane %v1036_v21, %v4378_v44  ;;  %v1068_v45 = vperm.slane %v1060_v24, %v4378_v44  ;;  %v1435_v41 = vrot.slane %v583_v3, 4 }
 0x1d8   : > { %6590 = vst [vmem:[#allocation20_spill] sm:$0xff] %v4878_v57  ;;  %1864 = vperm.xlu2 %3764, %v6591_v43   ;;  %v2334_v54 = vsel %vm749_vm2, %v2333_v22, %v4768_v47  ;;  %v1071_v57 = vrot.slane %v1028_v58, 4  ;;  %v1052_v51 = vperm.slane %v1046_v20, %v4378_v44  ;;  %v1076_v34 = vsel %vm749_vm2, %v1056_v35, %v1075_v13  ;;  %v6592_v43 = vld [vmem:[#allocation21_spill] sm:$0xff] }
 0x1d9   : > { %v2083_v7 = vadd.f32 %v6592_v43, %v1076_v34  ;;  %v1433_v62 = vrot.slane %v607_v19, 4  ;;  %v1058_v59 = vsel %vm749_vm2, %v1057_v25, %v1008_v2  ;;  %v1081_v10 = vrot.slane %v1068_v45, 4  ;;  %v4898_v22 = vpop.permute.xlu0 %694  ;;  %v6593_v43 = vld [vmem:[#allocation13_spill] sm:$0xff] }
 0x1da   : > { %v1069_v18 = vrot.slane %v1052_v51, 4  ;;  %v4895_v21 = vsel %vm749_vm2, %v1052_v51, %v1071_v57  ;;  %v1436_v24 = vsel %vm749_vm2, %v607_v19, %v1435_v41  ;;  %v1064_v20 = vperm.slane %v1058_v59, %v4378_v44 }
 0x1db   : > { %v1073_v0 = vrot.slane %v1056_v35, 4  ;;  %v4902_v13 = vadd.f32 %v6586_v6, %v2083_v7  ;;  %v4905_v34 = vsel %vm749_vm2, %v1433_v62, %v583_v3  ;;  %v1193_v2 = vrot.slane %v4837_v37, 4  ;;  %v6594_v7 = vld [vmem:[#allocation12_spill] sm:$0xff] }
 0x1dc   : > { %v1070_v25 = vsel %vm749_vm2, %v1069_v18, %v1028_v58  ;;  %v4910_v51 = vsel %vm749_vm2, %v1064_v20, %v1079_v1  ;;  %v1083_v57 = vrot.slane %v1044_v60, 4  ;;  %v2137_v19 = vrot.slane %v6568_v26, 2 }
 0x1dd   : > { %v2077_v35 = vadd.f32 %v6593_v43, %v1070_v25  ;;  %v1423_v6 = vrot.slane %v6594_v7, 4  ;;  %v2140_v3 = vrot.slane %v6568_v26, 5  ;;  %v4919_v37 = vperm.slane %v1436_v24, %v4328_v39  ;;  %v4930_v25 = vpop.permute.xlu1 %594 }
 0x1de   : > { %v6596_v58 = vperm.slane %v6573_v32, 1  ;;  %v1077_v1 = vrot.slane %v1064_v20, 4  ;;  %v4924_v62 = vsel %vm749_vm2, %v1081_v10, %v1044_v60  ;;  %v4927_v59 = vsel %vm749_vm2, %v1068_v45, %v1083_v57  ;;  %v643_v10 = vpop.permute.xlu2 %642  ;;  %v6602_v20 = vld [vmem:[#allocation18_spill] sm:$0xff] }
 0x1df   : > { %3765 = vset.pattern.permute.xlu1 %v4114_v52  ;;  %6595 = vst [vmem:[#allocation22_spill] sm:$0xff] %v4919_v37  ;;  %v1447_v18 = vrot.slane %v4646_v4, 4  ;;  %v1074_v43 = vsel %vm749_vm2, %v1073_v0, %v4851_v27  ;;  %v6599_v24 = vperm.slane %v6568_v26, 0  ;;  %v1424_v60 = vsel %vm749_vm2, %v4930_v25, %v1423_v6 }
 0x1e0   : > { %1877 = vperm.xlu2 %3764, %v6596_v58   ;;  %6597 = vst [vmem:[#allocation21_spill] sm:$0xff] %v4924_v62  ;;  %v4938_v58 = vsel %vm749_vm2, %v1193_v2, %v4785_v23  ;;  %v4944_v45 = vsel %vm749_vm2, %v1077_v1, %v4847_v15  ;;  %v2081_v57 = vadd.f32 %v6602_v20, %v1074_v43  ;;  %v1445_v27 = vrot.slane %v643_v10, 4 }
 0x1e1   : > { %6598 = vst [vmem:[#allocation13_spill] sm:$0xff] %v4927_v59  ;;  %v2237_v41 = vadd.f32 %v6599_v24, %v2077_v35  ;;  %v4947_v59 = vperm.slane %v2137_v19, 0  ;;  %v4950_v0 = vperm.slane %v1424_v60, %v4328_v39  ;;  %v1448_v35 = vsel %vm749_vm2, %v643_v10, %v1447_v18  ;;  %v4954_v24 = vpop.permute.xlu0 %730 }
 0x1e2   : > { %6600 = vst [vmem:[#allocation12_spill] sm:$0xff] %v4938_v58  ;;  %v1481_v2 = vrot.slane %v4919_v37, 4  ;;  %v2340_v15 = vperm.slane %v2334_v54, %v4378_v44  ;;  %v2364_v1 = vperm.slane %v4794_v38, %v4378_v44  ;;  %v1446_v19 = vsel %vm749_vm2, %v1445_v27, %v4646_v4 }
 0x1e3   : > { %6601 = vst [vmem:[#allocation36_spill] sm:$0xff] %v4944_v45  ;;  %v2399_v23 = vrot.slane %v2237_v41, 4  ;;  %v2241_v6 = vadd.f32 %v4947_v59, %v2081_v57  ;;  %v1892_v43 = vperm.slane %v6573_v32, 3  ;;  %v2335_v18 = vrot.slane %v4768_v47, 4 }
 0x1e4   : > { %6603 = vst [vmem:[#allocation18_spill] sm:$0xff] %v4947_v59  ;;  %v4966_v10 = vperm.slane %v1446_v19, %v4328_v39  ;;  %v1482_v20 = vsel %vm749_vm2, %v1481_v2, %v4950_v0  ;;  %v1457_v38 = vrot.slane %v4690_v31, 4  ;;  %v1323_v58 = vrot.slane %v4759_v30, 4 }
 0x1e5   : > { %v2397_v57 = vrot.slane %v2241_v6, 4  ;;  %v6605_v4 = vperm.slane %v6573_v32, 2  ;;  %v4975_v27 = vperm.slane %v2140_v3, 0  ;;  %v4978_v47 = vsel %vm749_vm2, %v2241_v6, %v2399_v23  ;;  %v631_v59 = vpop.permute.xlu1 %630 }
 0x1e6   : > { %6604 = vst [vmem:[#allocation37_spill] sm:$0xff] %v4966_v10  ;;  %v1495_v19 = vrot.slane %v4966_v10, 4  ;;  %v2381_v54 = vrot.slane %v2364_v1, 4  ;;  %v2383_v60 = vrot.slane %v2340_v15, 4  ;;  %v1303_v42 = vrot.slane %v4713_v53, 4  ;;  %v693_v62 = vpop.permute.xlu2 %692 }
 0x1e7   : > { %1890 = vperm.xlu1 %3765, %v6605_v4   ;;  %v4983_v2 = vsel %vm749_vm2, %v2397_v57, %v2237_v41  ;;  %v2336_v4 = vsel %vm749_vm2, %v4822_v8, %v2335_v18  ;;  %v2359_v3 = vrot.slane %v4777_v63, 4  ;;  %v1305_v23 = vrot.slane %v4666_v14, 4 }
 0x1e8   : > { %3766 = vset.pattern.permute.xlu2 %v4034_v29  ;;  %v1458_v6 = vsel %vm749_vm2, %v1457_v38, %v631_v59  ;;  %v1459_v10 = vrot.slane %v631_v59, 4  ;;  %v4992_v45 = vsel %vm749_vm2, %v2364_v1, %v2383_v60  ;;  %v2344_v41 = vperm.slane %v2336_v4, %v4378_v44  ;;  %v6608_v59 = vld [vmem:[#allocation15_spill] sm:$0xff] }
 0x1e9   : > { %6606 = vst [vmem:[#allocation38_spill] sm:$0xff] %v4992_v45  ;;  %v4996_v57 = vperm.slane %v1458_v6, %v4328_v39  ;;  %v1321_v53 = vrot.slane %v693_v62, 4  ;;  %v1324_v37 = vsel %vm749_vm2, %v693_v62, %v1323_v58  ;;  %v5001_v63 = vsel %vm749_vm2, %v4696_v17, %v1303_v42  ;;  %v1820_v8 = vpop.permute.xlu0 %1819 }
 0x1ea   : > { %6607 = vst [vmem:[#allocation39_spill] sm:$0xff] %v5001_v63  ;;  %v1460_v14 = vsel %vm749_vm2, %v4690_v31, %v1459_v10  ;;  %v1311_v18 = vrot.slane %v6608_v59, 4  ;;  %v2360_v1 = vsel %vm749_vm2, %v4754_v5, %v2359_v3  ;;  %v5010_v60 = vsel %vm749_vm2, %v1305_v23, %v4624_v55  ;;  %v6610_v5 = vld [vmem:[#allocation16_spill] sm:$0xff] }
 0x1eb   : > { %6609 = vst [vmem:[#allocation15_spill] sm:$0xff] %v5010_v60  ;;  %v5013_v38 = vperm.slane %v1460_v14, %v4328_v39  ;;  %v5017_v17 = vsel %vm749_vm2, %v4996_v57, %v1495_v19  ;;  %v1322_v31 = vsel %vm749_vm2, %v1321_v53, %v4759_v30  ;;  %v2311_v42 = vrot.slane %v4673_v28, 4 }
 0x1ec   : > { %v1335_v62 = vrot.slane %v4805_v56, 4  ;;  %v2079_v58 = vadd.f32 %v6610_v5, %v4895_v21  ;;  %v2087_v55 = vadd.f32 %v1820_v8, %v4910_v51  ;;  %v2368_v10 = vperm.slane %v2360_v1, %v4378_v44 }
 0x1ed   : > { %v5028_v4 = vperm.slane %v1448_v35, %v4328_v39  ;;  %v1505_v19 = vrot.slane %v5013_v38, 4  ;;  %v2387_v3 = vrot.slane %v2344_v41, 4  ;;  %v5032_v30 = vsel %vm749_vm2, %v2381_v54, %v2340_v15  ;;  %v681_v6 = vpop.permute.xlu1 %680 }
 0x1ee   : > { %6611 = vst [vmem:[#allocation16_spill] sm:$0xff] %v5032_v30  ;;  %v5035_v28 = vperm.slane %v1324_v37, %v4328_v39  ;;  %v5038_v23 = vadd.f32 %v4975_v27, %v2087_v55  ;;  %v2385_v21 = vrot.slane %v2368_v10, 4  ;;  %v2299_v51 = vrot.slane %v4520_v50, 4  ;;  %v729_v8 = vpop.permute.xlu2 %728 }
 0x1ef   : > { %1903 = vperm.xlu1 %3765, %v1892_v43   ;;  %v1328_v35 = vperm.slane %v1322_v31, %v4328_v39  ;;  %v1506_v53 = vsel %vm749_vm2, %v1505_v19, %v5028_v4  ;;  %v5045_v14 = vsel %vm749_vm2, %v2368_v10, %v2387_v3  ;;  %v2312_v37 = vsel %vm749_vm2, %v4725_v48, %v2311_v42 }
 0x1f0   : > { %1897 = vperm.xlu2 %3766, %v1892_v43   ;;  %6612 = vst [vmem:[#allocation40_spill] sm:$0xff] %v5045_v14  ;;  %v1309_v15 = vrot.slane %v681_v6, 4  ;;  %v1312_v54 = vsel %vm749_vm2, %v681_v6, %v1311_v18  ;;  %v5051_v43 = vperm.slane %v1482_v20, %v4378_v44  ;;  %v5054_v50 = vperm.slane %v1506_v53, %v4378_v44 }
 0x1f1   : > { %v5057_v1 = vperm.slane %v1312_v54, %v4328_v39  ;;  %v1333_v31 = vrot.slane %v729_v8, 4  ;;  %v1336_v5 = vsel %vm749_vm2, %v729_v8, %v1335_v62  ;;  %v5061_v55 = vsel %vm749_vm2, %v2385_v21, %v2344_v41 }
 0x1f2   : > { %6613 = vst [vmem:[#allocation41_spill] sm:$0xff] %v5061_v55  ;;  %v1369_v48 = vrot.slane %v5035_v28, 4  ;;  %v1310_v18 = vsel %vm749_vm2, %v1309_v15, %v6608_v59  ;;  %v1525_v20 = vrot.slane %v5054_v50, 4  ;;  %v2300_v42 = vsel %vm749_vm2, %v6572_v61, %v2299_v51  ;;  %v6617_v15 = vld [vmem:[#allocation14_spill] sm:$0xff] }
 0x1f3   : > { %v1357_v10 = vrot.slane %v1328_v35, 4  ;;  %v1316_v19 = vperm.slane %v1310_v18, %v4328_v39  ;;  %v1334_v3 = vsel %vm749_vm2, %v1333_v31, %v4805_v56  ;;  %v2296_v41 = vperm.slane %v4559_v9, %v4328_v39  ;;  %v5098_v18 = vpop.permute.xlu0 %1884 }
 0x1f4   : > { %v6614_v62 = vrot.slane %v6568_v26, 1  ;;  %v5080_v59 = vsel %vm749_vm2, %v1525_v20, %v5051_v43  ;;  %v1370_v61 = vsel %vm749_vm2, %v1369_v48, %v5057_v1  ;;  %v1340_v53 = vperm.slane %v1334_v3, %v4328_v39  ;;  %6618 = vst [vmem:[#allocation14_spill] sm:$0xff] %v5098_v18 }
 0x1f5   : > { %6616 = vst [vmem:[#allocation43_spill] sm:$0xff] %v5080_v59  ;;  %v1359_v51 = vrot.slane %v1316_v19, 4  ;;  %v1535_v9 = vrot.slane %v4282_v33, 4  ;;  %v1358_v56 = vsel %vm749_vm2, %v1357_v10, %v1316_v19  ;;  %v5091_v54 = vadd.f32 %v6617_v15, %v4537_v16 }
 0x1f6   : > { %v5076_v21 = vperm.slane %v6614_v62, 0  ;;  %v1345_v31 = vrot.slane %v4854_v40, 4  ;;  %v1545_v48 = vrot.slane %v4898_v22, 4  ;;  %v6619_v20 = vperm.slane %v6573_v32, 4  ;;  %v717_v62 = vpop.permute.xlu1 %716  ;;  %v683_v6 = vpop.permute.xlu2 %682 }
 0x1f7   : > { %3767 = vset.pattern.permute.xlu1 %v4034_v29  ;;  %v1360_v10 = vsel %vm749_vm2, %v1328_v35, %v1359_v51  ;;  %v2308_v16 = vperm.slane %v2300_v42, %v4328_v39  ;;  %v2347_v19 = vrot.slane %v2296_v41, 4  ;;  %v1347_v15 = vrot.slane %v717_v62, 4 }
 0x1f8   : > { %6615 = vst [vmem:[#allocation42_spill] sm:$0xff] %v5076_v21  ;;  %v5094_v8 = vadd.f32 %v5076_v21, %v2079_v58  ;;  %1910 = vperm.xlu2 %3766, %v6619_v20   ;;  %v1346_v58 = vsel %vm749_vm2, %v1345_v31, %v717_v62  ;;  %v1376_v30 = vperm.slane %v1370_v61, %v4378_v44  ;;  %v1383_v14 = vrot.slane %v1340_v53, 4 }
 0x1f9   : > { %v1368_v59 = vperm.slane %v1360_v10, %v4378_v44  ;;  %v1352_v60 = vperm.slane %v1346_v58, %v4328_v39  ;;  %v5110_v20 = vperm.slane %v2312_v37, %v4328_v39  ;;  %v2348_v3 = vsel %vm749_vm2, %v2308_v16, %v2347_v19 }
 0x1fa   : > { %v5114_v35 = vperm.slane %v1336_v5, %v4328_v39  ;;  %v1348_v42 = vsel %vm749_vm2, %v4854_v40, %v1347_v15  ;;  %v1364_v51 = vperm.slane %v1358_v56, %v4378_v44  ;;  %v2332_v61 = vperm.slane %v4656_v36, %v4328_v39 }
 0x1fb   : > { %v5122_v31 = vperm.slane %v1348_v42, %v4328_v39  ;;  %v1381_v62 = vrot.slane %v1352_v60, 4  ;;  %v1384_v37 = vsel %vm749_vm2, %v1352_v60, %v1383_v14  ;;  %v1536_v10 = vsel %vm749_vm2, %v683_v6, %v1535_v9 }
 0x1fc   : > { %v1533_v19 = vrot.slane %v683_v6, 4  ;;  %v1392_v5 = vperm.slane %v1384_v37, %v4378_v44  ;;  %v1411_v58 = vrot.slane %v1368_v59, 4  ;;  %v1415_v55 = vrot.slane %v1376_v30, 4 }
 0x1fd   : > { %v1393_v40 = vrot.slane %v5122_v31, 4  ;;  %v6620_v56 = vperm.slane %v6573_v32, 5  ;;  %v1382_v36 = vsel %vm749_vm2, %v1381_v62, %v1340_v53  ;;  %v2371_v15 = vrot.slane %v5110_v20, 4 }
 0x1fe   : > { %v2345_v42 = vrot.slane %v2308_v16, 4  ;;  %v5133_v63 = vperm.slane %v1536_v10, %v4328_v39  ;;  %v1388_v60 = vperm.slane %v1382_v36, %v4378_v44  ;;  %v1407_v14 = vrot.slane %v1364_v51, 4  ;;  %v671_v9 = vpop.permute.xlu1 %670  ;;  %v5146_v10 = vpop.permute.xlu0 %1949 }
 0x1ff   : > { %1923 = vperm.xlu1 %3767, %v6620_v56   ;;  %v1409_v6 = vrot.slane %v1392_v5, 4  ;;  %v1394_v37 = vsel %vm749_vm2, %v1393_v40, %v5114_v35  ;;  %v5140_v56 = vsel %vm749_vm2, %v1392_v5, %v1411_v58  ;;  %v2372_v53 = vsel %vm749_vm2, %v2332_v61, %v2371_v15  ;;  %6622 = vst [vmem:[#allocation45_spill] sm:$0xff] %v5146_v10  ;;  %v5149_v18 = vpop.permute.xlu2 %718 }
 0x200   : > { %3768 = vset.pattern.permute.xlu2 %v4114_v52  ;;  %6621 = vst [vmem:[#allocation44_spill] sm:$0xff] %v5140_v56  ;;  %v2346_v16 = vsel %vm749_vm2, %v2345_v42, %v2296_v41  ;;  %v1534_v62 = vsel %vm749_vm2, %v1533_v19, %v4282_v33  ;;  %v1546_v36 = vsel %vm749_vm2, %v1545_v48, %v671_v9  ;;  %v1547_v45 = vrot.slane %v671_v9, 4 }
 0x201   : > { %v1405_v21 = vrot.slane %v1388_v60, 4  ;;  %v5152_v40 = vperm.slane %v1546_v36, %v4328_v39  ;;  %v1400_v5 = vperm.slane %v1394_v37, %v4378_v44  ;;  %v5156_v58 = vsel %vm749_vm2, %v1388_v60, %v1407_v14 }
 0x202   : > { %v5159_v41 = vperm.slane %v2348_v3, %v4378_v44  ;;  %v1548_v33 = vsel %vm749_vm2, %v4898_v22, %v1547_v45  ;;  %v5167_v19 = vsel %vm749_vm2, %v1409_v6, %v1368_v59  ;;  %v5170_v15 = vperm.slane %v2372_v53, %v4378_v44 }
 0x203   : > { %v5164_v48 = vsel %vm749_vm2, %v1405_v21, %v1364_v51  ;;  %6623 = vst [vmem:[#allocation46_spill] sm:$0xff] %v5167_v19  ;;  %v5173_v42 = vperm.slane %v1534_v62, %v4328_v39  ;;  %v5176_v60 = vperm.slane %v1548_v33, %v4328_v39  ;;  %v1581_v3 = vrot.slane %v5152_v40, 4 }
 0x204   : > { %v1413_v14 = vrot.slane %v1400_v5, 4  ;;  %v1595_v22 = vrot.slane %v5133_v63, 4  ;;  %v5181_v45 = vsel %vm749_vm2, %v1400_v5, %v1415_v55  ;;  %v2393_v21 = vrot.slane %v5170_v15, 4 }
 0x205   : > { %6624 = vst [vmem:[#allocation47_spill] sm:$0xff] %v5181_v45  ;;  %v2369_v59 = vrot.slane %v2332_v61, 4  ;;  %v1421_v51 = vrot.slane %v4930_v25, 4  ;;  %v1557_v6 = vrot.slane %v4954_v24, 4  ;;  %v6625_v9 = vperm.slane %v6573_v32, 6 }
 0x206   : > { %v5189_v37 = vsel %vm749_vm2, %v1413_v14, %v1376_v30  ;;  %v5193_v53 = vsel %vm749_vm2, %v1581_v3, %v5173_v42  ;;  %v6626_v55 = vperm.slane %v6573_v32, 5  ;;  %v5199_v61 = vsel %vm749_vm2, %v5176_v60, %v1595_v22  ;;  %v707_v5 = vpop.permute.xlu1 %706  ;;  %v5226_v45 = vpop.permute.xlu0 %2014 }
 0x207   : > { %1936 = vperm.xlu1 %3767, %v6625_v9   ;;  %v6627_v25 = vrot.slane %v4902_v13, 4  ;;  %v5207_v30 = vsel %vm749_vm2, %v2393_v21, %v5159_v41  ;;  %v2352_v36 = vperm.slane %v2346_v16, %v4378_v44  ;;  %v6629_v33 = vrot.slane %v6568_v26, 4  ;;  %v1813_v10 = vpop.permute.xlu2 %1812  ;;  %6630 = vst [vmem:[#allocation49_spill] sm:$0xff] %v5226_v45 }
 0x208   : > { %1929 = vperm.xlu2 %3768, %v6626_v55   ;;  %6628 = vst [vmem:[#allocation48_spill] sm:$0xff] %v5207_v30  ;;  %v2370_v9 = vsel %vm749_vm2, %v2369_v59, %v5110_v20  ;;  %v1558_v55 = vsel %vm749_vm2, %v1557_v6, %v707_v5  ;;  %v2747_v21 = vrot.slane %v4566_v11, 4  ;;  %v2404_v16 = vperm.slane %v4983_v2, %v4328_v39 }
 0x209   : > { %v2410_v62 = vsel %vm749_vm2, %v6627_v25, %v5094_v8  ;;  %v5212_v3 = vperm.slane %v6629_v33, 0  ;;  %v1559_v25 = vrot.slane %v707_v5, 4  ;;  %v1422_v33 = vsel %vm749_vm2, %v1421_v51, %v6594_v7 }
 0x20a   : > { %v2416_v22 = vperm.slane %v2410_v62, %v4328_v39  ;;  %v2086_v30 = vadd.f32 %v1813_v10, %v4826_v49  ;;  %v2376_v62 = vperm.slane %v2370_v9, %v4378_v44  ;;  %v2391_v59 = vrot.slane %v2352_v36, 4 }
 0x20b   : > { %v1560_v20 = vsel %vm749_vm2, %v4954_v24, %v1559_v25  ;;  %v5232_v6 = vadd.f32 %v4315_v46, %v5091_v54  ;;  %v2745_v2 = vrot.slane %v4540_v12, 4  ;;  %v2411_v5 = vrot.slane %v5094_v8, 4 }
 0x20c   : > { %v2445_v14 = vrot.slane %v2416_v22, 4  ;;  %v1440_v49 = vperm.slane %v4905_v34, %v4328_v39  ;;  %v5239_v7 = vadd.f32 %v5212_v3, %v2086_v30  ;;  %v1428_v24 = vperm.slane %v1422_v33, %v4328_v39  ;;  %v6634_v34 = vld [vmem:[#allocation27_spill] sm:$0xff] }
 0x20d   : > { %v2389_v51 = vrot.slane %v2376_v62, 4  ;;  %v5246_v9 = vsel %vm749_vm2, %v2376_v62, %v2391_v59  ;;  %v5250_v46 = vsel %vm749_vm2, %v2745_v2, %v4566_v11  ;;  %v5253_v54 = vperm.slane %v1560_v20, %v4328_v39 }
 0x20e   : > { %v5242_v10 = vsel %vm749_vm2, %v2445_v14, %v2404_v16  ;;  %6632 = vst [vmem:[#allocation51_spill] sm:$0xff] %v5246_v9  ;;  %v2733_v8 = vrot.slane %v6634_v34, 4  ;;  %v2142_v30 = vrot.slane %v6568_v26, 7  ;;  %v2757_v14 = vrot.slane %v5232_v6, 4  ;;  %v743_v9 = vpop.permute.xlu1 %742 }
 0x20f   : > { %6631 = vst [vmem:[#allocation50_spill] sm:$0xff] %v5242_v10  ;;  %3769 = vset.pattern.permute.xlu1 %v4114_v52  ;;  %v1571_v25 = vrot.slane %v5149_v18, 4  ;;  %v6635_v33 = vperm.slane %v6573_v32, 6  ;;  %v5263_v62 = vsel %vm749_vm2, %v2389_v51, %v2352_v36  ;;  %v2395_v11 = vrot.slane %v5159_v41, 4  ;;  %v6638_v10 = vld [vmem:[#allocation29_spill] sm:$0xff] }
 0x210   : > { %6633 = vst [vmem:[#allocation52_spill] sm:$0xff] %v5250_v46  ;;  %v5268_v20 = vsel %vm749_vm2, %v4540_v12, %v2747_v21  ;;  %v1469_v59 = vrot.slane %v1440_v49, 4  ;;  %v1483_v2 = vrot.slane %v4950_v0, 4  ;;  %v2412_v45 = vsel %vm749_vm2, %v4902_v13, %v2411_v5 }
 0x211   : > { %1942 = vperm.xlu2 %3768, %v6635_v33   ;;  %6636 = vst [vmem:[#allocation27_spill] sm:$0xff] %v5263_v62  ;;  %v5275_v46 = vsel %vm749_vm2, %v2757_v14, %v6638_v10  ;;  %v1471_v33 = vrot.slane %v1428_v24, 4  ;;  %v1569_v36 = vrot.slane %v743_v9, 4  ;;  %v1572_v51 = vsel %vm749_vm2, %v743_v9, %v1571_v25  ;;  %v6641_v62 = vld [vmem:[#allocation26_spill] sm:$0xff] }
 0x212   : > { %6637 = vst [vmem:[#allocation53_spill] sm:$0xff] %v5268_v20  ;;  %v5279_v41 = vperm.slane %v2412_v45, %v4328_v39  ;;  %v1619_v12 = vrot.slane %v5253_v54, 4  ;;  %v5283_v21 = vperm.slane %v1572_v51, %v4328_v39  ;;  %v5287_v0 = vperm.slane %v4978_v47, %v4328_v39  ;;  %v1657_v45 = vpop.permute.xlu0 %1656 }
 0x213   : > { %6639 = vst [vmem:[#allocation29_spill] sm:$0xff] %v5275_v46  ;;  %v5291_v13 = vsel %vm749_vm2, %v5170_v15, %v2395_v11  ;;  %v1493_v5 = vrot.slane %v4996_v57, 4  ;;  %v1570_v9 = vsel %vm749_vm2, %v1569_v36, %v5149_v18  ;;  %v2447_v14 = vrot.slane %v2404_v16, 4  ;;  %v6652_v46 = vld [vmem:[#allocation7_spill] sm:$0xff] }
 0x214   : > { %6640 = vst [vmem:[#allocation54_spill] sm:$0xff] %v5291_v13  ;;  %v2457_v25 = vrot.slane %v5279_v41, 4  ;;  %v5298_v51 = vperm.slane %v1570_v9, %v4328_v39  ;;  %v1620_v47 = vsel %vm749_vm2, %v5283_v21, %v1619_v12  ;;  %v2062_v20 = vadd.f32 %v1657_v45, %v6641_v62  ;;  %v6642_v62 = vld [vmem:[#allocation6_spill] sm:$0xff] }
 0x215   : > { %v5305_v15 = vperm.slane %v5193_v53, %v4378_v44  ;;  %v1371_v57 = vrot.slane %v5057_v1, 4  ;;  %v5309_v18 = vperm.slane %v1620_v47, %v4378_v44  ;;  %v1470_v16 = vsel %vm749_vm2, %v1469_v59, %v1428_v24 }
 0x216   : > { %v5313_v11 = vsel %vm749_vm2, %v2416_v22, %v2447_v14  ;;  %v5316_v36 = vperm.slane %v1558_v55, %v4328_v39  ;;  %v1605_v12 = vrot.slane %v5298_v51, 4  ;;  %v6643_v9 = vperm.slane %v6642_v62, 0  ;;  %v6645_v55 = vld [vmem:[#allocation22_spill] sm:$0xff]  ;;  %v1807_v47 = vpop.permute.xlu1 %1806 }
 0x217   : > { %v6644_v53 = vperm.slane %v6573_v32, 7  ;;  %v5325_v1 = vperm.slane %v5199_v61, %v4378_v44  ;;  %v1641_v22 = vrot.slane %v5309_v18, 4  ;;  %v1472_v24 = vsel %vm749_vm2, %v1440_v49, %v1471_v33  ;;  %v1833_v49 = vpop.permute.xlu2 %1832 }
 0x218   : > { %v2222_v45 = vadd.f32 %v6643_v9, %v2062_v20  ;;  %v1484_v59 = vsel %vm749_vm2, %v6645_v55, %v1483_v2  ;;  %v5334_v14 = vsel %vm749_vm2, %v2457_v25, %v5287_v0  ;;  %v1606_v61 = vsel %vm749_vm2, %v1605_v12, %v5316_v36  ;;  %v6647_v9 = vld [vmem:[#allocation36_spill] sm:$0xff]  ;;  %v6651_v55 = vld [vmem:[#allocation21_spill] sm:$0xff] }
 0x219   : > { %1955 = vperm.xlu1 %3769, %v6644_v53   ;;  %3770 = vset.pattern.permute.xlu2 %v4034_v29  ;;  %v1631_v62 = vrot.slane %v5305_v15, 4  ;;  %v2085_v53 = vadd.f32 %v1807_v47, %v6647_v9  ;;  %v5344_v33 = vperm.slane %v1606_v61, %v4378_v44  ;;  %v5348_v2 = vsel %vm749_vm2, %v1641_v22, %v5325_v1 }
 0x21a   : > { %v5337_v32 = vsel %vm749_vm2, %v2733_v8, %v2222_v45  ;;  %v2735_v20 = vrot.slane %v2222_v45, 4  ;;  %6648 = vst [vmem:[#allocation6_spill] sm:$0xff] %v5348_v2  ;;  %v1476_v8 = vperm.slane %v1470_v16, %v4378_v44  ;;  %v6650_v12 = vrot.slane %v6568_v26, 6  ;;  %v1722_v13 = vpop.permute.xlu0 %1721  ;;  %v6653_v26 = vld [vmem:[#allocation28_spill] sm:$0xff] }
 0x21b   : > { %6646 = vst [vmem:[#allocation26_spill] sm:$0xff] %v5337_v32  ;;  %v2089_v47 = vadd.f32 %v1833_v49, %v6651_v55  ;;  %v5360_v9 = vperm.slane %v2142_v30, 0  ;;  %v2245_v61 = vadd.f32 %v5212_v3, %v2085_v53  ;;  %v1957_v22 = vperm.slane %v6652_v46, 0  ;;  %v6654_v30 = vld [vmem:[#allocation37_spill] sm:$0xff]  ;;  %v6655_v32 = vld [vmem:[#allocation30_spill] sm:$0xff] }
 0x21c   : > { %v5353_v25 = vsel %vm749_vm2, %v6634_v34, %v2735_v20  ;;  %v5357_v45 = vperm.slane %v6650_v12, 0  ;;  %v5366_v16 = vsel %vm749_vm2, %v5344_v33, %v1631_v62  ;;  %v1480_v34 = vperm.slane %v1472_v24, %v4378_v44  ;;  %v6656_v24 = vld [vmem:[#allocation23_spill] sm:$0xff] }
 0x21d   : > { %6649 = vst [vmem:[#allocation22_spill] sm:$0xff] %v5353_v25  ;;  %v2072_v12 = vadd.f32 %v1722_v13, %v6653_v26  ;;  %v1372_v49 = vsel %vm749_vm2, %v5035_v28, %v1371_v57  ;;  %v1494_v55 = vsel %vm749_vm2, %v1493_v5, %v6654_v30  ;;  %v1507_v3 = vrot.slane %v5028_v4, 4 }
 0x21e   : > { %v2249_v20 = vadd.f32 %v5357_v45, %v2089_v47  ;;  %v2423_v53 = vrot.slane %v2245_v61, 4  ;;  %v1500_v2 = vperm.slane %v1494_v55, %v4378_v44  ;;  %v1519_v25 = vrot.slane %v1476_v8, 4 }
 0x21f   : > { %v2769_v56 = vrot.slane %v6655_v32, 4  ;;  %v2232_v19 = vadd.f32 %v6656_v24, %v2072_v12  ;;  %v1504_v13 = vperm.slane %v5017_v17, %v4378_v44  ;;  %v1508_v57 = vsel %vm749_vm2, %v5013_v38, %v1507_v3 }
 0x220   : > { %v2421_v62 = vrot.slane %v2249_v20, 4  ;;  %v5382_v28 = vsel %vm749_vm2, %v2249_v20, %v2423_v53  ;;  %v1517_v5 = vrot.slane %v1500_v2, 4  ;;  %v5385_v4 = vsel %vm749_vm2, %v1500_v2, %v1519_v25  ;;  %v1846_v20 = vpop.permute.xlu2 %1845  ;;  %v6657_v25 = vld [vmem:[#allocation13_spill] sm:$0xff] }
 0x221   : > { %1968 = vperm.xlu1 %3769, %v1957_v22   ;;  %1962 = vperm.xlu2 %3770, %v1957_v22   ;;  %v5393_v26 = vsel %vm749_vm2, %v2769_v56, %v2232_v19  ;;  %v2771_v12 = vrot.slane %v2232_v19, 4  ;;  %v1523_v30 = vrot.slane %v1480_v34, 4  ;;  %v1395_v17 = vrot.slane %v5114_v35, 4 }
 0x222   : > { %v5390_v47 = vsel %vm749_vm2, %v2421_v62, %v2245_v61  ;;  %v5397_v22 = vsel %vm749_vm2, %v1517_v5, %v1476_v8  ;;  %v1521_v55 = vrot.slane %v1504_v13, 4  ;;  %v1527_v2 = vrot.slane %v5051_v43, 4  ;;  %v1787_v3 = vpop.permute.xlu0 %1786  ;;  %v6659_v43 = vld [vmem:[#allocation11_spill] sm:$0xff] }
 0x223   : > { %v5402_v38 = vsel %vm749_vm2, %v6655_v32, %v2771_v12  ;;  %v2091_v61 = vadd.f32 %v1846_v20, %v6657_v25  ;;  %v5406_v56 = vsel %vm749_vm2, %v1504_v13, %v1523_v30  ;;  %v1492_v19 = vperm.slane %v1484_v59, %v4378_v44  ;;  %v6661_v13 = vld [vmem:[#allocation24_spill] sm:$0xff]  ;;  %v6662_v5 = vld [vmem:[#allocation19_spill] sm:$0xff]  ;;  %v6663_v12 = vld [vmem:[#allocation25_spill] sm:$0xff] }
 0x224   : > { %6658 = vst [vmem:[#allocation36_spill] sm:$0xff] %v5406_v56  ;;  %v2435_v35 = vrot.slane %v5038_v23, 4  ;;  %v5411_v8 = vsel %vm749_vm2, %v1521_v55, %v1480_v34  ;;  %v2082_v62 = vadd.f32 %v1787_v3, %v6659_v43  ;;  %v1396_v32 = vsel %vm749_vm2, %v5122_v31, %v1395_v17 }
 0x225   : > { %v2251_v53 = vadd.f32 %v5360_v9, %v2091_v61  ;;  %v5419_v24 = vsel %vm749_vm2, %v5054_v50, %v1527_v2  ;;  %v2080_v59 = vadd.f32 %v6662_v5, %v6661_v13  ;;  %v2847_v30 = vrot.slane %v6663_v12, 4  ;;  %v6664_v61 = vld [vmem:[#allocation18_spill] sm:$0xff]  ;;  %v6667_v5 = vld [vmem:[#allocation5_spill] sm:$0xff] }
 0x226   : > { %6660 = vst [vmem:[#allocation21_spill] sm:$0xff] %v5419_v24  ;;  %v1404_v20 = vperm.slane %v1396_v32, %v4378_v44  ;;  %v1516_v34 = vperm.slane %v1508_v57, %v4378_v44  ;;  %v2242_v3 = vadd.f32 %v6664_v61, %v2082_v62  ;;  %v1531_v31 = vrot.slane %v1492_v19, 4  ;;  %v1826_v62 = vpop.permute.xlu1 %1825 }
 0x227   : > { %v2433_v55 = vrot.slane %v2251_v53, 4  ;;  %v5427_v25 = vsel %vm749_vm2, %v2251_v53, %v2435_v35  ;;  %v6665_v50 = vperm.slane %v6652_v46, 1  ;;  %v1380_v17 = vperm.slane %v1372_v49, %v4378_v44 }
 0x228   : > { %v1417_v2 = vrot.slane %v1404_v20, 4  ;;  %v1529_v43 = vrot.slane %v1516_v34, 4  ;;  %v2759_v32 = vrot.slane %v6638_v10, 4  ;;  %v2845_v35 = vrot.slane %v2242_v3, 4 }
 0x229   : > { %3771 = vset.pattern.permute.xlu1 %v4034_v29  ;;  %1975 = vperm.xlu2 %3770, %v6665_v50   ;;  %v5437_v57 = vsel %vm749_vm2, %v2433_v55, %v5038_v23  ;;  %v5440_v53 = vsel %vm749_vm2, %v2242_v3, %v2847_v30  ;;  %v5443_v13 = vsel %vm749_vm2, %v1516_v34, %v1531_v31  ;;  %v2857_v61 = vrot.slane %v6667_v5, 4  ;;  %v6668_v50 = vld [vmem:[#allocation17_spill] sm:$0xff]  ;;  %v6669_v3 = vld [vmem:[#allocation42_spill] sm:$0xff]  ;;  %v6670_v31 = vld [vmem:[#allocation20_spill] sm:$0xff] }
 0x22a   : > { %6666 = vst [vmem:[#allocation7_spill] sm:$0xff] %v5443_v13  ;;  %v2088_v49 = vadd.f32 %v1826_v62, %v6668_v50  ;;  %v5449_v24 = vsel %vm749_vm2, %v2845_v35, %v6663_v12  ;;  %v5452_v10 = vsel %vm749_vm2, %v1417_v2, %v1380_v17  ;;  %v5455_v23 = vsel %vm749_vm2, %v1529_v43, %v1492_v19  ;;  %v1852_v55 = vpop.permute.xlu0 %1851  ;;  %v6671_v50 = vld [vmem:[#allocation9_spill] sm:$0xff] }
 0x22b   : > { %v2240_v34 = vadd.f32 %v6669_v3, %v2080_v59  ;;  %v2092_v13 = vadd.f32 %v1852_v55, %v6670_v31  ;;  %v1983_v56 = vperm.slane %v6652_v46, 2  ;;  %v5463_v62 = vsel %vm749_vm2, %v5232_v6, %v2759_v32 }
 0x22c   : > { %v2248_v30 = vadd.f32 %v4975_v27, %v2088_v49  ;;  %v1419_v35 = vrot.slane %v1380_v17, 4  ;;  %v1583_v6 = vrot.slane %v5173_v42, 4  ;;  %v2146_v49 = vrot.slane %v6671_v50, 4 }
 0x22d   : > { %v5466_v2 = vsel %vm749_vm2, %v2857_v61, %v2240_v34  ;;  %v2859_v19 = vrot.slane %v2240_v34, 4  ;;  %v2252_v43 = vadd.f32 %v5360_v9, %v2092_v13  ;;  %v6672_v9 = vld [vmem:[#allocation12_spill] sm:$0xff]  ;;  %v6514_v55 = vperm.slane %v6671_v50, 0 }
 0x22e   : > { %v2883_v12 = vrot.slane %v2248_v30, 4  ;;  %v5471_v27 = vsel %vm749_vm2, %v1404_v20, %v1419_v35  ;;  %v1839_v61 = vpop.permute.xlu1 %1838  ;;  %v1593_v20 = vrot.slane %v5176_v60, 4  ;;  %v1584_v42 = vsel %vm749_vm2, %v5152_v40, %v1583_v6 }
 0x22f   : > { %v5475_v59 = vsel %vm749_vm2, %v6667_v5, %v2859_v19  ;;  %v2881_v32 = vrot.slane %v2252_v43, 4  ;;  %v2090_v13 = vadd.f32 %v1839_v61, %v6672_v9  ;;  %v2871_v31 = vrot.slane %v5239_v7, 4 }
 0x230   : > { %v5479_v17 = vsel %vm749_vm2, %v2252_v43, %v2883_v12  ;;  %v5497_v43 = vperm.slane %v2146_v49, 0  ;;  %v1594_v6 = vsel %vm749_vm2, %v1593_v20, %v5133_v63  ;;  %v6673_v49 = vld [vmem:[#allocation10_spill] sm:$0xff]  ;;  %v1592_v20 = vperm.slane %v1584_v42, %v4378_v44 }
 0x231   : > { %1988 = vperm.xlu1 %3771, %v1983_v56   ;;  %3772 = vset.pattern.permute.xlu2 %v4114_v52  ;;  %v5486_v34 = vsel %vm749_vm2, %v2881_v32, %v2248_v30  ;;  %v2250_v12 = vadd.f32 %v5357_v45, %v2090_v13  ;;  %v1996_v30 = vperm.slane %v6652_v46, 3  ;;  %v2143_v45 = vrot.slane %v6671_v50, 1 }
 0x232   : > { %v1865_v3 = vpop.permute.xlu2 %1864  ;;  %v1917_v35 = vpop.permute.xlu0 %1916  ;;  %v2150_v9 = vrot.slane %v6673_v49, 1 }
 0x233   : > { %v2094_v5 = vadd.f32 %v1865_v3, %v5164_v48  ;;  %v2102_v60 = vadd.f32 %v1917_v35, %v5189_v37  ;;  %v2869_v32 = vrot.slane %v2250_v12, 4  ;;  %v5502_v48 = vsel %vm749_vm2, %v2250_v12, %v2871_v31 }
 0x234   : > { %v2459_v37 = vrot.slane %v5287_v0, 4  ;;  %v5523_v63 = vperm.slane %v2150_v9, 0  ;;  %v1617_v0 = vrot.slane %v5283_v21, 4  ;;  %v6674_v9 = vperm.slane %v6652_v46, 4 }
 0x235   : > { %v5495_v19 = vadd.f32 %v6514_v55, %v2094_v5  ;;  %v5505_v40 = vadd.f32 %v5497_v43, %v2102_v60  ;;  %v5512_v61 = vsel %vm749_vm2, %v2869_v32, %v5239_v7  ;;  %v2174_v5 = vperm.slane %v2143_v45, 0 }
 0x236   : > { %v5518_v3 = vsel %vm749_vm2, %v5279_v41, %v2459_v37  ;;  %v1600_v60 = vperm.slane %v1594_v6, %v4378_v44  ;;  %v1643_v45 = vrot.slane %v5325_v1, 4 }
 0x238   : > { %v1639_v42 = vrot.slane %v1600_v60, 4  ;;  %v5546_v6 = vsel %vm749_vm2, %v5309_v18, %v1643_v45  ;;  %v6678_v45 = vld [vmem:[#allocation33_spill] sm:$0xff] }
 0x239   : > { %2001 = vperm.xlu1 %3771, %v1996_v30   ;;  %1994 = vperm.xlu2 %3772, %v1983_v56   ;;  %6675 = vst [vmem:[#allocation28_spill] sm:$0xff] %v5546_v6 }
 0x23a   : > { %v1878_v13 = vpop.permute.xlu2 %1877 }
 0x23b   : > { %v2096_v31 = vadd.f32 %v1878_v13, %v5156_v58  ;;  %v1982_v12 = vpop.permute.xlu0 %1981  ;;  %v1607_v58 = vrot.slane %v5316_v36, 4  ;;  %v2145_v36 = vrot.slane %v6671_v50, 3 }
 0x23c   : > { %v2112_v7 = vadd.f32 %v1982_v12, %v5366_v16  ;;  %v1618_v16 = vsel %vm749_vm2, %v1617_v0, %v5253_v54  ;;  %v6677_v12 = vld [vmem:[#allocation32_spill] sm:$0xff] }
 0x23d   : > { %v5521_v35 = vadd.f32 %v2174_v5, %v2096_v31  ;;  %v1608_v32 = vsel %vm749_vm2, %v5298_v51, %v1607_v58  ;;  %v1624_v21 = vperm.slane %v1618_v16, %v4378_v44  ;;  %v1629_v58 = vrot.slane %v5344_v33, 4 }
 0x23e   : > { %v5527_v56 = vadd.f32 %v5523_v63, %v2112_v7  ;;  %v1616_v37 = vperm.slane %v1608_v32, %v4378_v44  ;;  %v5563_v16 = vperm.slane %v2145_v36, 0 }
 0x23f   : > { %v1637_v1 = vrot.slane %v1624_v21, 4  ;;  %v5553_v31 = vsel %vm749_vm2, %v1624_v21, %v1639_v42  ;;  %v5568_v21 = vsel %vm749_vm2, %v1629_v58, %v5305_v15  ;;  %v5581_v15 = vperm.slane %v5427_v25, %v4328_v39  ;;  %v6680_v58 = vld [vmem:[#allocation14_spill] sm:$0xff] }
 0x240   : > { %v1859_v41 = vpop.permute.xlu1 %1858  ;;  %v1633_v54 = vrot.slane %v1616_v37, 4  ;;  %6676 = vst [vmem:[#allocation37_spill] sm:$0xff] %v5553_v31 }
 0x241   : > { %3774 = vset.pattern.permute.xlu1 %v4114_v52  ;;  %2007 = vperm.xlu2 %3772, %v1996_v30   ;;  %v1635_v30 = vrot.slane %v1592_v20, 4  ;;  %v5561_v18 = vsel %vm749_vm2, %v1637_v1, %v1600_v60 }
 0x242   : > { %v5558_v32 = vsel %vm749_vm2, %v1633_v54, %v1592_v20  ;;  %v2022_v20 = vperm.slane %v6652_v46, 5 }
 0x243   : > { %v5550_v51 = vsel %vm749_vm2, %v1616_v37, %v1635_v30 }
 0x249   : > { %2020 = vperm.xlu1 %3774, %v6674_v9   ;;  %3775 = vset.pattern.permute.xlu2 %v4034_v29  ;;  %v1872_v13 = vpop.permute.xlu1 %1871  ;;  %v2440_v9 = vperm.slane %v5437_v57, %v4328_v39 }
 0x24a   : > { %v2095_v7 = vadd.f32 %v1872_v13, %v6677_v12  ;;  %v1898_v0 = vpop.permute.xlu2 %1897  ;;  %v2144_v13 = vrot.slane %v6671_v50, 2  ;;  %v2481_v12 = vrot.slane %v5581_v15, 4 }
 0x24b   : > { %v2099_v37 = vadd.f32 %v1898_v0, %v6678_v45  ;;  %v2469_v36 = vrot.slane %v2440_v9, 4  ;;  %v6679_v0 = vld [vmem:[#allocation34_spill] sm:$0xff]  ;;  %v5597_v45 = vperm.slane %v5382_v28, %v4328_v39 }
 0x24c   : > { %v2255_v30 = vadd.f32 %v2174_v5, %v2095_v7  ;;  %v2428_v5 = vperm.slane %v5390_v47, %v4328_v39  ;;  %v2456_v7 = vperm.slane %v5313_v11, %v4378_v44  ;;  %v2464_v47 = vperm.slane %v5334_v14, %v4378_v44  ;;  %v6683_v28 = vld [vmem:[#allocation46_spill] sm:$0xff] }
 0x24d   : > { %v2259_v33 = vadd.f32 %v5563_v16, %v2099_v37  ;;  %v2097_v25 = vadd.f32 %v6680_v58, %v6679_v0  ;;  %v2482_v14 = vsel %vm749_vm2, %v2481_v12, %v5597_v45 }
 0x24e   : > { %v2523_v42 = vrot.slane %v2255_v30, 4  ;;  %v5585_v1 = vsel %vm749_vm2, %v2469_v36, %v2428_v5  ;;  %v2471_v37 = vrot.slane %v2428_v5, 4  ;;  %v6682_v36 = vld [vmem:[#allocation35_spill] sm:$0xff] }
 0x24f   : > { %v2521_v54 = vrot.slane %v2259_v33, 4  ;;  %v2093_v0 = vadd.f32 %v1859_v41, %v6682_v36  ;;  %v2048_v41 = vperm.slane %v6652_v46, 7 }
 0x250   : > { %v5575_v60 = vsel %vm749_vm2, %v2259_v33, %v2523_v42  ;;  %v6681_v33 = vperm.slane %v6652_v46, 6  ;;  %v2472_v11 = vsel %vm749_vm2, %v2440_v9, %v2471_v37  ;;  %v2503_v42 = vrot.slane %v2464_v47, 4 }
 0x251   : > { %2033 = vperm.xlu1 %3774, %v2022_v20   ;;  %2027 = vperm.xlu2 %3775, %v2022_v20   ;;  %v2522_v57 = vsel %vm749_vm2, %v2521_v54, %v2255_v30  ;;  %v2175_v30 = vperm.slane %v2144_v13, 0  ;;  %v2499_v54 = vrot.slane %v2456_v7, 4  ;;  %v2488_v13 = vperm.slane %v2482_v14, %v4378_v44 }
 0x252   : > { %v5606_v58 = vpop.permute.xlu2 %1910 }
 0x253   : > { %v5611_v55 = vadd.f32 %v2175_v30, %v2097_v25  ;;  %v5615_v12 = vsel %vm749_vm2, %v2488_v13, %v2503_v42  ;;  %v2501_v36 = vrot.slane %v2488_v13, 4  ;;  %v5632_v42 = vperm.slane %v2522_v57, %v4328_v39  ;;  %v6689_v57 = vld [vmem:[#allocation44_spill] sm:$0xff] }
 0x254   : > { %6684 = vst [vmem:[#allocation30_spill] sm:$0xff] %v5615_v12  ;;  %v2776_v12 = vperm.slane %v5393_v26, %v4328_v39 }
 0x255   : > { %v5636_v46 = vsel %vm749_vm2, %v2501_v36, %v2464_v47  ;;  %v6690_v47 = vld [vmem:[#allocation47_spill] sm:$0xff]  ;;  %v2971_v36 = vrot.slane %v5521_v35, 4 }
 0x256   : > { %6688 = vst [vmem:[#allocation11_spill] sm:$0xff] %v5636_v46  ;;  %v2805_v26 = vrot.slane %v2776_v12, 4 }
 0x259   : > { %3776 = vset.pattern.permute.xlu1 %v4034_v29  ;;  %2040 = vperm.xlu2 %3775, %v6681_v33   ;;  %v1891_v20 = vpop.permute.xlu1 %1890  ;;  %v2480_v29 = vperm.slane %v2472_v11, %v4378_v44  ;;  %v2959_v33 = vrot.slane %v5495_v19, 4 }
 0x25a   : > { %v2098_v5 = vadd.f32 %v1891_v20, %v6683_v28  ;;  %v6686_v20 = vperm.slane %v6671_v50, 0  ;;  %v2509_v28 = vrot.slane %v5611_v55, 4 }
 0x25b   : > { %v2497_v37 = vrot.slane %v2480_v29, 4  ;;  %v5618_v6 = vsel %vm749_vm2, %v2480_v29, %v2499_v54  ;;  %v2147_v54 = vrot.slane %v6671_v50, 5 }
 0x25c   : > { %v2258_v9 = vadd.f32 %v2175_v30, %v2098_v5  ;;  %6685 = vst [vmem:[#allocation23_spill] sm:$0xff] %v5618_v6  ;;  %v5623_v11 = vadd.f32 %v6686_v20, %v2093_v0  ;;  %v5681_v6 = vperm.slane %v5585_v1, %v4378_v44  ;;  %v6700_v1 = vld [vmem:[#allocation45_spill] sm:$0xff] }
 0x25d   : > { %v5629_v30 = vsel %vm749_vm2, %v2497_v37, %v2456_v7 }
 0x25e   : > { %v2957_v14 = vrot.slane %v2258_v9, 4  ;;  %v5626_v25 = vsel %vm749_vm2, %v2258_v9, %v2959_v33  ;;  %v2510_v7 = vsel %vm749_vm2, %v2509_v28, %v5623_v11  ;;  %v2557_v33 = vrot.slane %v5632_v42, 4  ;;  %v6692_v28 = vld [vmem:[#allocation52_spill] sm:$0xff]  ;;  %6697 = vst [vmem:[#allocation25_spill] sm:$0xff] %v5681_v6 }
 0x25f   : > { %6687 = vst [vmem:[#allocation13_spill] sm:$0xff] %v5626_v25  ;;  %v2178_v9 = vperm.slane %v2147_v54, 0 }
 0x260   : > { %v5641_v0 = vsel %vm749_vm2, %v2957_v14, %v5495_v19  ;;  %v6691_v19 = vld [vmem:[#allocation26_spill] sm:$0xff] }
 0x261   : > { %2053 = vperm.xlu1 %3776, %v2048_v41   ;;  %3777 = vset.pattern.permute.xlu2 %v4114_v52  ;;  %v1904_v5 = vpop.permute.xlu1 %1903  ;;  %v2740_v14 = vperm.slane %v6691_v19, %v4328_v39  ;;  %v5654_v52 = vperm.slane %v2510_v7, %v4328_v39 }
 0x262   : > { %v2100_v29 = vadd.f32 %v1904_v5, %v6689_v57  ;;  %v1930_v13 = vpop.permute.xlu2 %1929  ;;  %v2752_v5 = vperm.slane %v6692_v28, %v4328_v39 }
 0x263   : > { %v2104_v37 = vadd.f32 %v1930_v13, %v6690_v47  ;;  %v6694_v13 = vld [vmem:[#allocation38_spill] sm:$0xff] }
 0x264   : > { %v2260_v20 = vadd.f32 %v5563_v16, %v2100_v29  ;;  %v2148_v16 = vrot.slane %v6671_v50, 6  ;;  %v5668_v29 = vsel %vm749_vm2, %v2557_v33, %v5654_v52  ;;  %v6695_v47 = vld [vmem:[#allocation50_spill] sm:$0xff] }
 0x265   : > { %v5656_v46 = vadd.f32 %v2178_v9, %v2104_v37  ;;  %v5676_v37 = vperm.slane %v6695_v47, %v4378_v44 }
 0x266   : > { %v2969_v57 = vrot.slane %v2260_v20, 4  ;;  %v5661_v54 = vsel %vm749_vm2, %v2260_v20, %v2971_v36  ;;  %v2783_v36 = vrot.slane %v2740_v14, 4  ;;  %v2781_v20 = vrot.slane %v2752_v5, 4 }
 0x267   : > { %6693 = vst [vmem:[#allocation24_spill] sm:$0xff] %v5661_v54  ;;  %v2179_v28 = vperm.slane %v2148_v16, 0  ;;  %v2983_v16 = vrot.slane %v5505_v40, 4 }
 0x268   : > { %v5672_v7 = vsel %vm749_vm2, %v2969_v57, %v5521_v35  ;;  %6696 = vst [vmem:[#allocation19_spill] sm:$0xff] %v5676_v37  ;;  %v2782_v33 = vsel %vm749_vm2, %v2781_v20, %v2740_v14  ;;  %v2149_v35 = vrot.slane %v6671_v50, 7  ;;  %v6698_v57 = vld [vmem:[#allocation29_spill] sm:$0xff] }
 0x269   : > { %3185 = vrot.lane.b32.xlu1 %v6694_v13, %s3847_s14  ;;  %2059 = vperm.xlu2 %3777, %v2048_v41   ;;  %v2495_v41 = vrot.slane %v5676_v37, 4  ;;  %v2764_v47 = vperm.slane %v6698_v57, %v4328_v39  ;;  %v6703_v57 = vld [vmem:[#allocation39_spill] sm:$0xff] }
 0x26a   : > { %v5700_v20 = vperm.slane %v2149_v35, 0  ;;  %v2483_v35 = vrot.slane %v5597_v45, 4  ;;  %v5730_v45 = vperm.slane %v5475_v59, %v4328_v39  ;;  %v6705_v59 = vld [vmem:[#allocation53_spill] sm:$0xff] }
 0x26b   : > { %v1943_v19 = vpop.permute.xlu2 %1942  ;;  %v2496_v50 = vsel %vm749_vm2, %v5681_v6, %v2495_v41 }
 0x26c   : > { %v2106_v13 = vadd.f32 %v1943_v19, %v5452_v10  ;;  %v2784_v10 = vsel %vm749_vm2, %v2752_v5, %v2783_v36  ;;  %v6699_v19 = vld [vmem:[#allocation31_spill] sm:$0xff]  ;;  %v2807_v36 = vrot.slane %v2764_v47, 4 }
 0x26d   : > { %v2107_v25 = vadd.f32 %v6700_v1, %v6699_v19  ;;  %v5708_v1 = vperm.slane %v2782_v33, %v4378_v44  ;;  %v2468_v33 = vperm.slane %v5518_v3, %v4378_v44 }
 0x26e   : > { %v2266_v54 = vadd.f32 %v2179_v28, %v2106_v13  ;;  %v2808_v41 = vsel %vm749_vm2, %v2776_v12, %v2807_v36 }
 0x26f   : > { %v2831_v36 = vrot.slane %v5708_v1, 4 }
 0x270   : > { %v2981_v31 = vrot.slane %v2266_v54, 4  ;;  %v5695_v14 = vsel %vm749_vm2, %v2266_v54, %v2983_v16  ;;  %v5711_v54 = vadd.f32 %v5700_v20, %v2107_v25  ;;  %v2852_v16 = vperm.slane %v5449_v24, %v4328_v39 }
 0x271   : > { %6701 = vst [vmem:[#allocation18_spill] sm:$0xff] %v5695_v14  ;;  %3187 = vrot.lane.b32.xlu2 %v2496_v50, %s3847_s14  ;;  %v1924_v5 = vpop.permute.xlu1 %1923  ;;  %v6704_v50 = vld [vmem:[#allocation8_spill] sm:$0xff]  ;;  %v2806_v25 = vsel %vm749_vm2, %v2805_v26, %v2764_v47  ;;  %v2864_v47 = vperm.slane %v5466_v2, %v4328_v39  ;;  %v6709_v2 = vld [vmem:[#allocation22_spill] sm:$0xff] }
 0x272   : > { %v5704_v13 = vsel %vm749_vm2, %v2981_v31, %v5505_v40  ;;  %v2103_v19 = vadd.f32 %v1924_v5, %v6703_v57  ;;  %v2101_v40 = vadd.f32 %v5606_v58, %v6704_v50  ;;  %v5720_v31 = vperm.slane %v2808_v41, %v4378_v44  ;;  %v6706_v57 = vld [vmem:[#allocation41_spill] sm:$0xff] }
 0x273   : > { %6702 = vst [vmem:[#allocation5_spill] sm:$0xff] %v5704_v13  ;;  %v5725_v5 = vperm.slane %v2784_v10, %v4378_v44  ;;  %v5736_v58 = vperm.slane %v2806_v25, %v4378_v44  ;;  %v2545_v3 = vrot.slane %v5711_v54, 4  ;;  %v5742_v10 = vperm.slane %v5440_v53, %v4328_v39 }
 0x274   : > { %v5732_v12 = vadd.f32 %v2178_v9, %v2103_v19  ;;  %v2833_v24 = vrot.slane %v5720_v31, 4  ;;  %v2756_v9 = vperm.slane %v6705_v59, %v4328_v39  ;;  %v2261_v26 = vadd.f32 %v5497_v43, %v2101_v40 }
 0x275   : > { %v2484_v19 = vsel %vm749_vm2, %v5581_v15, %v2483_v35  ;;  %v5759_v53 = vsel %vm749_vm2, %v5736_v58, %v2831_v36  ;;  %v2744_v50 = vperm.slane %v6709_v2, %v4328_v39  ;;  %v2895_v25 = vrot.slane %v2852_v16, 4  ;;  %v6710_v35 = vld [vmem:[#allocation15_spill] sm:$0xff] }
 0x276   : > { %v5755_v41 = vsel %vm749_vm2, %v2833_v24, %v5725_v5  ;;  %6708 = vst [vmem:[#allocation42_spill] sm:$0xff] %v5759_v53  ;;  %v2492_v43 = vperm.slane %v2484_v19, %v4378_v44  ;;  %v2507_v40 = vrot.slane %v2468_v33, 4  ;;  %v2546_v15 = vsel %vm749_vm2, %v2545_v3, %v5732_v12 }
 0x277   : > { %6707 = vst [vmem:[#allocation17_spill] sm:$0xff] %v5755_v41  ;;  %v2905_v41 = vrot.slane %v5730_v45, 4  ;;  %v5771_v36 = vperm.slane %v5575_v60, %v4328_v39  ;;  %v2893_v53 = vrot.slane %v2864_v47, 4  ;;  %v2535_v19 = vrot.slane %v2261_v26, 4 }
 0x278   : > { %v2505_v2 = vrot.slane %v2492_v43, 4  ;;  %v5774_v14 = vsel %vm749_vm2, %v2492_v43, %v2507_v40  ;;  %v2793_v37 = vrot.slane %v2756_v9, 4  ;;  %v2795_v3 = vrot.slane %v2744_v50, 4 }
 0x279   : > { %3201 = vrot.lane.b32.xlu2 %v6706_v57, %s3849_s16  ;;  %v1937_v59 = vpop.permute.xlu1 %1936  ;;  %v2511_v57 = vrot.slane %v5623_v11, 4  ;;  %6711 = vst [vmem:[#allocation20_spill] sm:$0xff] %v5774_v14  ;;  %v2906_v11 = vsel %vm749_vm2, %v2905_v41, %v5742_v10  ;;  %v2559_v41 = vrot.slane %v5654_v52, 4 }
 0x27a   : > { %v2105_v24 = vadd.f32 %v1937_v59, %v6710_v35  ;;  %v5779_v59 = vperm.slane %v2546_v15, %v4328_v39  ;;  %v2894_v35 = vsel %vm749_vm2, %v2893_v53, %v2852_v16  ;;  %v5783_v60 = vsel %vm749_vm2, %v2505_v2, %v2468_v33 }
 0x27b   : > { %6712 = vst [vmem:[#allocation9_spill] sm:$0xff] %v5783_v60  ;;  %v2512_v6 = vsel %vm749_vm2, %v5611_v55, %v2511_v57  ;;  %v2569_v15 = vrot.slane %v5771_v36, 4  ;;  %v2794_v16 = vsel %vm749_vm2, %v2793_v37, %v2744_v50  ;;  %v5798_v33 = vperm.slane %v5479_v17, %v4328_v39  ;;  %v5803_v53 = vpop.permute.xlu2 %1962 }
 0x27c   : > { %v2265_v13 = vadd.f32 %v2179_v28, %v2105_v24  ;;  %v2768_v28 = vperm.slane %v5463_v62, %v4328_v39  ;;  %v2896_v24 = vsel %vm749_vm2, %v2864_v47, %v2895_v25  ;;  %v2876_v55 = vperm.slane %v5512_v61, %v4328_v39 }
 0x27d   : > { %v5807_v62 = vperm.slane %v5668_v29, %v4378_v44  ;;  %v5810_v52 = vperm.slane %v2512_v6, %v4328_v39  ;;  %v2581_v37 = vrot.slane %v5779_v59, 4  ;;  %v5818_v17 = vsel %vm749_vm2, %v5632_v42, %v2559_v41 }
 0x27e   : > { %v2533_v43 = vrot.slane %v2265_v13, 4  ;;  %v5788_v40 = vsel %vm749_vm2, %v2265_v13, %v2535_v19  ;;  %v2796_v61 = vsel %vm749_vm2, %v2756_v9, %v2795_v3  ;;  %v5830_v50 = vperm.slane %v2894_v35, %v4378_v44 }
 0x27f   : > { %6713 = vst [vmem:[#allocation12_spill] sm:$0xff] %v5807_v62  ;;  %v5827_v6 = vsel %vm749_vm2, %v2569_v15, %v5810_v52  ;;  %v2888_v25 = vperm.slane %v5486_v34, %v4328_v39  ;;  %v5836_v42 = vperm.slane %v5502_v48, %v4328_v39  ;;  %v2907_v57 = vrot.slane %v5742_v10, 4 }
 0x280   : > { %v2534_v13 = vsel %vm749_vm2, %v2533_v43, %v2261_v26  ;;  %v2780_v26 = vperm.slane %v5402_v38, %v4328_v39  ;;  %v2607_v38 = vrot.slane %v5807_v62, 4  ;;  %v2929_v2 = vrot.slane %v5798_v33, 4 }
 0x281   : > { %v5814_v47 = vperm.slane %v2534_v13, %v4328_v39  ;;  %v2919_v19 = vrot.slane %v2876_v55, 4  ;;  %v2819_v3 = vrot.slane %v2768_v28, 4  ;;  %v2995_v35 = vrot.slane %v5656_v46, 4 }
 0x282   : > { %v2800_v43 = vperm.slane %v2794_v16, %v4378_v44  ;;  %v2804_v48 = vperm.slane %v2796_v61, %v4378_v44  ;;  %v2943_v41 = vrot.slane %v5830_v50, 4  ;;  %v5852_v15 = vperm.slane %v2906_v11, %v4378_v44 }
 0x283   : > { %v2582_v29 = vsel %vm749_vm2, %v2581_v37, %v5814_v47  ;;  %v2817_v10 = vrot.slane %v2780_v26, 4  ;;  %v2835_v13 = vrot.slane %v5725_v5, 4  ;;  %v2917_v37 = vrot.slane %v2888_v25, 4  ;;  %v5866_v5 = vpop.permute.xlu2 %1975 }
 0x284   : > { %v5839_v9 = vperm.slane %v2582_v29, %v4378_v44  ;;  %v2930_v29 = vsel %vm749_vm2, %v2929_v2, %v5836_v42  ;;  %v2820_v16 = vsel %vm749_vm2, %v2780_v26, %v2819_v3 }
 0x285   : > { %v2936_v61 = vperm.slane %v2930_v29, %v4378_v44  ;;  %v5863_v11 = vsel %vm749_vm2, %v5720_v31, %v2835_v13  ;;  %v2828_v60 = vperm.slane %v2820_v16, %v4378_v44  ;;  %v2918_v2 = vsel %vm749_vm2, %v2917_v37, %v2876_v55 }
 0x286   : > { %6714 = vst [vmem:[#allocation10_spill] sm:$0xff] %v5839_v9  ;;  %v2608_v34 = vsel %vm749_vm2, %v5839_v9, %v2607_v38  ;;  %v2904_v38 = vperm.slane %v2896_v24, %v4378_v44  ;;  %v2839_v24 = vrot.slane %v2800_v43, 4  ;;  %v2843_v9 = vrot.slane %v2804_v48, 4 }
 0x287   : > { %3189 = vrot.lane.b32.xlu0 %v2608_v34, %s3847_s14  ;;  %v2818_v34 = vsel %vm749_vm2, %v2817_v10, %v2768_v28  ;;  %v5871_v26 = vperm.slane %v2918_v2, %v4378_v44  ;;  %v2949_v3 = vrot.slane %v2936_v61, 4  ;;  %v2841_v10 = vrot.slane %v2828_v60, 4 }
 0x288   : > { %v2824_v28 = vperm.slane %v2818_v34, %v4378_v44  ;;  %v2920_v13 = vsel %vm749_vm2, %v2888_v25, %v2919_v19  ;;  %v5877_v29 = vsel %vm749_vm2, %v2828_v60, %v2843_v9  ;;  %v2947_v16 = vrot.slane %v2904_v38, 4 }
 0x289   : > { %v5886_v55 = vsel %vm749_vm2, %v2949_v3, %v5852_v15  ;;  %v2928_v37 = vperm.slane %v2920_v13, %v4378_v44  ;;  %v5902_v19 = vsel %vm749_vm2, %v2841_v10, %v2804_v48  ;;  %v2908_v2 = vsel %vm749_vm2, %v5730_v45, %v2907_v57  ;;  %v6715_v57 = vld [vmem:[#allocation40_spill] sm:$0xff] }
 0x28a   : > { %v5893_v60 = vsel %vm749_vm2, %v2824_v28, %v2839_v24  ;;  %v2181_v48 = vperm.slane %v6673_v49, 0 }
 0x28b   : > { %v1956_v14 = vpop.permute.xlu1 %1955  ;;  %v2945_v25 = vrot.slane %v2928_v37, 4  ;;  %v5899_v9 = vsel %vm749_vm2, %v2928_v37, %v2947_v16 }
 0x28c   : > { %v2108_v62 = vadd.f32 %v1956_v14, %v5471_v27  ;;  %v2829_v27 = vrot.slane %v5736_v58, 4  ;;  %v5882_v14 = vsel %vm749_vm2, %v5871_v26, %v2943_v41  ;;  %v2151_v58 = vrot.slane %v6673_v49, 2 }
 0x28d   : > { %v5918_v3 = vsel %vm749_vm2, %v2945_v25, %v2904_v38  ;;  %v2951_v25 = vrot.slane %v5852_v15, 4 }
 0x28e   : > { %v2268_v31 = vadd.f32 %v5700_v20, %v2108_v62  ;;  %v2837_v62 = vrot.slane %v2824_v28, 4  ;;  %v2183_v10 = vperm.slane %v2151_v58, 0  ;;  %v2109_v58 = vadd.f32 %v5803_v53, %v5397_v22 }
 0x28f   : > { %3203 = vrot.lane.b32.xlu0 %v5629_v30, %s3849_s16  ;;  %v5915_v30 = vsel %vm749_vm2, %v2829_v27, %v5708_v1  ;;  %v2152_v1 = vrot.slane %v6673_v49, 3  ;;  %v2931_v27 = vrot.slane %v5836_v42, 4  ;;  %v2941_v22 = vrot.slane %v5871_v26, 4 }
 0x290   : > { %v2993_v34 = vrot.slane %v2268_v31, 4  ;;  %v5890_v20 = vsel %vm749_vm2, %v2268_v31, %v2995_v35  ;;  %v5909_v41 = vsel %vm749_vm2, %v2837_v62, %v2800_v43  ;;  %v2571_v53 = vrot.slane %v5810_v52, 4 }
 0x291   : > { %v2932_v42 = vsel %vm749_vm2, %v5798_v33, %v2931_v27  ;;  %v2269_v15 = vadd.f32 %v2181_v48, %v2109_v58  ;;  %v5968_v26 = vsel %vm749_vm2, %v2941_v22, %v5830_v50  ;;  %v6716_v58 = vld [vmem:[#allocation36_spill] sm:$0xff] }
 0x292   : > { %v5906_v35 = vsel %vm749_vm2, %v2993_v34, %v5656_v46  ;;  %v2184_v34 = vperm.slane %v2152_v1, 0  ;;  %v5961_v1 = vsel %vm749_vm2, %v5771_v36, %v2571_v53 }
 0x293   : > { %v1969_v24 = vpop.permute.xlu1 %1968  ;;  %v1995_v46 = vpop.permute.xlu2 %1994 }
 0x294   : > { %v2110_v28 = vadd.f32 %v1969_v24, %v5568_v21  ;;  %v2114_v43 = vadd.f32 %v1995_v46, %v5558_v32  ;;  %v2916_v32 = vperm.slane %v2908_v2, %v4378_v44  ;;  %v3083_v24 = vrot.slane %v5527_v56, 4 }
 0x295   : > { %v2940_v46 = vperm.slane %v2932_v42, %v4378_v44 }
 0x296   : > { %v2270_v31 = vadd.f32 %v2181_v48, %v2110_v28  ;;  %v2274_v13 = vadd.f32 %v2183_v10, %v2114_v43  ;;  %v2955_v43 = vrot.slane %v2916_v32, 4  ;;  %v2623_v48 = vrot.slane %v2269_v15, 4 }
 0x297   : > { %3217 = vrot.lane.b32.xlu0 %v6715_v57, %s3851_s19 }
 0x298   : > { %v3071_v37 = vrot.slane %v2270_v31, 4  ;;  %v3069_v45 = vrot.slane %v2274_v13, 4 }
 0x29a   : > { %v5927_v38 = vsel %vm749_vm2, %v2274_v13, %v3071_v37  ;;  %v5931_v21 = vsel %vm749_vm2, %v3069_v45, %v2270_v31  ;;  %v5943_v31 = vsel %vm749_vm2, %v2936_v61, %v2951_v25  ;;  %v5951_v13 = vsel %vm749_vm2, %v2940_v46, %v2955_v43 }
 0x29b   : > { %v2008_v16 = vpop.permute.xlu2 %2007  ;;  %v2953_v37 = vrot.slane %v2940_v46, 4  ;;  %v2547_v61 = vrot.slane %v5732_v12, 4  ;;  %v2155_v43 = vrot.slane %v6673_v49, 6 }
 0x29c   : > { %v2116_v62 = vadd.f32 %v2008_v16, %v5550_v51 }
 0x29d   : > { %v5964_v52 = vsel %vm749_vm2, %v2953_v37, %v2916_v32  ;;  %v2548_v12 = vsel %vm749_vm2, %v5711_v54, %v2547_v61  ;;  %v5988_v54 = vperm.slane %v5788_v40, %v4328_v39  ;;  %v2047_v37 = vpop.permute.xlu0 %2046  ;;  %v2568_v61 = vperm.slane %v5818_v17, %v4378_v44 }
 0x29e   : > { %v2276_v28 = vadd.f32 %v2184_v34, %v2116_v62  ;;  %v5980_v62 = vperm.slane %v2548_v12, %v4328_v39  ;;  %v6719_v12 = vld [vmem:[#allocation6_spill] sm:$0xff] }
 0x2a0   : > { %v3081_v2 = vrot.slane %v2276_v28, 4  ;;  %v5946_v51 = vsel %vm749_vm2, %v2276_v28, %v3083_v24  ;;  %v6717_v28 = vld [vmem:[#allocation43_spill] sm:$0xff]  ;;  %v2593_v46 = vrot.slane %v5980_v62, 4 }
 0x2a2   : > { %v5955_v33 = vsel %vm749_vm2, %v3081_v2, %v5527_v56  ;;  %v2111_v56 = vadd.f32 %v5866_v5, %v5385_v4  ;;  %v2153_v4 = vrot.slane %v6673_v49, 4  ;;  %v2594_v40 = vsel %vm749_vm2, %v2593_v46, %v5988_v54 }
 0x2a3   : > { %v1989_v45 = vpop.permute.xlu1 %1988 }
 0x2a4   : > { %v2113_v57 = vadd.f32 %v1989_v45, %v5411_v8  ;;  %v2271_v36 = vadd.f32 %v5523_v63, %v2111_v56  ;;  %v6718_v63 = vld [vmem:[#allocation49_spill] sm:$0xff]  ;;  %v2185_v53 = vperm.slane %v2153_v4, 0  ;;  %v6002_v45 = vperm.slane %v2594_v40, %v4378_v44 }
 0x2a5   : > { %v2117_v42 = vadd.f32 %v6718_v63, %v6717_v28  ;;  %v2611_v4 = vrot.slane %v2568_v61, 4 }
 0x2a6   : > { %v2273_v27 = vadd.f32 %v2183_v10, %v2113_v57  ;;  %v2635_v5 = vrot.slane %v2271_v36, 4 }
 0x2a7   : > { %v2277_v57 = vadd.f32 %v2185_v53, %v2117_v42 }
 0x2a8   : > { %v2621_v8 = vrot.slane %v2273_v27, 4  ;;  %v5975_v16 = vsel %vm749_vm2, %v2273_v27, %v2623_v48  ;;  %v2187_v48 = vperm.slane %v2155_v43, 0  ;;  %v6008_v27 = vperm.slane %v5827_v6, %v4378_v44 }
 0x2aa   : > { %v2622_v32 = vsel %vm749_vm2, %v2621_v8, %v2269_v15  ;;  %v2583_v15 = vrot.slane %v5814_v47, 4  ;;  %v2613_v47 = vrot.slane %v6002_v45, 4  ;;  %v2122_v8 = vadd.f32 %v2047_v37, %v6719_v12 }
 0x2ab   : > { %v2002_v50 = vpop.permute.xlu1 %2001  ;;  %v5983_v24 = vpop.permute.xlu2 %2027  ;;  %v2628_v17 = vperm.slane %v2622_v32, %v4328_v39 }
 0x2ac   : > { %v2115_v25 = vadd.f32 %v2002_v50, %v6716_v58  ;;  %v2584_v58 = vsel %vm749_vm2, %v5779_v59, %v2583_v15  ;;  %v2282_v42 = vadd.f32 %v2187_v48, %v2122_v8 }
 0x2ad   : > { %v2592_v6 = vperm.slane %v2584_v58, %v4378_v44  ;;  %v2671_v43 = vrot.slane %v2628_v17, 4 }
 0x2ae   : > { %v2275_v10 = vadd.f32 %v2184_v34, %v2115_v25  ;;  %v6020_v25 = vsel %vm749_vm2, %v2613_v47, %v6008_v27  ;;  %v3093_v12 = vrot.slane %v2282_v42, 4 }
 0x2af   : > { %v6027_v63 = vsel %vm749_vm2, %v2592_v6, %v2611_v4 }
 0x2b0   : > { %v2633_v2 = vrot.slane %v2275_v10, 4  ;;  %v5995_v22 = vsel %vm749_vm2, %v2275_v10, %v2635_v5  ;;  %v2647_v5 = vrot.slane %v2277_v57, 4  ;;  %v2964_v10 = vperm.slane %v5641_v0, %v4328_v39 }
 0x2b2   : > { %v2634_v34 = vsel %vm749_vm2, %v2633_v2, %v2271_v36  ;;  %v2976_v36 = vperm.slane %v5672_v7, %v4328_v39  ;;  %v3007_v15 = vrot.slane %v2964_v10, 4 }
 0x2b3   : > { %v2041_v56 = vpop.permute.xlu2 %2040  ;;  %v2640_v7 = vperm.slane %v2634_v34, %v4328_v39 }
 0x2b4   : > { %v2121_v50 = vadd.f32 %v2041_v56, %v5455_v23  ;;  %v2609_v23 = vrot.slane %v2592_v6, 4  ;;  %v3005_v46 = vrot.slane %v2976_v36, 4  ;;  %v6039_v47 = vsel %vm749_vm2, %v2976_v36, %v3007_v15  ;;  %v6723_v15 = vld [vmem:[#allocation24_spill] sm:$0xff] }
 0x2b5   : > { %v6036_v34 = vsel %vm749_vm2, %v2640_v7, %v2671_v43  ;;  %v2669_v56 = vrot.slane %v2640_v7, 4  ;;  %v6721_v7 = vld [vmem:[#allocation28_spill] sm:$0xff] }
 0x2b6   : > { %v2281_v28 = vadd.f32 %v2187_v48, %v2121_v50  ;;  %v6031_v2 = vsel %vm749_vm2, %v2609_v23, %v2568_v61  ;;  %v6042_v8 = vsel %vm749_vm2, %v3005_v46, %v2964_v10  ;;  %v2154_v61 = vrot.slane %v6673_v49, 5  ;;  %v6722_v46 = vld [vmem:[#allocation13_spill] sm:$0xff] }
 0x2b7   : > { %v2670_v58 = vsel %vm749_vm2, %v2669_v56, %v2628_v17  ;;  %v2968_v43 = vperm.slane %v6722_v46, %v4328_v39  ;;  %v6724_v17 = vld [vmem:[#allocation25_spill] sm:$0xff] }
 0x2b8   : > { %v2645_v59 = vrot.slane %v2281_v28, 4  ;;  %v2648_v32 = vsel %vm749_vm2, %v2281_v28, %v2647_v5  ;;  %v2186_v4 = vperm.slane %v2154_v61, 0  ;;  %v6720_v5 = vld [vmem:[#allocation37_spill] sm:$0xff] }
 0x2ba   : > { %v2646_v40 = vsel %vm749_vm2, %v2645_v59, %v2277_v57 }
 0x2bb   : > { %v2021_v0 = vpop.permute.xlu1 %2020 }
 0x2bc   : > { %v2118_v37 = vadd.f32 %v2021_v0, %v5561_v18  ;;  %v2156_v18 = vrot.slane %v6673_v49, 7  ;;  %v2980_v49 = vperm.slane %v6723_v15, %v4328_v39  ;;  %v2595_v15 = vrot.slane %v5988_v54, 4 }
 0x2bd   : > { %v2632_v54 = vperm.slane %v5975_v16, %v4328_v39 }
 0x2be   : > { %v2278_v48 = vadd.f32 %v2185_v53, %v2118_v37  ;;  %v2188_v10 = vperm.slane %v2156_v18, 0  ;;  %v2493_v37 = vrot.slane %v6724_v17, 4  ;;  %v3017_v61 = vrot.slane %v2980_v49, 4 }
 0x2c0   : > { %v6046_v50 = vsel %vm749_vm2, %v3093_v12, %v2278_v48  ;;  %v3095_v57 = vrot.slane %v2278_v48, 4  ;;  %v3019_v48 = vrot.slane %v2968_v43, 4  ;;  %v6077_v46 = vsel %vm749_vm2, %v3017_v61, %v2968_v43 }
 0x2c2   : > { %v6051_v6 = vsel %vm749_vm2, %v2282_v42, %v3095_v57 }
 0x2c3   : > { %v2034_v36 = vpop.permute.xlu1 %2033  ;;  %v2060_v28 = vpop.permute.xlu2 %2059 }
 0x2c4   : > { %v2120_v53 = vadd.f32 %v2034_v36, %v6720_v5  ;;  %v2124_v23 = vadd.f32 %v2060_v28, %v6721_v7  ;;  %v6725_v36 = vld [vmem:[#allocation19_spill] sm:$0xff]  ;;  %v6072_v28 = vsel %vm749_vm2, %v2980_v49, %v3019_v48  ;;  %v6726_v7 = vld [vmem:[#allocation21_spill] sm:$0xff]  ;;  %v2596_v49 = vsel %vm749_vm2, %v5980_v62, %v2595_v15 }
 0x2c5   : > { %v2494_v5 = vsel %vm749_vm2, %v2493_v37, %v6725_v36  ;;  %v2615_v37 = vrot.slane %v6008_v27, 4  ;;  %v2604_v48 = vperm.slane %v2596_v49, %v4378_v44  ;;  %v2652_v27 = vperm.slane %v2646_v40, %v4328_v39 }
 0x2c6   : > { %v2280_v59 = vadd.f32 %v2186_v4, %v2120_v53  ;;  %v2284_v0 = vadd.f32 %v2188_v10, %v2124_v23  ;;  %v2119_v23 = vadd.f32 %v5983_v24, %v6726_v7  ;;  %v2644_v36 = vperm.slane %v5995_v22, %v4328_v39 }
 0x2c7   : > { %v6089_v43 = vsel %vm749_vm2, %v6002_v45, %v2615_v37  ;;  %v2617_v62 = vrot.slane %v2604_v48, 4  ;;  %v3000_v7 = vperm.slane %v5906_v35, %v4328_v39  ;;  %v2680_v15 = vperm.slane %v6036_v34, %v4378_v44  ;;  %v6728_v34 = vld [vmem:[#allocation5_spill] sm:$0xff] }
 0x2c8   : > { %v3107_v42 = vrot.slane %v2280_v59, 4  ;;  %v3105_v56 = vrot.slane %v2284_v0, 4  ;;  %v2681_v37 = vrot.slane %v2644_v36, 4 }
 0x2ca   : > { %v6061_v12 = vsel %vm749_vm2, %v2284_v0, %v3107_v42  ;;  %v6064_v57 = vsel %vm749_vm2, %v3105_v56, %v2280_v59  ;;  %v2580_v59 = vperm.slane %v5961_v1, %v4378_v44  ;;  %v2279_v0 = vadd.f32 %v2186_v4, %v2119_v23  ;;  %v6727_v42 = vld [vmem:[#allocation7_spill] sm:$0xff] }
 0x2cb   : > { %v3188_v18 = vpop.permute.xlu2 %3187  ;;  %v2656_v4 = vperm.slane %v2648_v32, %v4328_v39 }
 0x2cc   : > { %v6069_v53 = vsel %vm3405_vm3, %v2494_v5, %v3188_v18  ;;  %v2619_v24 = vrot.slane %v2580_v59, 4  ;;  %v2659_v1 = vrot.slane %v2279_v0, 4  ;;  %v6105_v32 = vsel %vm749_vm2, %v2617_v62, %v2580_v59 }
 0x2cd   : > { %v2707_v40 = vrot.slane %v2656_v4, 4  ;;  %v2723_v62 = vrot.slane %v2680_v15, 4 }
 0x2ce   : > { %v6096_v18 = vsel %vm749_vm2, %v2604_v48, %v2619_v24  ;;  %v2988_v24 = vperm.slane %v6728_v34, %v4328_v39 }
 0x2d3   : > { %v2054_v17 = vpop.permute.xlu1 %2053 }
 0x2d4   : > { %v2123_v56 = vadd.f32 %v2054_v17, %v6727_v42  ;;  %v2695_v17 = vrot.slane %v2652_v27, 4  ;;  %v6112_v42 = vperm.slane %v2670_v58, %v4378_v44 }
 0x2d6   : > { %v2283_v61 = vadd.f32 %v2188_v10, %v2123_v56  ;;  %v2683_v10 = vrot.slane %v2632_v54, 4 }
 0x2d8   : > { %v2657_v5 = vrot.slane %v2283_v61, 4  ;;  %v2660_v45 = vsel %vm749_vm2, %v2283_v61, %v2659_v1  ;;  %v2684_v35 = vsel %vm749_vm2, %v2644_v36, %v2683_v10  ;;  %v3029_v1 = vrot.slane %v3000_v7, 4 }
 0x2d9   : > { %v2668_v16 = vperm.slane %v2660_v45, %v4328_v39  ;;  %v6125_v36 = vperm.slane %v2684_v35, %v4378_v44  ;;  %v3016_v45 = vperm.slane %v6039_v47, %v4378_v44  ;;  %v6144_v47 = vperm.slane %v6042_v8, %v4378_v44 }
 0x2da   : > { %v2658_v23 = vsel %vm749_vm2, %v2657_v5, %v2279_v0 }
 0x2db   : > { %v2664_v22 = vperm.slane %v2658_v23, %v4328_v39  ;;  %v2708_v56 = vsel %vm749_vm2, %v2668_v16, %v2707_v40  ;;  %v2705_v59 = vrot.slane %v2668_v16, 4  ;;  %v2719_v40 = vrot.slane %v6112_v42, 4 }
 0x2dc   : > { %v6118_v0 = vperm.slane %v2708_v56, %v4378_v44  ;;  %v3059_v34 = vrot.slane %v3016_v45, 4 }
 0x2dd   : > { %v2696_v49 = vsel %vm749_vm2, %v2664_v22, %v2695_v17  ;;  %v2693_v48 = vrot.slane %v2664_v22, 4  ;;  %v2682_v22 = vsel %vm749_vm2, %v2681_v37, %v2632_v54  ;;  %v2706_v17 = vsel %vm749_vm2, %v2705_v59, %v2656_v4 }
 0x2de   : > { %v2704_v61 = vperm.slane %v2696_v49, %v4378_v44  ;;  %v2729_v5 = vrot.slane %v6118_v0, 4  ;;  %v2688_v49 = vperm.slane %v2682_v22, %v4378_v44  ;;  %v2712_v54 = vperm.slane %v2706_v17, %v4378_v44 }
 0x2df   : > { %v2694_v58 = vsel %vm749_vm2, %v2693_v48, %v2652_v27  ;;  %v3031_v48 = vrot.slane %v2988_v24, 4  ;;  %v3004_v17 = vperm.slane %v5890_v20, %v4328_v39  ;;  %v3024_v20 = vperm.slane %v6077_v46, %v4378_v44 }
 0x2e0   : > { %v2724_v16 = vsel %vm749_vm2, %v2704_v61, %v2723_v62  ;;  %v6132_v10 = vperm.slane %v2694_v58, %v4378_v44  ;;  %v2721_v23 = vrot.slane %v2704_v61, 4  ;;  %v6138_v27 = vsel %vm749_vm2, %v2729_v5, %v6125_v36 }
 0x2e1   : > { %3223 = vrot.lane.b32.xlu0 %v2724_v16, %s3851_s19  ;;  %v2727_v37 = vrot.slane %v2688_v49, 4  ;;  %v3032_v4 = vsel %vm749_vm2, %v3000_v7, %v3031_v48  ;;  %v2725_v59 = vrot.slane %v2712_v54, 4  ;;  %v3055_v62 = vrot.slane %v6144_v47, 4 }
 0x2e2   : > { %v2720_v35 = vsel %vm749_vm2, %v6132_v10, %v2719_v40  ;;  %v2722_v56 = vsel %vm749_vm2, %v2721_v23, %v2680_v15  ;;  %v3040_v8 = vperm.slane %v3032_v4, %v4378_v44  ;;  %v3030_v15 = vsel %vm749_vm2, %v3029_v1, %v2988_v24 }
 0x2e3   : > { %3191 = vrot.lane.b32.xlu1 %v2720_v35, %s3847_s14  ;;  %3207 = vrot.lane.b32.xlu2 %v2722_v56, %s3849_s16  ;;  %v6156_v61 = vsel %vm749_vm2, %v2712_v54, %v2727_v37  ;;  %v2726_v58 = vsel %vm749_vm2, %v2725_v59, %v2688_v49  ;;  %v3036_v16 = vperm.slane %v3030_v15, %v4378_v44  ;;  %v3041_v49 = vrot.slane %v3004_v17, 4 }
 0x2e4   : > { %v6162_v5 = vsel %vm749_vm2, %v3040_v8, %v3059_v34  ;;  %v3057_v40 = vrot.slane %v3040_v8, 4  ;;  %v3076_v24 = vperm.slane %v5931_v21, %v4328_v39  ;;  %v3088_v1 = vperm.slane %v5955_v33, %v4328_v39  ;;  %v6731_v21 = vld [vmem:[#allocation23_spill] sm:$0xff]  ;;  %v6733_v8 = vld [vmem:[#allocation10_spill] sm:$0xff] }
 0x2e5   : > { %v6168_v7 = vsel %vm749_vm2, %v3036_v16, %v3055_v62  ;;  %v6732_v33 = vld [vmem:[#allocation11_spill] sm:$0xff]  ;;  %v3100_v54 = vperm.slane %v6046_v50, %v4328_v39  ;;  %v2605_v34 = vrot.slane %v6733_v8, 4  ;;  %v3112_v15 = vperm.slane %v6064_v57, %v4328_v39  ;;  %v6735_v57 = vld [vmem:[#allocation12_spill] sm:$0xff] }
 0x2e6   : > { %v6171_v23 = vsel %vm749_vm2, %v3057_v40, %v3016_v45  ;;  %v6730_v45 = vld [vmem:[#allocation30_spill] sm:$0xff]  ;;  %v3117_v35 = vrot.slane %v3088_v1, 4 }
 0x2e9   : > { %3237 = vrot.lane.b32.xlu0 %v6020_v25, %s3846_s13  ;;  %v6729_v25 = vld [vmem:[#allocation18_spill] sm:$0xff] }
 0x2ea   : > { %v2992_v22 = vperm.slane %v6729_v25, %v4328_v39  ;;  %v3143_v25 = vrot.slane %v3100_v54, 4 }
 0x2eb   : > { %3205 = vrot.lane.b32.xlu1 %v6031_v2, %s3849_s16  ;;  %3221 = vrot.lane.b32.xlu2 %v6027_v63, %s3851_s19  ;;  %v3119_v2 = vrot.slane %v3076_v24, 4  ;;  %v3028_v63 = vperm.slane %v6072_v28, %v4378_v44  ;;  %v3118_v28 = vsel %vm749_vm2, %v3117_v35, %v3076_v24  ;;  %v6734_v24 = vld [vmem:[#allocation48_spill] sm:$0xff] }
 0x2ec   : > { %v3043_v56 = vrot.slane %v2992_v22, 4  ;;  %v3042_v62 = vsel %vm749_vm2, %v3041_v49, %v2992_v22  ;;  %v2606_v22 = vsel %vm749_vm2, %v2605_v34, %v6735_v57  ;;  %v6737_v49 = vld [vmem:[#allocation51_spill] sm:$0xff] }
 0x2ed   : > { %v3120_v48 = vsel %vm749_vm2, %v3088_v1, %v3119_v2  ;;  %v3067_v59 = vrot.slane %v3028_v63, 4  ;;  %v3048_v46 = vperm.slane %v3042_v62, %v4378_v44  ;;  %v3063_v1 = vrot.slane %v3024_v20, 4 }
 0x2ee   : > { %v3044_v37 = vsel %vm749_vm2, %v3004_v17, %v3043_v56  ;;  %v6736_v56 = vld [vmem:[#allocation27_spill] sm:$0xff]  ;;  %v3128_v8 = vperm.slane %v3120_v48, %v4378_v44 }
 0x2ef   : > { %v3052_v4 = vperm.slane %v3044_v37, %v4378_v44  ;;  %v6215_v35 = vsel %vm749_vm2, %v3048_v46, %v3063_v1 }
 0x2f1   : > { %3251 = vrot.lane.b32.xlu0 %v6730_v45, %s3848_s15  ;;  %v3065_v40 = vrot.slane %v3052_v4, 4  ;;  %v6207_v50 = vsel %vm749_vm2, %v3052_v4, %v3067_v59  ;;  %v3061_v45 = vrot.slane %v3048_v46, 4  ;;  %v3053_v4 = vrot.slane %v3036_v16, 4 }
 0x2f2   : > { %v3080_v59 = vperm.slane %v5927_v38, %v4328_v39  ;;  %v3141_v46 = vrot.slane %v3112_v15, 4  ;;  %v2731_v38 = vrot.slane %v6125_v36, 4 }
 0x2f3   : > { %3219 = vrot.lane.b32.xlu1 %v6731_v21, %s3851_s19  ;;  %3235 = vrot.lane.b32.xlu2 %v6732_v33, %s3846_s13  ;;  %v6212_v17 = vsel %vm749_vm2, %v3065_v40, %v3028_v63  ;;  %v3144_v21 = vsel %vm749_vm2, %v3112_v15, %v3143_v25  ;;  %v6229_v37 = vsel %vm749_vm2, %v3061_v45, %v3024_v20  ;;  %v6742_v45 = vld [vmem:[#allocation42_spill] sm:$0xff] }
 0x2f4   : > { %v3152_v63 = vperm.slane %v3144_v21, %v4378_v44  ;;  %v6236_v62 = vsel %vm749_vm2, %v3053_v4, %v6144_v47  ;;  %v3092_v40 = vperm.slane %v5946_v51, %v4328_v39  ;;  %v3124_v20 = vperm.slane %v3118_v28, %v4378_v44 }
 0x2f5   : > { %v3131_v16 = vrot.slane %v3080_v59, 4  ;;  %v2732_v51 = vsel %vm749_vm2, %v6118_v0, %v2731_v38  ;;  %v3142_v15 = vsel %vm749_vm2, %v3141_v46, %v3100_v54  ;;  %v6739_v0 = vld [vmem:[#allocation20_spill] sm:$0xff] }
 0x2f6   : > { %v3169_v34 = vrot.slane %v3152_v63, 4  ;;  %v3129_v48 = vrot.slane %v3092_v40, 4  ;;  %v3148_v36 = vperm.slane %v3142_v15, %v4378_v44 }
 0x2f7   : > { %v3132_v25 = vsel %vm749_vm2, %v3092_v40, %v3131_v16  ;;  %v3202_v40 = vpop.permute.xlu2 %3201 }
 0x2f8   : > { %v3170_v1 = vsel %vm749_vm2, %v3169_v34, %v3128_v8  ;;  %v3140_v21 = vperm.slane %v3132_v25, %v4378_v44  ;;  %v6743_v25 = vld [vmem:[#allocation16_spill] sm:$0xff] }
 0x2f9   : > { %3265 = vrot.lane.b32.xlu0 %v6734_v24, %s3850_s18  ;;  %v3190_v2 = vpop.permute.xlu0 %3189  ;;  %v3130_v24 = vsel %vm749_vm2, %v3129_v48, %v3080_v59 }
 0x2fa   : > { %v6225_v33 = vsel %vm3405_vm3, %v2606_v22, %v3190_v2  ;;  %v3171_v2 = vrot.slane %v3128_v8, 4  ;;  %v3179_v8 = vrot.slane %v3140_v21, 4 }
 0x2fb   : > { %3233 = vrot.lane.b32.xlu1 %v6736_v56, %s3846_s13  ;;  %3249 = vrot.lane.b32.xlu2 %v6737_v49, %s3848_s15 }
 0x2fc   : > { %v3172_v49 = vsel %vm749_vm2, %v3152_v63, %v3171_v2 }
 0x301   : > { %3271 = vrot.lane.b32.xlu0 %v6138_v27, %s3850_s18  ;;  %v3204_v47 = vpop.permute.xlu0 %3203  ;;  %v3167_v27 = vrot.slane %v3124_v20, 4 }
 0x302   : > { %v6253_v28 = vsel %vm3410_vm4, %v6069_v53, %v3204_v47  ;;  %v6738_v53 = vld [vmem:[#allocation9_spill] sm:$0xff] }
 0x303   : > { %3239 = vrot.lane.b32.xlu1 %v2726_v58, %s3846_s13  ;;  %3255 = vrot.lane.b32.xlu2 %v6156_v61, %s3848_s15  ;;  %v3168_v58 = vsel %vm749_vm2, %v3148_v36, %v3167_v27  ;;  %v3116_v61 = vperm.slane %v6061_v12, %v4328_v39 }
 0x305   : > { %v3153_v54 = vrot.slane %v3116_v61, 4 }
 0x309   : > { %3285 = vrot.lane.b32.xlu0 %v6096_v18, %s3845_s12  ;;  %v6740_v18 = vld [vmem:[#allocation17_spill] sm:$0xff] }
 0x30b   : > { %3253 = vrot.lane.b32.xlu1 %v6089_v43, %s3848_s15  ;;  %3269 = vrot.lane.b32.xlu2 %v6105_v32, %s3850_s18  ;;  %v3136_v43 = vperm.slane %v3130_v24, %v4378_v44  ;;  %v3104_v32 = vperm.slane %v6051_v6, %v4328_v39 }
 0x30d   : > { %v3154_v57 = vsel %vm749_vm2, %v3153_v54, %v3104_v32  ;;  %v3175_v12 = vrot.slane %v3136_v43, 4  ;;  %v3155_v4 = vrot.slane %v3104_v32, 4 }
 0x30e   : > { %v3160_v22 = vperm.slane %v3154_v57, %v4378_v44 }
 0x30f   : > { %v3156_v63 = vsel %vm749_vm2, %v3116_v61, %v3155_v4 }
 0x310   : > { %v3176_v56 = vsel %vm749_vm2, %v3160_v22, %v3175_v12  ;;  %v3173_v39 = vrot.slane %v3160_v22, 4  ;;  %v3164_v59 = vperm.slane %v3156_v63, %v4378_v44  ;;  %v3854_v44 = vmov 0   ;;  %v3471_v12 = vld [vmem:[%s6479_s5 + $0x18] sm:$0xff] }
 0x311   : > { %3299 = vrot.lane.b32.xlu0 %v5882_v14, %s3847_s14  ;;  %v6741_v14 = vld [vmem:[#allocation54_spill] sm:$0xff]  ;;  %3780 = vset.pattern.permute.xlu2 %v3854_v44 }
 0x312   : > { %v3174_v6 = vsel %vm749_vm2, %v3173_v39, %v3136_v43  ;;  %v3177_v34 = vrot.slane %v3164_v59, 4  ;;  %3778 = vset.pattern.permute.xlu0 %v3854_v44  ;;  %3779 = vset.pattern.permute.xlu1 %v3854_v44  ;;  %v3469_v43 = vld [vmem:[%s6479_s5 + $0x8] sm:$0xff] }
 0x313   : > { %3267 = vrot.lane.b32.xlu1 %v6738_v53, %s3850_s18  ;;  %3283 = vrot.lane.b32.xlu2 %v6739_v0, %s3845_s12 }
 0x319   : > { %3313 = vrot.lane.b32.xlu0 %v6740_v18, %s3849_s16 }
 0x31b   : > { %3281 = vrot.lane.b32.xlu1 %v6741_v14, %s3845_s12  ;;  %3297 = vrot.lane.b32.xlu2 %v6742_v45, %s3847_s14 }
 0x321   : > { %3319 = vrot.lane.b32.xlu0 %v3170_v1, %s3849_s16 }
 0x323   : > { %3287 = vrot.lane.b32.xlu1 %v2732_v51, %s3845_s12  ;;  %3303 = vrot.lane.b32.xlu2 %v3168_v58, %s3847_s14 }
 0x329   : > { %3333 = vrot.lane.b32.xlu0 %v6162_v5, %s3851_s19  ;;  %v3180_v5 = vsel %vm749_vm2, %v3164_v59, %v3179_v8 }
 0x32b   : > { %3301 = vrot.lane.b32.xlu1 %v6168_v7, %s3847_s14  ;;  %3317 = vrot.lane.b32.xlu2 %v6171_v23, %s3849_s16  ;;  %v3178_v7 = vsel %vm749_vm2, %v3177_v34, %v3140_v21  ;;  %v3165_v23 = vrot.slane %v3148_v36, 4 }
 0x32d   : > { %v6308_v46 = vsel %vm749_vm2, %v3165_v23, %v3124_v20 }
 0x331   : > { %3347 = vrot.lane.b32.xlu0 %v5886_v55, %s3846_s13 }
 0x333   : > { %3315 = vrot.lane.b32.xlu1 %v5918_v3, %s3849_s16  ;;  %3331 = vrot.lane.b32.xlu2 %v5899_v9, %s3851_s19  ;;  %v3218_v3 = vpop.permute.xlu0 %3217  ;;  %s3666_s16 = sshll.u32 %s3912_s25, 6 }
 0x334   : > { %s3520_s20 = scalar_lea.hbm %s6480_s6, %s3666_s16 }
 0x335   : > { %s3523_s28 = sshll.u32 %s3520_s20, 4  ;;  %s3524_s28 = int_to_ptr.hbm [resolvable:$true] %s3523_s28 }
 0x336   : > { %s3795_s29 = sshra.s32 %s3524_s28, 4  ;;  %s3796_s29 = int_to_ptr.hbm [resolvable:$true] %s3795_s29 }
 0x337   : > { %s3797_s9 = scalar_lea.hbm %s3796_s29, 64  ;;  %p3802_p0 = scmp.lt.s32.totalorder %s3796_s29, %s6480_s6 }
 0x338   : > { %p3798_p11 = scmp.ne.s32.totalorder %s3796_s29, %s3797_s9  ;;  %p3803_p1 = scmp.lt.s32.totalorder %s3801_s11, %s3797_s9 }
 0x339   : > { %3361 = vrot.lane.b32.xlu0 %v5893_v60, %s3848_s15 }
 0x33a   : > { %p3799_p12 = pnand %p3798_p11, %p3929_p5  ;;  %p3804_p2 = por %p3803_p1, %p3802_p0 }
 0x33b   : > { %3329 = vrot.lane.b32.xlu1 %v5863_v11, %s3851_s19  ;;  %3345 = vrot.lane.b32.xlu2 %v5909_v41, %s3846_s13  ;;  %v3186_v11 = vpop.permute.xlu1 %3185  ;;  %v2717_v41 = vrot.slane %v6132_v10, 4  ;;  %v3468_v10 = vld [vmem:[%s6479_s5] sm:$0xff] }
 0x33c   : > { %v3406_v58 = vsel %vm3405_vm3, %v6743_v25, %v3186_v11  ;;  %p3800_p13 = pneg %p3799_p12 }
 0x33d   : > { %v3208_v55 = vpop.permute.xlu2 %3207  ;;  %v3411_v53 = vsel %vm3410_vm4, %v3406_v58, %v3202_v40 }
 0x33e   : > { %p3805_p3 = pnand %p3804_p2, %p3800_p13 }
 0x341   : > { %3367 = vrot.lane.b32.xlu0 %v3176_v56, %s3848_s15 }
 0x343   : > { %3335 = vrot.lane.b32.xlu1 %v3172_v49, %s3851_s19  ;;  %3351 = vrot.lane.b32.xlu2 %v3174_v6, %s3846_s13 }
 0x345   : > { %v3222_v9 = vpop.permute.xlu2 %3221 }
 0x349   : > { %3381 = vrot.lane.b32.xlu0 %v6212_v17, %s3850_s18 }
 0x34b   : > { %3349 = vrot.lane.b32.xlu1 %v6229_v37, %s3846_s13  ;;  %3365 = vrot.lane.b32.xlu2 %v6215_v35, %s3848_s15  ;;  %v2718_v37 = vsel %vm749_vm2, %v2717_v41, %v6112_v42 }
 0x34d   : > { %v3236_v60 = vpop.permute.xlu2 %3235 }
 0x351   : > { %3395 = vrot.lane.b32.xlu0 %v5951_v13, %s3845_s12 }
 0x353   : > { %3363 = vrot.lane.b32.xlu1 %v5943_v31, %s3848_s15  ;;  %v3224_v1 = vpop.permute.xlu0 %3223  ;;  %3379 = vrot.lane.b32.xlu2 %v5964_v52, %s3850_s18 }
 0x355   : > { %v3192_v17 = vpop.permute.xlu1 %3191  ;;  %v3250_v20 = vpop.permute.xlu2 %3249 }
 0x356   : > { %v3409_v35 = vsel %vm3405_vm3, %v2718_v37, %v3192_v17 }
 0x357   : > { %v3414_v13 = vsel %vm3410_vm4, %v3409_v35, %v3208_v55 }
 0x358   : > { %v3419_v31 = vsel %vm3415_vm5, %v3414_v13, %v3224_v1 }
 0x359   : > { %3474 = vperm.xlu0 %3778, %v3468_v10  }
 0x35b   : > { %3377 = vrot.lane.b32.xlu1 %v5902_v19, %s3850_s18  ;;  %v3238_v52 = vpop.permute.xlu0 %3237  ;;  %3393 = vrot.lane.b32.xlu2 %v5877_v29, %s3845_s12 }
 0x35d   : > { %v3206_v42 = vpop.permute.xlu1 %3205  ;;  %v3256_v38 = vpop.permute.xlu2 %3255 }
 0x35e   : > { %v3413_v16 = vsel %vm3410_vm4, %v6225_v33, %v3206_v42  ;;  %v3470_v33 = vld [vmem:[%s6479_s5 + $0x10] sm:$0xff] }
 0x35f   : > { %v3418_v48 = vsel %vm3415_vm5, %v3413_v16, %v3222_v9 }
 0x360   : > { %v3423_v47 = vsel %vm3420_vm6, %v3418_v48, %v3238_v52 }
 0x363   : > { %3383 = vrot.lane.b32.xlu1 %v3178_v7, %s3850_s18  ;;  %v3252_v51 = vpop.permute.xlu0 %3251  ;;  %3399 = vrot.lane.b32.xlu2 %v3180_v5, %s3845_s12 }
 0x365   : > { %v3220_v19 = vpop.permute.xlu1 %3219  ;;  %v3270_v15 = vpop.permute.xlu2 %3269 }
 0x366   : > { %v3417_v29 = vsel %vm3415_vm5, %v6253_v28, %v3220_v19  ;;  %v3416_v28 = vsel %vm3415_vm5, %v3411_v53, %v3218_v3 }
 0x367   : > { %v3422_v36 = vsel %vm3420_vm6, %v3417_v29, %v3236_v60 }
 0x368   : > { %v3427_v27 = vsel %vm3425_vm7, %v3422_v36, %v3252_v51 }
 0x36b   : > { %3397 = vrot.lane.b32.xlu1 %v6207_v50, %s3845_s12  ;;  %v3266_v24 = vpop.permute.xlu0 %3265  ;;  %3484 = vperm.xlu2 %3780, %v3470_v33   ;;  %s257_s12 = sand.u32 1, %s3835_s22  }
 0x36c   : > { %s3602_s13 = sshll.u32 %s257_s12, 6  ;;  %s3509_s25 = scalar_lea.sflag [#allocation3], %s257_s12 }
 0x36d   : > { %v3234_v0 = vpop.permute.xlu1 %3233  ;;  %v6363_v61 = vpop.permute.xlu2 %3283  ;;  %s6405_s15 = scalar_lea.vmem [#allocation2], %s3602_s13 }
 0x36e   : > { %v3421_v54 = vsel %vm3420_vm6, %v3416_v28, %v3234_v0  ;;  %s3521_s26 = sshll.u32 %s6405_s15, 4  ;;  %s3522_s26 = int_to_ptr.vmem [resolvable:$true] %s3521_s26 }
 0x36f   : > { %v3426_v18 = vsel %vm3425_vm7, %v3421_v54, %v3250_v20 }
 0x370   : > { %v3431_v10 = vsel %vm3430_vm8, %v3426_v18, %v3266_v24 }
 0x373   : > { %3479 = vperm.xlu1 %3779, %v3469_v43   ;;  %v6370_v32 = vpop.permute.xlu0 %3271 }
 0x375   : > { %v3240_v50 = vpop.permute.xlu1 %3239  ;;  %v3298_v14 = vpop.permute.xlu2 %3297 }
 0x376   : > { %v3424_v45 = vsel %vm3420_vm6, %v3419_v31, %v3240_v50  ;;  %v3440_v57 = vsel %vm3405_vm3, %v5915_v30, %v3298_v14 }
 0x377   : > { %v6376_v22 = vsel %vm3425_vm7, %v3424_v45, %v3256_v38 }
 0x378   : > { %v3434_v54 = vsel %vm3430_vm8, %v6376_v22, %v6370_v32 }
 0x37b   : > { %3489 = vperm.xlu1 %3779, %v3471_v12   ;;  %v3286_v2 = vpop.permute.xlu0 %3285 }
 0x37d   : > { %v3254_v56 = vpop.permute.xlu1 %3253  ;;  %v3304_v49 = vpop.permute.xlu2 %3303 }
 0x37e   : > { %v3428_v39 = vsel %vm3425_vm7, %v3423_v47, %v3254_v56  ;;  %v3443_v6 = vsel %vm3405_vm3, %v6308_v46, %v3304_v49 }
 0x37f   : > { %v3433_v37 = vsel %vm3430_vm8, %v3428_v39, %v3270_v15 }
 0x380   : > { %v3438_v20 = vsel %vm3435_vm9, %v3433_v37, %v3286_v2 }
 0x383   : > { %v3300_v21 = vpop.permute.xlu0 %3299 }
 0x384   : > { %v3441_v30 = vsel %vm3405_vm3, %v5968_v26, %v3300_v21 }
 0x385   : > { %v3268_v4 = vpop.permute.xlu1 %3267  ;;  %v3318_v63 = vpop.permute.xlu2 %3317 }
 0x386   : > { %v6387_v59 = vsel %vm3430_vm8, %v3427_v27, %v3268_v4 }
 0x387   : > { %v3437_v4 = vsel %vm3435_vm9, %v6387_v59, %v6363_v61 }
 0x38b   : > { %v3314_v8 = vpop.permute.xlu0 %3313 }
 0x38c   : > { %v3444_v36 = vsel %vm3410_vm4, %v3440_v57, %v3314_v8 }
 0x38d   : > { %v3282_v34 = vpop.permute.xlu1 %3281  ;;  %v3332_v5 = vpop.permute.xlu2 %3331 }
 0x38e   : > { %v3436_v24 = vsel %vm3435_vm9, %v3431_v10, %v3282_v34 }
 0x393   : > { %v3320_v7 = vpop.permute.xlu0 %3319 }
 0x394   : > { %v3447_v23 = vsel %vm3410_vm4, %v3443_v6, %v3320_v7 }
 0x395   : > { %v3288_v40 = vpop.permute.xlu1 %3287  ;;  %v3346_v44 = vpop.permute.xlu2 %3345 }
 0x396   : > { %v3439_v43 = vsel %vm3435_vm9, %v3434_v54, %v3288_v40 }
 0x39b   : > { %v3334_v55 = vpop.permute.xlu0 %3333 }
 0x39d   : > { %v3302_v46 = vpop.permute.xlu1 %3301  ;;  %v3352_v9 = vpop.permute.xlu2 %3351 }
 0x39e   : > { %v3442_v26 = vsel %vm3405_vm3, %v6236_v62, %v3302_v46 }
 0x39f   : > { %v3446_v3 = vsel %vm3410_vm4, %v3442_v26, %v3318_v63 }
 0x3a0   : > { %v3450_v57 = vsel %vm3415_vm5, %v3446_v3, %v3334_v55 }
 0x3a3   : > { %v3348_v11 = vpop.permute.xlu0 %3347 }
 0x3a5   : > { %v3316_v60 = vpop.permute.xlu1 %3315  ;;  %v3366_v41 = vpop.permute.xlu2 %3365 }
 0x3a6   : > { %v3445_v1 = vsel %vm3410_vm4, %v3441_v30, %v3316_v60 }
 0x3a7   : > { %v3449_v17 = vsel %vm3415_vm5, %v3445_v1, %v3332_v5 }
 0x3a8   : > { %v3453_v56 = vsel %vm3420_vm6, %v3449_v17, %v3348_v11 }
 0x3ab   : > { %v3362_v35 = vpop.permute.xlu0 %3361 }
 0x3ad   : > { %v3330_v62 = vpop.permute.xlu1 %3329  ;;  %v3380_v13 = vpop.permute.xlu2 %3379 }
 0x3ae   : > { %v3448_v27 = vsel %vm3415_vm5, %v3444_v36, %v3330_v62 }
 0x3af   : > { %v3452_v25 = vsel %vm3420_vm6, %v3448_v27, %v3346_v44 }
 0x3b0   : > { %v3456_v0 = vsel %vm3425_vm7, %v3452_v25, %v3362_v35 }
 0x3b3   : > { %v3368_v31 = vpop.permute.xlu0 %3367 }
 0x3b5   : > { %v3336_v52 = vpop.permute.xlu1 %3335  ;;  %v3394_v42 = vpop.permute.xlu2 %3393 }
 0x3b6   : > { %v3451_v38 = vsel %vm3415_vm5, %v3447_v23, %v3336_v52 }
 0x3b7   : > { %v3455_v16 = vsel %vm3420_vm6, %v3451_v38, %v3352_v9 }
 0x3b8   : > { %v3459_v5 = vsel %vm3425_vm7, %v3455_v16, %v3368_v31 }
 0x3bb   : > { %v3382_v48 = vpop.permute.xlu0 %3381 }
 0x3bd   : > { %v3350_v47 = vpop.permute.xlu1 %3349  ;;  %v3400_v51 = vpop.permute.xlu2 %3399 }
 0x3be   : > { %v3454_v12 = vsel %vm3420_vm6, %v3450_v57, %v3350_v47 }
 0x3bf   : > { %v3458_v2 = vsel %vm3425_vm7, %v3454_v12, %v3366_v41 }
 0x3c0   : > { %v3462_v22 = vsel %vm3430_vm8, %v3458_v2, %v3382_v48 }
 0x3c3   : > { %v3396_v19 = vpop.permute.xlu0 %3395 }
 0x3c5   : > { %v3364_v15 = vpop.permute.xlu1 %3363  ;;  %v3485_v29 = vpop.permute.xlu2 %3484 }
 0x3c6   : > { %v3496_v33 = vadd.f32 %v3485_v29, %v3438_v20  ;;  %v3457_v39 = vsel %vm3425_vm7, %v3453_v56, %v3364_v15 }
 0x3c7   : > { %v3461_v21 = vsel %vm3430_vm8, %v3457_v39, %v3380_v13 }
 0x3c8   : > { %3504 = vst [vmem:[%s6405_s15 + $0x20] sm:$0xff] %v3496_v33  ;;  %v3465_v63 = vsel %vm3435_vm9, %v3461_v21, %v3396_v19 }
 0x3cb   : > { %v3475_v58 = vpop.permute.xlu0 %3474 }
 0x3cc   : > { %v3492_v53 = vadd.f32 %v3475_v58, %v3436_v24 }
 0x3cd   : > { %v3378_v28 = vpop.permute.xlu1 %3377 }
 0x3ce   : > { %3500 = vst [vmem:[%s6405_s15] sm:$0xff] %v3492_v53  ;;  %v3460_v18 = vsel %vm3430_vm8, %v3456_v0, %v3378_v28 }
 0x3cf   : > { %v3464_v50 = vsel %vm3435_vm9, %v3460_v18, %v3394_v42 }
 0x3d0   : > { %v3493_v14 = vadd.f32 %v3475_v58, %v3464_v50 }
 0x3d2   : > { %3501 = vst [vmem:[%s6405_s15 + $0x8] sm:$0xff] %v3493_v14 }
 0x3d5   : > { %v3384_v45 = vpop.permute.xlu1 %3383 }
 0x3d6   : > { %v3463_v7 = vsel %vm3430_vm8, %v3459_v5, %v3384_v45 }
 0x3d7   : > { %v3467_v59 = vsel %vm3435_vm9, %v3463_v7, %v3400_v51 }
 0x3dd   : > { %v3398_v32 = vpop.permute.xlu1 %3397 }
 0x3de   : > { %v3466_v49 = vsel %vm3435_vm9, %v3462_v22, %v3398_v32 }
 0x3df   : > { %v3497_v6 = vadd.f32 %v3485_v29, %v3466_v49 }
 0x3e1   : > { %3505 = vst [vmem:[%s6405_s15 + $0x28] sm:$0xff] %v3497_v6 }
 0x3e5   : > { %v3480_v30 = vpop.permute.xlu1 %3479 }
 0x3e6   : > { %v3494_v8 = vadd.f32 %v3480_v30, %v3437_v4  ;;  %v3495_v34 = vadd.f32 %v3480_v30, %v3465_v63 }
 0x3e8   : > { %3502 = vst [vmem:[%s6405_s15 + $0x10] sm:$0xff] %v3494_v8 }
 0x3e9   : > { %3503 = vst [vmem:[%s6405_s15 + $0x18] sm:$0xff] %v3495_v34 }
 0x3ed   : > { %v3490_v61 = vpop.permute.xlu1 %3489 }
 0x3ee   : > { %v3498_v23 = vadd.f32 %v3490_v61, %v3439_v43  ;;  %v3499_v40 = vadd.f32 %v3490_v61, %v3467_v59 }
 0x3f0   : > { %3506 = vst [vmem:[%s6405_s15 + $0x30] sm:$0xff] %v3498_v23 }
 0x3f1   : > { %3507 = vst [vmem:[%s6405_s15 + $0x38] sm:$0xff] %v3499_v40 }
 0x3f2   : > { %3808 = shalt.err (!%p3805_p3)
}
 0x3f3   : > { %s3855_s12 = smov 256  }
 0x3f4   : > { %3699 = dma.vmem_to_hbm [thread:$0]  (%p3929_p5), %s3522_s26, 1024, %s3524_s28, %s3509_s25, %s3855_s12, %s3855_s12, %s3847_s14  }
 0x3f5 PF: > { %p3705_p4 = scmp.ge.s32.totalorder %s3843_s24, 2  ;;  %s3538_s15 = sand.u32 1, %s3831_s21  }
 0x3f6   : > { %s3539_s18 = scalar_lea.sflag [#allocation3], %s3538_s15 }
 0x3f7   : > { %p3702_p7 = pnand %p3705_p4, %p3933_p6 }
 0x3f9   : > { %p3703_p8 = pneg %p3702_p7 }
 0x3fb   : > { %3826 = dma.done.wait (%p3703_p8), %s3539_s18, 1024  }
 0x3fc   : > { %3828 = vsyncadd (%p3703_p8), %s3539_s18, 4294966272  ;;  %p16_p9 = scmp.ge.s32.totalorder %s3916_s27, 4   ;;  %s6744_s21 = smov %s3835_s22 }
 0x3fd   : > { %s6745_s22 = smov %s3839_s23  ;;  %s6746_s23 = smov %s3927_s30 }
 0x3fe   : > { %s6747_s24 = smov %s3916_s27  ;;  %18 = sbr.rel (!%p16_p9) target bundleno = 3 (0x3), region = 82 }
 0x403   :  { %3545 = vsyncpa [#allocation3], 1 }
 0x404   :  { %3547 = vsyncpa [#allocation3 + $0x1], 1 }

</bundles_post_ra>
